<compile_context>
chip_gen: v7x
topology: tpu7x:2x2x1
jax: 0.10.0
libtpu: 0.0.40
codegen_flags: <defaults>
</compile_context>

<pallas_src>
import jax
import jax.numpy as jnp
from jax.experimental import pallas as pl
from jax.experimental.pallas import tpu as pltpu

IN_FEATURES = 2381
OUT_DIM = 50
OUT_PAD = 128          # lane-dense output block
EPS = 1e-5
NEG_BIG = -1e30        # additive mask value for padded class lanes


def _round_up(n, m):
    return (n + m - 1) // m * m


def _pick_tb(batch):
    # >=256 rows fills the 256-row MXU on v6e/v7x; keep >=4 grid steps so the
    # v7x megacore gets >=2 pipelined steps per TensorCore.  Multiples of 16
    # keep bf16 sublane tiling happy; multiples of 128 fully feed v5e's MXU.
    for cand in (512, 256, 128, 64, 32, 16):
        if batch >= 4 * cand:
            return cand
    return 16


# ---------------------------------------------------------------------------
# Kernel
# ---------------------------------------------------------------------------
def classifier_kernel(x_ref,
                      w1_ref, b1_ref,
                      w2_ref, b2_ref,
                      w3_ref, b3_ref,
                      wf_ref, bf_ref,
                      mask_ref,
                      o_ref):
    """One (tb, 2381) batch tile -> (tb, OUT_PAD) softmax probabilities."""

    def mm_bias_relu(h, w_ref, b_ref):
        # bf16 x bf16 MXU matmul, f32 accumulation; bias add + ReLU in f32.
        # (astype is a no-op when h is already bf16, e.g. a bf16 x stream.)
        z = jnp.dot(h.astype(jnp.bfloat16), w_ref[...],
                    preferred_element_type=jnp.float32)
        return jnp.maximum(z + b_ref[...], 0.0)

    h = mm_bias_relu(x_ref[...], w1_ref, b1_ref)   # conv1 + BN + ReLU  (tb,512)
    h = mm_bias_relu(h, w2_ref, b2_ref)            # conv2 + BN + ReLU (+pool=id)
    h = mm_bias_relu(h, w3_ref, b3_ref)            # conv3 + BN + ReLU  (tb,128)
    z = mm_bias_relu(h, wf_ref, bf_ref)            # fc1 + BN + ReLU    (tb,128)

    # Additive class mask (0 on real classes, -1e30 on padded lanes), softmax.
    z = z + mask_ref[...]
    m = jnp.max(z, axis=-1, keepdims=True)
    e = jnp.exp(z - m)                             # padded lanes -> 0
    s = jnp.sum(e, axis=-1, keepdims=True)
    r = pl.reciprocal(s, approx=True)
    r = r * (2.0 - s * r)                          # Newton step: exact-ish sums
    o_ref[...] = e * r


# ---------------------------------------------------------------------------
# Wrapper
# ---------------------------------------------------------------------------
def classifier_forward(x, packed_params, *, tb=None,
                       vmem_limit_bytes=48 * 1024 * 1024):
    """x: (B, 2381) or (B, T, 2381), f32 or bf16 -> softmax probs (.., 50)."""
    orig_shape = x.shape
    if x.ndim == 3:
        x = x.reshape(-1, orig_shape[-1])
    B, K = x.shape
    assert K == IN_FEATURES, K

    if tb is None:
        tb = _pick_tb(B)
    tb = max(16, _round_up(tb, 16))
    Bp = _round_up(B, tb)

    # No feature-dim pad, no dtype pass: x streams straight into the kernel
    # (full-extent 2381-wide block).  Batch pad only when B % tb != 0.
    xp = x if Bp == B else jnp.pad(x, ((0, Bp - B), (0, 0)))

    (w1, b1, w2, b2, w3, b3, wf, bf, mask) = packed_params

    def const_spec(shape):
        # Constant block index -> the pipeliner only fetches these once.
        return pl.BlockSpec(shape, lambda i: (0, 0))

    in_specs = [pl.BlockSpec((tb, IN_FEATURES), lambda i: (i, 0))]
    for w, b in ((w1, b1), (w2, b2), (w3, b3), (wf, bf)):
        in_specs += [const_spec(w.shape), const_spec(b.shape)]
    in_specs.append(const_spec(mask.shape))
    out_spec = pl.BlockSpec((tb, OUT_PAD), lambda i: (i, 0))

    out = pl.pallas_call(
        classifier_kernel,
        out_shape=jax.ShapeDtypeStruct((Bp, OUT_PAD), jnp.float32),
        grid_spec=pltpu.PrefetchScalarGridSpec(
            num_scalar_prefetch=0,
            grid=(Bp // tb,),
            in_specs=in_specs,
            out_specs=out_spec),
        compiler_params=pltpu.CompilerParams(
            dimension_semantics=("parallel",),
            vmem_limit_bytes=vmem_limit_bytes),
    )(xp, w1, b1, w2, b2, w3, b3, wf, bf, mask)

    out = out[:B, :OUT_DIM]
    if len(orig_shape) == 3:
        out = out.reshape(orig_shape[0], orig_shape[1], OUT_DIM)
    return out


# ---------------------------------------------------------------------------
# Parameter construction: raw (PyTorch-shaped) params -> folded/packed params
# ---------------------------------------------------------------------------
def fold_bn(w, b, gamma, beta, mean, var, eps=EPS):
    """Fold conv/linear bias + eval-mode BatchNorm into (W', b')."""
    s = gamma / jnp.sqrt(var + eps)                  # (c_out,)
    w_f = (w * s).astype(jnp.bfloat16)               # (c_in, c_out) bf16
    b_f = ((b - mean) * s + beta).astype(jnp.float32).reshape(1, -1)
    return w_f, b_f


def pack_params(layers):
    """layers: 4 dicts with keys w(c_in,c_out), b, gamma, beta, mean, var."""
    packed = []
    for idx, L in enumerate(layers):
        w, b = fold_bn(L["w"], L["b"], L["gamma"], L["beta"],
                       L["mean"], L["var"])
        if idx == 3:   # pad classes 50 -> 128 (lane-dense output block)
            w = jnp.pad(w, ((0, 0), (0, OUT_PAD - OUT_DIM)))
            b = jnp.pad(b, ((0, 0), (0, OUT_PAD - OUT_DIM)))
        packed += [w, b]
    # Additive class mask: 0 for real classes, NEG_BIG for padded lanes.
    mask = jnp.where(jnp.arange(OUT_PAD) < OUT_DIM, 0.0, NEG_BIG)
    packed.append(mask.reshape(1, OUT_PAD).astype(jnp.float32))
    return tuple(packed)


def init_params(key):
    """Deterministic synthetic params matching the module's __init__ shapes
    (eval-mode BN: running_mean=0, running_var=1; a real checkpoint would
    supply its own running stats, which fold_bn handles)."""
    ks = jax.random.split(key, 16)

    def conv_center_tap(k, c_out, c_in):
        # Full Conv1d weight (c_out, c_in, 3); only the center tap matters
        # because L == 1 with padding == 1 (the module always reshapes to L=1).
        w_full = jax.random.normal(k, (c_out, c_in, 3), jnp.float32) * 0.02
        return jnp.transpose(w_full[:, :, 1])        # (c_in, c_out)

    def layer(kw, kb, kg, kbe, c_in, c_out, linear=False):
        if linear:
            w = jnp.transpose(
                jax.random.normal(kw, (c_out, c_in), jnp.float32) * 0.05)
        else:
            w = conv_center_tap(kw, c_out, c_in)
        return dict(
            w=w,
            b=jax.random.normal(kb, (c_out,), jnp.float32) * 0.02,
            gamma=1.0 + 0.1 * jax.random.normal(kg, (c_out,), jnp.float32),
            beta=0.1 * jax.random.normal(kbe, (c_out,), jnp.float32),
            mean=jnp.zeros((c_out,), jnp.float32),
            var=jnp.ones((c_out,), jnp.float32),
        )

    l1 = layer(ks[0], ks[1], ks[2], ks[3], IN_FEATURES, 512)
    l2 = layer(ks[4], ks[5], ks[6], ks[7], 512, 256)
    l3 = layer(ks[8], ks[9], ks[10], ks[11], 256, 128)
    l4 = layer(ks[12], ks[13], ks[14], ks[15], 128, OUT_DIM, linear=True)
    return (l1, l2, l3, l4)


# Pure-JAX reference using the same folded/packed params (for correctness).
def reference_forward(x, packed_params):
    (w1, b1, w2, b2, w3, b3, wf, bf, mask) = packed_params

    def mm(h, w, b):
        return jnp.maximum(
            jnp.dot(h.astype(jnp.bfloat16), w,
                    preferred_element_type=jnp.float32) + b, 0.0)

    h = mm(x, w1, b1)
    h = mm(h, w2, b2)
    h = mm(h, w3, b3)
    z = mm(h, wf, bf) + mask
    return jax.nn.softmax(z, axis=-1)[:, :OUT_DIM]


if __name__ == "__main__":
    key = jax.random.PRNGKey(0)
    kx, kp = jax.random.split(key)

    B = 256                      # tb auto-picks 64 -> 4 pipelined grid steps
    x = jax.random.normal(kx, (B, IN_FEATURES), jnp.float32)
    packed = pack_params(init_params(kp))

    out = jax.block_until_ready(classifier_forward(x, packed))

    assert out.shape == (B, OUT_DIM), out.shape
    assert bool(jnp.all(jnp.isfinite(out)))
    assert bool(jnp.all(out >= 0.0))
    row_sums = jnp.sum(out, axis=-1)
    assert bool(jnp.all(jnp.abs(row_sums - 1.0) < 1e-3)), row_sums

    ref = reference_forward(x, packed)
    max_err = float(jnp.max(jnp.abs(out - ref)))
    assert max_err < 2e-3, max_err

    print("KERNEL_OK")
</pallas_src>

<mosaic_0001>
module attributes {stable_mosaic.version = 11 : i64} {
  func.func @classifier_kernel(%arg0: i32, %arg1: memref<64x2381xf32, #tpu.memory_space<vmem>>, %arg2: memref<2381x512xbf16, #tpu.memory_space<vmem>>, %arg3: memref<1x512xf32, #tpu.memory_space<vmem>>, %arg4: memref<512x256xbf16, #tpu.memory_space<vmem>>, %arg5: memref<1x256xf32, #tpu.memory_space<vmem>>, %arg6: memref<256x128xbf16, #tpu.memory_space<vmem>>, %arg7: memref<1x128xf32, #tpu.memory_space<vmem>>, %arg8: memref<128x128xbf16, #tpu.memory_space<vmem>>, %arg9: memref<1x128xf32, #tpu.memory_space<vmem>>, %arg10: memref<1x128xf32, #tpu.memory_space<vmem>>, %arg11: memref<64x128xf32, #tpu.memory_space<vmem>>) attributes {dimension_semantics = [#tpu.dimension_semantics<parallel>], iteration_bounds = array<i64: 4>, scalar_prefetch = 0 : i64, scratch_operands = 0 : i64, tpu.core_type = #tpu.core_type<tc>, window_params = [{transform_indices = @transform_0, window_bounds = array<i64: 64, 2381>}, {pipeline_mode = #tpu.pipeline_mode<synchronous>, transform_indices = @transform_1, window_bounds = array<i64: 2381, 512>}, {pipeline_mode = #tpu.pipeline_mode<synchronous>, transform_indices = @transform_2, window_bounds = array<i64: 1, 512>}, {pipeline_mode = #tpu.pipeline_mode<synchronous>, transform_indices = @transform_3, window_bounds = array<i64: 512, 256>}, {pipeline_mode = #tpu.pipeline_mode<synchronous>, transform_indices = @transform_4, window_bounds = array<i64: 1, 256>}, {pipeline_mode = #tpu.pipeline_mode<synchronous>, transform_indices = @transform_5, window_bounds = array<i64: 256, 128>}, {pipeline_mode = #tpu.pipeline_mode<synchronous>, transform_indices = @transform_6, window_bounds = array<i64: 1, 128>}, {pipeline_mode = #tpu.pipeline_mode<synchronous>, transform_indices = @transform_7, window_bounds = array<i64: 128, 128>}, {pipeline_mode = #tpu.pipeline_mode<synchronous>, transform_indices = @transform_8, window_bounds = array<i64: 1, 128>}, {pipeline_mode = #tpu.pipeline_mode<synchronous>, transform_indices = @transform_9, window_bounds = array<i64: 1, 128>}, {transform_indices = @transform_10, window_bounds = array<i64: 64, 128>}]} {
    %c0 = arith.constant 0 : index
    %c0_0 = arith.constant 0 : index
    %0 = vector.load %arg1[%c0, %c0_0] : memref<64x2381xf32, #tpu.memory_space<vmem>>, vector<64x2381xf32>
    %1 = arith.truncf %0 : vector<64x2381xf32> to vector<64x2381xbf16>
    %c0_1 = arith.constant 0 : index
    %c0_2 = arith.constant 0 : index
    %2 = vector.load %arg2[%c0_1, %c0_2] : memref<2381x512xbf16, #tpu.memory_space<vmem>>, vector<2381x512xbf16>
    %cst = arith.constant dense<0.000000e+00> : vector<64x512xf32>
    %3 = tpu.matmul %1, %2, %cst {dimension_numbers = #tpu.dot_dimension_numbers<[1], [0], [0], [1], [0, 0, 1, 1], [], []>} : vector<64x2381xbf16>, vector<2381x512xbf16>, vector<64x512xf32> -> vector<64x512xf32>
    %c0_3 = arith.constant 0 : index
    %c0_4 = arith.constant 0 : index
    %4 = vector.load %arg3[%c0_3, %c0_4] : memref<1x512xf32, #tpu.memory_space<vmem>>, vector<1x512xf32>
    %5 = vector.broadcast %4 : vector<1x512xf32> to vector<64x512xf32>
    %6 = arith.addf %3, %5 : vector<64x512xf32>
    %cst_5 = arith.constant 0.000000e+00 : f32
    %7 = vector.broadcast %cst_5 : f32 to vector<64x512xf32>
    %8 = arith.maximumf %6, %7 : vector<64x512xf32>
    %9 = arith.truncf %8 : vector<64x512xf32> to vector<64x512xbf16>
    %c0_6 = arith.constant 0 : index
    %c0_7 = arith.constant 0 : index
    %10 = vector.load %arg4[%c0_6, %c0_7] : memref<512x256xbf16, #tpu.memory_space<vmem>>, vector<512x256xbf16>
    %cst_8 = arith.constant dense<0.000000e+00> : vector<64x256xf32>
    %11 = tpu.matmul %9, %10, %cst_8 {dimension_numbers = #tpu.dot_dimension_numbers<[1], [0], [0], [1], [0, 0, 1, 1], [], []>} : vector<64x512xbf16>, vector<512x256xbf16>, vector<64x256xf32> -> vector<64x256xf32>
    %c0_9 = arith.constant 0 : index
    %c0_10 = arith.constant 0 : index
    %12 = vector.load %arg5[%c0_9, %c0_10] : memref<1x256xf32, #tpu.memory_space<vmem>>, vector<1x256xf32>
    %13 = vector.broadcast %12 : vector<1x256xf32> to vector<64x256xf32>
    %14 = arith.addf %11, %13 : vector<64x256xf32>
    %cst_11 = arith.constant 0.000000e+00 : f32
    %15 = vector.broadcast %cst_11 : f32 to vector<64x256xf32>
    %16 = arith.maximumf %14, %15 : vector<64x256xf32>
    %17 = arith.truncf %16 : vector<64x256xf32> to vector<64x256xbf16>
    %c0_12 = arith.constant 0 : index
    %c0_13 = arith.constant 0 : index
    %18 = vector.load %arg6[%c0_12, %c0_13] : memref<256x128xbf16, #tpu.memory_space<vmem>>, vector<256x128xbf16>
    %cst_14 = arith.constant dense<0.000000e+00> : vector<64x128xf32>
    %19 = tpu.matmul %17, %18, %cst_14 {dimension_numbers = #tpu.dot_dimension_numbers<[1], [0], [0], [1], [0, 0, 1, 1], [], []>} : vector<64x256xbf16>, vector<256x128xbf16>, vector<64x128xf32> -> vector<64x128xf32>
    %c0_15 = arith.constant 0 : index
    %c0_16 = arith.constant 0 : index
    %20 = vector.load %arg7[%c0_15, %c0_16] : memref<1x128xf32, #tpu.memory_space<vmem>>, vector<1x128xf32>
    %21 = vector.broadcast %20 : vector<1x128xf32> to vector<64x128xf32>
    %22 = arith.addf %19, %21 : vector<64x128xf32>
    %cst_17 = arith.constant 0.000000e+00 : f32
    %23 = vector.broadcast %cst_17 : f32 to vector<64x128xf32>
    %24 = arith.maximumf %22, %23 : vector<64x128xf32>
    %25 = arith.truncf %24 : vector<64x128xf32> to vector<64x128xbf16>
    %c0_18 = arith.constant 0 : index
    %c0_19 = arith.constant 0 : index
    %26 = vector.load %arg8[%c0_18, %c0_19] : memref<128x128xbf16, #tpu.memory_space<vmem>>, vector<128x128xbf16>
    %cst_20 = arith.constant dense<0.000000e+00> : vector<64x128xf32>
    %27 = tpu.matmul %25, %26, %cst_20 {dimension_numbers = #tpu.dot_dimension_numbers<[1], [0], [0], [1], [0, 0, 1, 1], [], []>} : vector<64x128xbf16>, vector<128x128xbf16>, vector<64x128xf32> -> vector<64x128xf32>
    %c0_21 = arith.constant 0 : index
    %c0_22 = arith.constant 0 : index
    %28 = vector.load %arg9[%c0_21, %c0_22] : memref<1x128xf32, #tpu.memory_space<vmem>>, vector<1x128xf32>
    %29 = vector.broadcast %28 : vector<1x128xf32> to vector<64x128xf32>
    %30 = arith.addf %27, %29 : vector<64x128xf32>
    %cst_23 = arith.constant 0.000000e+00 : f32
    %31 = vector.broadcast %cst_23 : f32 to vector<64x128xf32>
    %32 = arith.maximumf %30, %31 : vector<64x128xf32>
    %c0_24 = arith.constant 0 : index
    %c0_25 = arith.constant 0 : index
    %33 = vector.load %arg10[%c0_24, %c0_25] : memref<1x128xf32, #tpu.memory_space<vmem>>, vector<1x128xf32>
    %34 = vector.broadcast %33 : vector<1x128xf32> to vector<64x128xf32>
    %35 = arith.addf %32, %34 : vector<64x128xf32>
    %cst_26 = arith.constant dense<0xFF800000> : vector<64xf32>
    %36 = vector.multi_reduction <maximumf>, %35, %cst_26 [1] : vector<64x128xf32> to vector<64xf32>
    %37 = vector.shape_cast %36 : vector<64xf32> to vector<64x1xf32>
    %38 = vector.broadcast %37 : vector<64x1xf32> to vector<64x128xf32>
    %39 = arith.subf %35, %38 : vector<64x128xf32>
    %40 = math.exp %39 : vector<64x128xf32>
    %cst_27 = arith.constant dense<0.000000e+00> : vector<64xf32>
    %41 = vector.multi_reduction <add>, %40, %cst_27 [1] : vector<64x128xf32> to vector<64xf32>
    %42 = vector.shape_cast %41 : vector<64xf32> to vector<64x1xf32>
    %43 = tpu.reciprocal %42 {approx = true} : vector<64x1xf32> -> vector<64x1xf32>
    %44 = arith.mulf %42, %43 : vector<64x1xf32>
    %cst_28 = arith.constant 2.000000e+00 : f32
    %45 = vector.broadcast %cst_28 : f32 to vector<64x1xf32>
    %46 = arith.subf %45, %44 : vector<64x1xf32>
    %47 = arith.mulf %43, %46 : vector<64x1xf32>
    %48 = vector.broadcast %47 : vector<64x1xf32> to vector<64x128xf32>
    %49 = arith.mulf %40, %48 : vector<64x128xf32>
    %c0_29 = arith.constant 0 : index
    %c0_30 = arith.constant 0 : index
    %50 = vector.load %arg11[%c0_29, %c0_30] : memref<64x128xf32, #tpu.memory_space<vmem>>, vector<64x128xf32>
    tpu.vector_store %arg11[%c0_29, %c0_30], %49 {strides = array<i32>} : memref<64x128xf32, #tpu.memory_space<vmem>>, vector<64x128xf32>,
    return
  }
  func.func @transform_0(%arg0: i32) -> (i32, i32) {
    %c0_i32 = arith.constant 0 : i32
    %c0_i32_0 = arith.constant 0 : i32
    return %arg0, %c0_i32 : i32, i32
  }
  func.func @transform_1(%arg0: i32) -> (i32, i32) {
    %c0_i32 = arith.constant 0 : i32
    %c0_i32_0 = arith.constant 0 : i32
    %c0_i32_1 = arith.constant 0 : i32
    return %c0_i32, %c0_i32_0 : i32, i32
  }
  func.func @transform_2(%arg0: i32) -> (i32, i32) {
    %c0_i32 = arith.constant 0 : i32
    %c0_i32_0 = arith.constant 0 : i32
    %c0_i32_1 = arith.constant 0 : i32
    return %c0_i32, %c0_i32_0 : i32, i32
  }
  func.func @transform_3(%arg0: i32) -> (i32, i32) {
    %c0_i32 = arith.constant 0 : i32
    %c0_i32_0 = arith.constant 0 : i32
    %c0_i32_1 = arith.constant 0 : i32
    return %c0_i32, %c0_i32_0 : i32, i32
  }
  func.func @transform_4(%arg0: i32) -> (i32, i32) {
    %c0_i32 = arith.constant 0 : i32
    %c0_i32_0 = arith.constant 0 : i32
    %c0_i32_1 = arith.constant 0 : i32
    return %c0_i32, %c0_i32_0 : i32, i32
  }
  func.func @transform_5(%arg0: i32) -> (i32, i32) {
    %c0_i32 = arith.constant 0 : i32
    %c0_i32_0 = arith.constant 0 : i32
    %c0_i32_1 = arith.constant 0 : i32
    return %c0_i32, %c0_i32_0 : i32, i32
  }
  func.func @transform_6(%arg0: i32) -> (i32, i32) {
    %c0_i32 = arith.constant 0 : i32
    %c0_i32_0 = arith.constant 0 : i32
    %c0_i32_1 = arith.constant 0 : i32
    return %c0_i32, %c0_i32_0 : i32, i32
  }
  func.func @transform_7(%arg0: i32) -> (i32, i32) {
    %c0_i32 = arith.constant 0 : i32
    %c0_i32_0 = arith.constant 0 : i32
    %c0_i32_1 = arith.constant 0 : i32
    return %c0_i32, %c0_i32_0 : i32, i32
  }
  func.func @transform_8(%arg0: i32) -> (i32, i32) {
    %c0_i32 = arith.constant 0 : i32
    %c0_i32_0 = arith.constant 0 : i32
    %c0_i32_1 = arith.constant 0 : i32
    return %c0_i32, %c0_i32_0 : i32, i32
  }
  func.func @transform_9(%arg0: i32) -> (i32, i32) {
    %c0_i32 = arith.constant 0 : i32
    %c0_i32_0 = arith.constant 0 : i32
    %c0_i32_1 = arith.constant 0 : i32
    return %c0_i32, %c0_i32_0 : i32, i32
  }
  func.func @transform_10(%arg0: i32) -> (i32, i32) {
    %c0_i32 = arith.constant 0 : i32
    %c0_i32_0 = arith.constant 0 : i32
    return %arg0, %c0_i32 : i32, i32
  }
}

</mosaic_0001>

<bundles_post_ra>
// kernel: tpu_custom_call.1
= control target key start
LH: loop header
LB: loop body
LE: loop exit
PB: predicated region body
PF: predicated region fallthrough
CT: control target
= control target key end

     0   :  { %s11869_s0 = inlined_call_operand.vmem [shape: f32[256,2381], index: 0, kind: input, shape index: {}]   ;;  %s11870_s1 = inlined_call_operand.vmem [shape: bf16[2381,512], index: 1, kind: input, shape index: {}]   ;;  %s11871_s2 = inlined_call_operand.vmem [shape: f32[1,512], index: 2, kind: input, shape index: {}]   ;;  %s11872_s3 = inlined_call_operand.vmem [shape: bf16[512,256], index: 3, kind: input, shape index: {}]   ;;  %s11873_s4 = inlined_call_operand.vmem [shape: f32[1,256], index: 4, kind: input, shape index: {}]   ;;  %s11874_s5 = inlined_call_operand.vmem [shape: bf16[256,128], index: 5, kind: input, shape index: {}]   ;;  %s11875_s6 = inlined_call_operand.vmem [shape: f32[1,128], index: 6, kind: input, shape index: {}]   ;;  %s11876_s7 = inlined_call_operand.vmem [shape: bf16[128,128], index: 7, kind: input, shape index: {}]   ;;  %s11877_s8 = inlined_call_operand.vmem [shape: f32[1,128], index: 8, kind: input, shape index: {}]   ;;  %s11878_s9 = inlined_call_operand.vmem [shape: f32[1,128], index: 9, kind: input, shape index: {}]   ;;  %s11879_s10 = inlined_call_operand.hbm [shape: f32[256,128], index: 10, kind: output, shape index: {}]  }
   0x1   :  { %11880 = sst [smem:[#allocation6_spill]] %s11869_s0 }
   0x2   :  { %15 = vsyncpa [#allocation3], 0 }
   0x3   :  { %17 = vsyncpa [#allocation3 + $0x1], 0  ;;  %s9191_s13 = smov 0   ;;  %s9193_s14 = smov 0  }
   0x4   :  { %s9195_s15 = smov 0   ;;  %s9197_s16 = smov 0  }
   0x5 LB: > { %s9212_s17 = sadd.s32 4294967295, %s9129_s16   ;;  %s6841_s18 = sadd.s32 4294967294, %s9129_s16   ;;  %s9129_s16 = sphi %s9197_s16, %s11889_s16   ;;  %s9125_s15 = sphi %s9195_s15, %s11888_s15   ;;  %s9121_s14 = sphi %s9193_s14, %s11887_s14   ;;  %s9117_s13 = sphi %s9191_s13, %s11886_s13  }
   0x6   : > { %s9216_s19 = sadd.s32 1, %s9129_s16   ;;  %s245_s20 = sadd.s32 1, %s9125_s15 }
   0x7   : > { %s242_s21 = ssub.s32 %s9129_s16, %s9216_s19  ;;  %p255_p0 = scmp.ne.s32.totalorder %s9125_s15, %s9121_s14 }
   0x8   : > { %p243_p1 = scmp.eq.s32.totalorder %s242_s21, 0  ;;  %p256_p2 = scmp.eq.s32.totalorder %s9212_s17, 3 }
   0x9   : > { %p261_p3 = scmp.ne.s32.totalorder %s9121_s14, %s9117_s13  ;;  %p262_p4 = scmp.eq.s32.totalorder %s6841_s18, 3 }
   0xa   : > { %s9227_s22 = scalar_select %p243_p1, %s9125_s15, %s245_s20  }
   0xb   : > { %p9229_p5 = por %p256_p2, %p255_p0  ;;  %p9233_p6 = por %p262_p4, %p261_p3 }
   0xc   : > { %11881 = sst [smem:[#allocation5_spill]] %s9227_s22  ;;  %p6844_p7 = scmp.ge.s32.totalorder %s9129_s16, 1 }
   0xd   : > { %p317_p8 = scmp.lt.s32.totalorder %s9129_s16, 5 }
   0xf   : > { %p318_p9 = pnand %p6844_p7, %p317_p8 }
  0x10   : > { %v8021_v0 = vld [vmem:[%s11870_s1 + $0x4] ss:$16 sps:$4 sm:$0xff] (!%p318_p9)   ;;  %v8025_v2 = vld [vmem:[%s11870_s1] ss:$16 sps:$4 sm:$0xff] (!%p318_p9)   ;;  %v9131_v4 = vmov (!%p318_p9), 0   ;;  %s6846_s21 = sshll.u32 (!%p318_p9), %s9212_s17, 3 }
  0x11   : > { %321 = sbr.rel (%p318_p9) target bundleno = 1908 (0x774), region = 60  ;;  %v8023_v1 = vld [vmem:[%s11870_s1 + $0x1204] ss:$16 sps:$4 sm:$0xff] (!%p318_p9)   ;;  %4216 = vmatprep.subr.bf16.mxu0 (!%p318_p9), %v8021_v0  ;;  %v8026_v3 = vld [vmem:[%s11870_s1 + $0x1200] ss:$16 sps:$4 sm:$0xff] (!%p318_p9)   ;;  %4905 = vmatprep.mubr.bf16.mxu1 (!%p318_p9), %v9131_v4  ;;  %p357_p10 = scmp.lt.s32.totalorder (!%p318_p9), %s6846_s21, 31 }
  0x12   : > { %4873 = vmatprep.subr.bf16.mxu1 (!%p318_p9), %v8023_v1  ;;  %v8027_v5 = vld [vmem:[%s11870_s1 + $0x24] ss:$16 sps:$4 sm:$0xff] (!%p318_p9)   ;;  %4217 = vmatpush1.bf16.msra.mxu0 (!%p318_p9), %v8025_v2  ;;  %v8031_v7 = vld [vmem:[%s11870_s1 + $0x20] ss:$16 sps:$4 sm:$0xff] (!%p318_p9)   ;;  %vm4200_vm0 = vcmask (!%p318_p9), 1045504   ;;  %vm4201_vm1 = vcmask (!%p318_p9), 1046528  }
  0x13   : > { %4874 = vmatpush1.bf16.msra.mxu1 (!%p318_p9), %v8026_v3  ;;  %v8029_v6 = vld [vmem:[%s11870_s1 + $0x1224] ss:$16 sps:$4 sm:$0xff] (!%p318_p9)   ;;  %4218 = vmatprep.subr.bf16.mxu0 (!%p318_p9), %v8027_v5  ;;  %v8032_v8 = vld [vmem:[%s11870_s1 + $0x1220] ss:$16 sps:$4 sm:$0xff] (!%p318_p9)   ;;  %v9132_v14 = vmov (!%p318_p9), 65535   ;;  %s11884_s0 = sld [smem:[#allocation6_spill]] (!%p318_p9) }
  0x14   : > { %4875 = vmatprep.subr.bf16.mxu1 (!%p318_p9), %v8029_v6  ;;  %v8033_v9 = vld [vmem:[%s11870_s1 + $0x44] ss:$16 sps:$4 sm:$0xff] (!%p318_p9)   ;;  %v8037_v11 = vld [vmem:[%s11870_s1 + $0x40] ss:$16 sps:$4 sm:$0xff] (!%p318_p9)   ;;  %v4202_v15 = vsel (!%p318_p9), %vm4200_vm0, 4294967295, %v9132_v14  ;;  %vm4187_vm2 = vcmask (!%p318_p9), 629760  }
  0x15   : > { %v8035_v10 = vld [vmem:[%s11870_s1 + $0x1244] ss:$16 sps:$4 sm:$0xff] (!%p318_p9)   ;;  %v8038_v12 = vld [vmem:[%s11870_s1 + $0x1240] ss:$16 sps:$4 sm:$0xff] (!%p318_p9)   ;;  %v9289_v19 = vsel (!%p318_p9), %vm4201_vm1, %v4202_v15, 0  ;;  %s7548_s12 = sshll.u32 (!%p318_p9), %s9212_s17, 10 }
  0x16   : > { %4219 = vmatpush1.bf16.msra.mxu0 (!%p318_p9), %v8031_v7  ;;  %v8039_v13 = vld [vmem:[%s11870_s1 + $0x64] ss:$16 sps:$4 sm:$0xff] (!%p318_p9)   ;;  %v8043_v17 = vld [vmem:[%s11870_s1 + $0x60] ss:$16 sps:$4 sm:$0xff] (!%p318_p9)   ;;  %v8055_v29 = vld [vmem:[%s11870_s1 + $0xc] ss:$16 sps:$4 sm:$0xff] (!%p318_p9)   ;;  %s11819_s28 = scalar_lea.hbm (!%p318_p9), %s11879_s10, %s7548_s12 }
  0x17   : > { %4876 = vmatpush1.bf16.msra.mxu1 (!%p318_p9), %v8032_v8  ;;  %4220 = vmatprep.subr.bf16.mxu0 (!%p318_p9), %v8033_v9  ;;  %v8041_v16 = vld [vmem:[%s11870_s1 + $0x1264] ss:$16 sps:$4 sm:$0xff] (!%p318_p9)   ;;  %v8044_v18 = vld [vmem:[%s11870_s1 + $0x1260] ss:$16 sps:$4 sm:$0xff] (!%p318_p9)   ;;  %v8053_v30 = vld [vmem:[%s11870_s1 + $0x8] ss:$16 sps:$4 sm:$0xff] (!%p318_p9)  }
  0x18   : > { %s11891_s21 = smov (!%p357_p10, %s6846_s21), 31  ;;  %4877 = vmatprep.subr.bf16.mxu1 %v8035_v10  ;;  %v8047_v20 = vld [vmem:[%s11870_s1 + $0x1284] ss:$16 sps:$4 sm:$0x7f]   ;;  %v8049_v24 = vld [vmem:[%s11870_s1 + $0x80] ss:$16 sps:$4 sm:$0xff]  }
  0x19   : > { %s7977_s18 = smul.u32 152, %s11891_s21  ;;  %v8045_v21 = vld [vmem:[%s11870_s1 + $0x84] ss:$16 sps:$4 sm:$0xff]   ;;  %v8050_v22 = vld [vmem:[%s11870_s1 + $0x1280] ss:$16 sps:$4 sm:$0x7f]   ;;  %v4208_v23 = vand.u32 %v8047_v20, %v9289_v19 }
  0x1a   : > { %4221 = vmatpush1.bf16.msra.mxu0 %v8037_v11  ;;  %v8051_v25 = vld [vmem:[%s11870_s1 + $0xa4] ss:$16 sps:$4 sm:$0xff]   ;;  %v4205_v26 = vand.u32 %v8050_v22, %v9289_v19  ;;  %v8056_v32 = vld [vmem:[%s11870_s1 + $0xa0] ss:$16 sps:$4 sm:$0xff]   ;;  %v8061_v34 = vld [vmem:[%s11870_s1 + $0x2c] ss:$16 sps:$4 sm:$0xff]  }
  0x1b   : > { %4878 = vmatpush1.bf16.msra.mxu1 %v8038_v12  ;;  %4222 = vmatprep.subr.bf16.mxu0 %v8039_v13  ;;  %s9303_s26 = scalar_lea.vmem %s11884_s0, %s7977_s18  ;;  %v8057_v33 = vld [vmem:[%s11870_s1 + $0xc4] ss:$16 sps:$4 sm:$0xff]   ;;  %v8059_v35 = vld [vmem:[%s11870_s1 + $0x28] ss:$16 sps:$4 sm:$0xff]   ;;  %v8062_v36 = vld [vmem:[%s11870_s1 + $0xc0] ss:$16 sps:$4 sm:$0xff]  }
  0x1c   : > { %4879 = vmatprep.subr.bf16.mxu1 %v8041_v16  ;;  %v383_v27 = vld [vmem:[%s9303_s26 + $0x90] sm:$0xff]  ;;  %v402_v28 = vld [vmem:[%s9303_s26 + $0x128] sm:$0xff]  ;;  %v421_v57 = vld [vmem:[%s9303_s26 + $0x1c0] sm:$0xff]  ;;  %s353_s18 = sand.u32 1, %s9121_s14   ;;  %s9133_s29 = smov [#allocation2]  }
  0x1d   : > { %v9321_v31 = vpack.c.bf16 %v402_v28, %v383_v27  ;;  %v8063_v37 = vld [vmem:[%s11870_s1 + $0xe4] ss:$16 sps:$4 sm:$0xff]   ;;  %v8067_v38 = vld [vmem:[%s11870_s1 + $0x4c] ss:$16 sps:$4 sm:$0xff]   ;;  %v8065_v39 = vld [vmem:[%s11870_s1 + $0x48] ss:$16 sps:$4 sm:$0xff]  }
  0x1e   : > { %4223 = vmatpush1.bf16.msra.mxu0 %v8043_v17  ;;  %v8068_v40 = vld [vmem:[%s11870_s1 + $0xe0] ss:$16 sps:$4 sm:$0xff]   ;;  %v8069_v41 = vld [vmem:[%s11870_s1 + $0x104] ss:$16 sps:$4 sm:$0xff]   ;;  %v8073_v42 = vld [vmem:[%s11870_s1 + $0x6c] ss:$16 sps:$4 sm:$0xff]  }
  0x1f   : > { %4880 = vmatpush1.bf16.msra.mxu1 %v8044_v18  ;;  %4224 = vmatprep.subr.bf16.mxu0 %v8045_v21  ;;  %v8071_v43 = vld [vmem:[%s11870_s1 + $0x68] ss:$16 sps:$4 sm:$0xff]   ;;  %v8074_v44 = vld [vmem:[%s11870_s1 + $0x100] ss:$16 sps:$4 sm:$0xff]   ;;  %v8075_v45 = vld [vmem:[%s11870_s1 + $0x124] ss:$16 sps:$4 sm:$0xff]  }
  0x20   : > { %4881 = vmatprep.subr.bf16.mxu1 %v4208_v23  ;;  %v8079_v46 = vld [vmem:[%s11870_s1 + $0x8c] ss:$16 sps:$4 sm:$0xff]   ;;  %v8077_v47 = vld [vmem:[%s11870_s1 + $0x88] ss:$16 sps:$4 sm:$0xff]   ;;  %v8080_v48 = vld [vmem:[%s11870_s1 + $0x120] ss:$16 sps:$4 sm:$0xff]  }
  0x21   : > { %v8081_v49 = vld [vmem:[%s11870_s1 + $0x144] ss:$16 sps:$4 sm:$0xff]   ;;  %v8085_v50 = vld [vmem:[%s11870_s1 + $0xac] ss:$16 sps:$4 sm:$0xff]   ;;  %v8083_v51 = vld [vmem:[%s11870_s1 + $0xa8] ss:$16 sps:$4 sm:$0xff]  }
  0x22   : > { %4225 = vmatpush1.bf16.msra.mxu0 %v8049_v24  ;;  %v8086_v52 = vld [vmem:[%s11870_s1 + $0x140] ss:$16 sps:$4 sm:$0xff]   ;;  %v8087_v53 = vld [vmem:[%s11870_s1 + $0x164] ss:$16 sps:$4 sm:$0xff]   ;;  %v8091_v54 = vld [vmem:[%s11870_s1 + $0xcc] ss:$16 sps:$4 sm:$0xff]  }
  0x23   : > { %4882 = vmatpush1.bf16.msra.mxu1 %v4205_v26  ;;  %4226 = vmatprep.subr.bf16.mxu0 %v8051_v25  ;;  %v8089_v55 = vld [vmem:[%s11870_s1 + $0xc8] ss:$16 sps:$4 sm:$0xff]   ;;  %v8092_v56 = vld [vmem:[%s11870_s1 + $0x160] ss:$16 sps:$4 sm:$0xff]   ;;  %v8093_v62 = vld [vmem:[%s11870_s1 + $0x184] ss:$16 sps:$4 sm:$0xff]  }
  0x24   : > { %4946 = vmatprep.subr.bf16.mxu1 %v8055_v29  ;;  %v440_v58 = vld [vmem:[%s9303_s26 + $0x258] sm:$0xff]  ;;  %v366_v60 = vld [vmem:[%s9303_s26 + $0x8] sm:$0xff]  ;;  %v385_v61 = vld [vmem:[%s9303_s26 + $0xa0] sm:$0xff]  ;;  %s6845_s21 = sshll.u32 %s353_s18, 6  ;;  %s11828_s17 = scalar_lea.sflag [#allocation3], %s353_s18 }
  0x25   : > { %v9403_v59 = vpack.c.bf16 %v440_v58, %v421_v57  ;;  %v8097_v63 = vld [vmem:[%s11870_s1 + $0xec] ss:$16 sps:$4 sm:$0xff]   ;;  %v518_v0 = vpack.c.bf16 %v385_v61, %v366_v60  ;;  %v8095_v1 = vld [vmem:[%s11870_s1 + $0xe8] ss:$16 sps:$4 sm:$0xff]   ;;  %v8098_v2 = vld [vmem:[%s11870_s1 + $0x180] ss:$16 sps:$4 sm:$0xff]  }
  0x26   : > { %7444 = vmatmul.mubr.msk.bf16.vlgmr.msra.gmra.mrb[0].mxu1 %vm4187_vm2, %v9321_v31  ;;  %4227 = vmatpush1.bf16.msra.mxu0 %v8056_v32  ;;  %v8099_v3 = vld [vmem:[%s11870_s1 + $0x1a4] ss:$16 sps:$4 sm:$0xff]   ;;  %v8103_v5 = vld [vmem:[%s11870_s1 + $0x10c] ss:$16 sps:$4 sm:$0xff]   ;;  %v8101_v8 = vld [vmem:[%s11870_s1 + $0x108] ss:$16 sps:$4 sm:$0xff]  }
  0x27   : > { %4947 = vmatpush1.bf16.msra.mxu1 %v8053_v30  ;;  %4228 = vmatprep.subr.bf16.mxu0 %v8057_v33  ;;  %v459_v6 = vld [vmem:[%s9303_s26 + $0x2f0] sm:$0xff]  ;;  %v478_v7 = vld [vmem:[%s9303_s26 + $0x388] sm:$0xff]  ;;  %v497_v17 = vld [vmem:[%s9303_s26 + $0x420] sm:$0xff]  ;;  %s11803_s11 = scalar_lea.vmem [#allocation2], %s6845_s21  ;;  %s9071_s30 = sshll.u32 %s9133_s29, 4  ;;  %s9072_s30 = int_to_ptr.vmem [resolvable:$false] %s9071_s30 }
  0x28   : > { %4948 = vmatprep.subr.bf16.mxu1 %v8061_v34  ;;  %4915 = vmatprep.mubr.bf16.mxu1 %v9131_v4  ;;  %v8104_v9 = vld [vmem:[%s11870_s1 + $0x1a0] ss:$16 sps:$4 sm:$0xff]   ;;  %v9436_v10 = vpack.c.bf16 %v478_v7, %v459_v6  ;;  %v8105_v11 = vld [vmem:[%s11870_s1 + $0x1c4] ss:$16 sps:$4 sm:$0xff]   ;;  %v8109_v12 = vld [vmem:[%s11870_s1 + $0x12c] ss:$16 sps:$4 sm:$0xff]  }
  0x29   : > { %4248 = vmatprep.mubr.bf16.mxu0 %v518_v0  ;;  %v8107_v13 = vld [vmem:[%s11870_s1 + $0x128] ss:$16 sps:$4 sm:$0xff]   ;;  %v8110_v14 = vld [vmem:[%s11870_s1 + $0x1c0] ss:$16 sps:$4 sm:$0xff]   ;;  %v8111_v15 = vld [vmem:[%s11870_s1 + $0x1e4] ss:$16 sps:$4 sm:$0xff]  }
  0x2a   : > { %4229 = vmatpush1.bf16.msra.mxu0 %v8062_v36  ;;  %v8115_v16 = vld [vmem:[%s11870_s1 + $0x14c] ss:$16 sps:$4 sm:$0xff]   ;;  %v8113_v20 = vld [vmem:[%s11870_s1 + $0x148] ss:$16 sps:$4 sm:$0xff]   ;;  %v8116_v21 = vld [vmem:[%s11870_s1 + $0x1e0] ss:$16 sps:$4 sm:$0xff]  }
  0x2b   : > { %4949 = vmatpush1.bf16.msra.mxu1 %v8059_v35  ;;  %4230 = vmatprep.subr.bf16.mxu0 %v8063_v37  ;;  %v516_v18 = vld [vmem:[%s9303_s26 + $0x4b8] sm:$0xff]  ;;  %v8119_v23 = vld [vmem:[%s11870_s1 + $0x204] ss:$16 sps:$4 sm:$0xff]   ;;  %v8117_v27 = vld [vmem:[%s11870_s1 + $0x200] ss:$16 sps:$4 sm:$0xff]   ;;  %s6779_s20 = sshll.u32 %s11803_s11, 4  ;;  %s11821_s20 = int_to_ptr.vmem [resolvable:$true] %s6779_s20 }
  0x2c   : > { %4950 = vmatprep.subr.bf16.mxu1 %v8067_v38  ;;  %v9467_v22 = vpack.c.bf16 %v516_v18, %v497_v17  ;;  %v365_v24 = vld [vmem:[%s9303_s26] sm:$0xff]  ;;  %v384_v25 = vld [vmem:[%s9303_s26 + $0x98] sm:$0xff]  ;;  %v387_v18 = vld [vmem:[%s9303_s26 + $0xb0] sm:$0xff]  ;;  %s9073_s0 = scalar_lea.vmem %s9072_s30, 2048  ;;  %p9074_p0 = scmp.lt.s32.totalorder %s11821_s20, %s9072_s30 }
  0x2d   : > { %v8122_v26 = vld [vmem:[%s11870_s1 + $0x16c] ss:$16 sps:$4 sm:$0xff]   ;;  %v8120_v28 = vld [vmem:[%s11870_s1 + $0x168] ss:$16 sps:$4 sm:$0xff]   ;;  %v9485_v29 = vpack.c.bf16 %v384_v25, %v365_v24  ;;  %v8125_v30 = vld [vmem:[%s11870_s1 + $0x224] ss:$16 sps:$4 sm:$0xff]  }
  0x2e   : > { %4231 = vmatpush1.bf16.msra.mxu0 %v8068_v40  ;;  %7445 = vmatmul.mubr.msk.bf16.gmra.mrb[4].mxu1 %vm4187_vm2, %v9403_v59  ;;  %v8128_v32 = vld [vmem:[%s11870_s1 + $0x18c] ss:$16 sps:$4 sm:$0xff]   ;;  %v8123_v33 = vld [vmem:[%s11870_s1 + $0x220] ss:$16 sps:$4 sm:$0xff]   ;;  %v8126_v34 = vld [vmem:[%s11870_s1 + $0x188] ss:$16 sps:$4 sm:$0xff]  }
  0x2f   : > { %4951 = vmatpush1.bf16.msra.mxu1 %v8065_v39  ;;  %4232 = vmatprep.subr.bf16.mxu0 %v8069_v41  ;;  %v8131_v35 = vld [vmem:[%s11870_s1 + $0x244] ss:$16 sps:$4 sm:$0xff]   ;;  %v8134_v36 = vld [vmem:[%s11870_s1 + $0x1ac] ss:$16 sps:$4 sm:$0xff]   ;;  %v8129_v37 = vld [vmem:[%s11870_s1 + $0x240] ss:$16 sps:$4 sm:$0xff]  }
  0x30   : > { %4952 = vmatprep.subr.bf16.mxu1 %v8073_v42  ;;  %4925 = vmatprep.mubr.bf16.mxu1 %v9131_v4  ;;  %v8132_v38 = vld [vmem:[%s11870_s1 + $0x1a8] ss:$16 sps:$4 sm:$0xff]   ;;  %v8137_v39 = vld [vmem:[%s11870_s1 + $0x264] ss:$16 sps:$4 sm:$0xff]   ;;  %v8140_v40 = vld [vmem:[%s11870_s1 + $0x1cc] ss:$16 sps:$4 sm:$0xff]  }
  0x31   : > { %v404_v41 = vld [vmem:[%s9303_s26 + $0x138] sm:$0xff]  ;;  %v423_v42 = vld [vmem:[%s9303_s26 + $0x1d0] sm:$0xff]  ;;  %v441_v61 = vld [vmem:[%s9303_s26 + $0x260] sm:$0xff] }
  0x32   : > { %4233 = vmatpush1.bf16.msra.mxu0 %v8074_v44  ;;  %v537_v44 = vpack.c.bf16 %v423_v42, %v404_v41  ;;  %v8147_v58 = vld [vmem:[%s11870_s1 + $0x2a0] ss:$16 sps:$4 sm:$0xff]   ;;  %v8150_v60 = vld [vmem:[%s11870_s1 + $0x208] ss:$16 sps:$4 sm:$0xff]   ;;  %v8173_v25 = vld [vmem:[%s11870_s1 + $0x324] ss:$16 sps:$4 sm:$0xff]  }
  0x33   : > { %4953 = vmatpush1.bf16.msra.mxu1 %v8071_v43  ;;  %4234 = vmatprep.subr.bf16.mxu0 %v8075_v45  ;;  %v8135_v43 = vld [vmem:[%s11870_s1 + $0x260] ss:$16 sps:$4 sm:$0xff]   ;;  %v8138_v45 = vld [vmem:[%s11870_s1 + $0x1c8] ss:$16 sps:$4 sm:$0xff]   ;;  %v8197_v42 = vld [vmem:[%s11870_s1 + $0x3a4] ss:$16 sps:$4 sm:$0xff]  }
  0x34   : > { %4954 = vmatprep.subr.bf16.mxu1 %v8079_v46  ;;  %v8143_v46 = vld [vmem:[%s11870_s1 + $0x284] ss:$16 sps:$4 sm:$0xff]   ;;  %v8156_v6 = vld [vmem:[%s11870_s1 + $0x228] ss:$16 sps:$4 sm:$0xff]  }
  0x35   : > { %v368_v17 = vld [vmem:[%s9303_s26 + $0x18] sm:$0xff] }
  0x36   : > { %4235 = vmatpush1.bf16.msra.mxu0 %v8080_v48  ;;  %7446 = vmatmul.mubr.msk.bf16.gmra.mrb[8].mxu1 %vm4187_vm2, %v9436_v10  ;;  %v403_v48 = vld [vmem:[%s9303_s26 + $0x130] sm:$0xff]  ;;  %v8168_v24 = vld [vmem:[%s11870_s1 + $0x268] ss:$16 sps:$4 sm:$0xff]  }
  0x37   : > { %4955 = vmatpush1.bf16.msra.mxu1 %v8077_v47  ;;  %4236 = vmatprep.subr.bf16.mxu0 %v8081_v49  ;;  %v8146_v47 = vld [vmem:[%s11870_s1 + $0x1ec] ss:$16 sps:$4 sm:$0xff]   ;;  %v8192_v41 = vld [vmem:[%s11870_s1 + $0x2e8] ss:$16 sps:$4 sm:$0xff]  }
  0x38   : > { %4956 = vmatprep.subr.bf16.mxu1 %v8085_v50  ;;  %4935 = vmatprep.mubr.bf16.mxu1 %v9131_v4  ;;  %v422_v49 = vld [vmem:[%s9303_s26 + $0x1c8] sm:$0xff] }
  0x39   : > { %v536_v50 = vpack.c.bf16 %v422_v49, %v403_v48  ;;  %v8201_v48 = vld [vmem:[%s11870_s1 + $0x3c0] ss:$16 sps:$4 sm:$0xff]   ;;  %v8204_v49 = vld [vmem:[%s11870_s1 + $0x328] ss:$16 sps:$4 sm:$0xff]  }
  0x3a   : > { %4237 = vmatpush1.bf16.msra.mxu0 %v8086_v52  ;;  %v8144_v52 = vld [vmem:[%s11870_s1 + $0x1e8] ss:$16 sps:$4 sm:$0xff]  }
  0x3b   : > { %4957 = vmatpush1.bf16.msra.mxu1 %v8083_v51  ;;  %4238 = vmatprep.subr.bf16.mxu0 %v8087_v53  ;;  %v8141_v51 = vld [vmem:[%s11870_s1 + $0x280] ss:$16 sps:$4 sm:$0xff]   ;;  %v442_v53 = vld [vmem:[%s9303_s26 + $0x268] sm:$0xff] }
  0x3c   : > { %4958 = vmatprep.subr.bf16.mxu1 %v8091_v54  ;;  %v461_v54 = vld [vmem:[%s9303_s26 + $0x300] sm:$0xff] }
  0x3d   : > { %v556_v57 = vpack.c.bf16 %v461_v54, %v442_v53  ;;  %v8210_v53 = vld [vmem:[%s11870_s1 + $0x348] ss:$16 sps:$4 sm:$0xff]   ;;  %v8215_v54 = vld [vmem:[%s11870_s1 + $0x404] ss:$16 sps:$4 sm:$0xff]  }
  0x3e   : > { %4239 = vmatpush1.bf16.msra.mxu0 %v8092_v56  ;;  %7447 = vmatmul.mubr.msk.bf16.gmra.mrb[12].mxu1 %vm4187_vm2, %v9467_v22  ;;  %v8152_v56 = vld [vmem:[%s11870_s1 + $0x20c] ss:$16 sps:$4 sm:$0xff]  }
  0x3f   : > { %4959 = vmatpush1.bf16.msra.mxu1 %v8089_v55  ;;  %4240 = vmatprep.subr.bf16.mxu0 %v8093_v62  ;;  %v8149_v55 = vld [vmem:[%s11870_s1 + $0x2a4] ss:$16 sps:$4 sm:$0xff]   ;;  %v460_v62 = vld [vmem:[%s9303_s26 + $0x2f8] sm:$0xff] }
  0x40   : > { %4960 = vmatprep.subr.bf16.mxu1 %v8097_v63  ;;  %4978 = vmatprep.mubr.bf16.mxu1 %v518_v0  ;;  %v8155_v63 = vld [vmem:[%s11870_s1 + $0x2c4] ss:$16 sps:$4 sm:$0xff]   ;;  %v8158_v0 = vld [vmem:[%s11870_s1 + $0x22c] ss:$16 sps:$4 sm:$0xff]  }
  0x42   : > { %4241 = vmatpush1.bf16.msra.mxu0 %v8098_v2  ;;  %v480_v2 = vld [vmem:[%s9303_s26 + $0x398] sm:$0xff] }
  0x43   : > { %4961 = vmatpush1.bf16.msra.mxu1 %v8095_v1  ;;  %4242 = vmatprep.subr.bf16.mxu0 %v8099_v3  ;;  %v555_v1 = vpack.c.bf16 %v460_v62, %v441_v61  ;;  %v499_v3 = vld [vmem:[%s9303_s26 + $0x430] sm:$0xff]  ;;  %v425_v61 = vld [vmem:[%s9303_s26 + $0x1e0] sm:$0xff] }
  0x44   : > { %4962 = vmatprep.subr.bf16.mxu1 %v8103_v5  ;;  %v8153_v5 = vld [vmem:[%s11870_s1 + $0x2c0] ss:$16 sps:$4 sm:$0xff]   ;;  %v575_v7 = vpack.c.bf16 %v499_v3, %v480_v2 }
  0x45   : > { %v8213_v62 = vld [vmem:[%s11870_s1 + $0x400] ss:$16 sps:$4 sm:$0xff]  }
  0x46   : > { %4243 = vmatpush1.bf16.msra.mxu0 %v8104_v9  ;;  %v8164_v9 = vld [vmem:[%s11870_s1 + $0x24c] ss:$16 sps:$4 sm:$0xff]   ;;  %v8219_v2 = vld [vmem:[%s11870_s1 + $0x420] ss:$16 sps:$4 sm:$0xff]  }
  0x47   : > { %4963 = vmatpush1.bf16.msra.mxu1 %v8101_v8  ;;  %4244 = vmatprep.subr.bf16.mxu0 %v8105_v11  ;;  %v8161_v8 = vld [vmem:[%s11870_s1 + $0x2e4] ss:$16 sps:$4 sm:$0xff]   ;;  %v8159_v11 = vld [vmem:[%s11870_s1 + $0x2e0] ss:$16 sps:$4 sm:$0xff]  }
  0x48   : > { %4964 = vmatprep.subr.bf16.mxu1 %v8109_v12  ;;  %v8162_v12 = vld [vmem:[%s11870_s1 + $0x248] ss:$16 sps:$4 sm:$0xff]  }
  0x4a   : > { %4245 = vmatpush1.bf16.msra.mxu0 %v8110_v14  ;;  %v498_v14 = vld [vmem:[%s9303_s26 + $0x428] sm:$0xff] }
  0x4b   : > { %4965 = vmatpush1.bf16.msra.mxu1 %v8107_v13  ;;  %4246 = vmatprep.subr.bf16.mxu0 %v8111_v15  ;;  %v479_v13 = vld [vmem:[%s9303_s26 + $0x390] sm:$0xff] }
  0x4c   : > { %4966 = vmatprep.subr.bf16.mxu1 %v8115_v16  ;;  %v8167_v15 = vld [vmem:[%s11870_s1 + $0x304] ss:$16 sps:$4 sm:$0xff]   ;;  %v8170_v16 = vld [vmem:[%s11870_s1 + $0x26c] ss:$16 sps:$4 sm:$0xff]  }
  0x4e   : > { %4247 = vmatpush1.bf16.msra.mxu0 %v8116_v21  ;;  %v520_v21 = vpack.c.bf16 %v387_v18, %v368_v17  ;;  %v8236_v17 = vld [vmem:[%s11870_s1 + $0x3cc] ss:$16 sps:$4 sm:$0xff]   ;;  %v8231_v18 = vld [vmem:[%s11870_s1 + $0x460] ss:$16 sps:$4 sm:$0xff]  }
  0x4f   : > { %4967 = vmatpush1.bf16.msra.mxu1 %v8113_v20  ;;  %4289 = vmatprep.subr.bf16.mxu0 %v8119_v23  ;;  %v574_v20 = vpack.c.bf16 %v498_v14, %v479_v13  ;;  %v8165_v23 = vld [vmem:[%s11870_s1 + $0x300] ss:$16 sps:$4 sm:$0xff]  }
  0x50   : > { %4968 = vmatprep.subr.bf16.mxu1 %v8122_v26  ;;  %v8176_v26 = vld [vmem:[%s11870_s1 + $0x28c] ss:$16 sps:$4 sm:$0xff]   ;;  %v463_v13 = vld [vmem:[%s9303_s26 + $0x310] sm:$0xff] }
  0x51   : > { %4249 = vmatmul.mubr.bf16.vlgmr.msra.gmra.mrb[0].mxu0 %v9485_v29  ;;  %v8225_v14 = vld [vmem:[%s11870_s1 + $0x440] ss:$16 sps:$4 sm:$0xff]  }
  0x52   : > { %4290 = vmatpush1.bf16.msra.mxu0 %v8117_v27  ;;  %4258 = vmatprep.mubr.bf16.mxu0 %v537_v44  ;;  %v8171_v27 = vld [vmem:[%s11870_s1 + $0x320] ss:$16 sps:$4 sm:$0xff]  }
  0x53   : > { %4969 = vmatpush1.bf16.msra.mxu1 %v8120_v28  ;;  %4291 = vmatprep.subr.bf16.mxu0 %v8125_v30  ;;  %v8174_v28 = vld [vmem:[%s11870_s1 + $0x288] ss:$16 sps:$4 sm:$0xff]   ;;  %v8182_v30 = vld [vmem:[%s11870_s1 + $0x2ac] ss:$16 sps:$4 sm:$0xff]  }
  0x54   : > { %4970 = vmatprep.subr.bf16.mxu1 %v8128_v32  ;;  %v8177_v32 = vld [vmem:[%s11870_s1 + $0x340] ss:$16 sps:$4 sm:$0xff]  }
  0x56   : > { %4292 = vmatpush1.bf16.msra.mxu0 %v8123_v33  ;;  %v8180_v33 = vld [vmem:[%s11870_s1 + $0x2a8] ss:$16 sps:$4 sm:$0xff]  }
  0x57   : > { %4971 = vmatpush1.bf16.msra.mxu1 %v8126_v34  ;;  %4293 = vmatprep.subr.bf16.mxu0 %v8131_v35  ;;  %v8185_v34 = vld [vmem:[%s11870_s1 + $0x364] ss:$16 sps:$4 sm:$0xff]   ;;  %v8188_v35 = vld [vmem:[%s11870_s1 + $0x2cc] ss:$16 sps:$4 sm:$0xff]  }
  0x58   : > { %4972 = vmatprep.subr.bf16.mxu1 %v8134_v36  ;;  %v8183_v36 = vld [vmem:[%s11870_s1 + $0x360] ss:$16 sps:$4 sm:$0xff]  }
  0x59   : > { %4259 = vmatmul.mubr.bf16.gmra.mrb[4].mxu0 %v536_v50 }
  0x5a   : > { %4294 = vmatpush1.bf16.msra.mxu0 %v8129_v37  ;;  %4268 = vmatprep.mubr.bf16.mxu0 %v556_v57  ;;  %v8186_v37 = vld [vmem:[%s11870_s1 + $0x2c8] ss:$16 sps:$4 sm:$0xff]  }
  0x5b   : > { %4973 = vmatpush1.bf16.msra.mxu1 %v8132_v38  ;;  %4295 = vmatprep.subr.bf16.mxu0 %v8137_v39  ;;  %v8191_v38 = vld [vmem:[%s11870_s1 + $0x384] ss:$16 sps:$4 sm:$0xff]   ;;  %v8194_v39 = vld [vmem:[%s11870_s1 + $0x2ec] ss:$16 sps:$4 sm:$0xff]  }
  0x5c   : > { %4974 = vmatprep.subr.bf16.mxu1 %v8140_v40  ;;  %v8189_v40 = vld [vmem:[%s11870_s1 + $0x380] ss:$16 sps:$4 sm:$0xff]  }
  0x5e   : > { %4296 = vmatpush1.bf16.msra.mxu0 %v8135_v43  ;;  %v8200_v43 = vld [vmem:[%s11870_s1 + $0x30c] ss:$16 sps:$4 sm:$0xff]  }
  0x5f   : > { %4975 = vmatpush1.bf16.msra.mxu1 %v8138_v45  ;;  %4297 = vmatprep.subr.bf16.mxu0 %v8143_v46  ;;  %v8198_v45 = vld [vmem:[%s11870_s1 + $0x308] ss:$16 sps:$4 sm:$0xff]   ;;  %v8203_v46 = vld [vmem:[%s11870_s1 + $0x3c4] ss:$16 sps:$4 sm:$0xff]  }
  0x60   : > { %4976 = vmatprep.subr.bf16.mxu1 %v8146_v47  ;;  %v8206_v47 = vld [vmem:[%s11870_s1 + $0x32c] ss:$16 sps:$4 sm:$0xff]  }
  0x61   : > { %4269 = vmatmul.mubr.bf16.gmra.mrb[8].mxu0 %v555_v1 }
  0x62   : > { %4298 = vmatpush1.bf16.msra.mxu0 %v8141_v51  ;;  %4278 = vmatprep.mubr.bf16.mxu0 %v575_v7  ;;  %v8212_v51 = vld [vmem:[%s11870_s1 + $0x34c] ss:$16 sps:$4 sm:$0xff]  }
  0x63   : > { %4977 = vmatpush1.bf16.msra.mxu1 %v8144_v52  ;;  %4299 = vmatprep.subr.bf16.mxu0 %v8149_v55  ;;  %v8207_v52 = vld [vmem:[%s11870_s1 + $0x3e0] ss:$16 sps:$4 sm:$0xff]  }
  0x64   : > { %5019 = vmatprep.subr.bf16.mxu1 %v8152_v56  ;;  %v367_v55 = vld [vmem:[%s9303_s26 + $0x10] sm:$0xff]  ;;  %v386_v56 = vld [vmem:[%s9303_s26 + $0xa8] sm:$0xff] }
  0x66   : > { %4979 = vmatmul.mubr.bf16.vlgmr.msra.gmra.mrb[16].mxu1 %v9485_v29  ;;  %4300 = vmatpush1.bf16.msra.mxu0 %v8147_v58  ;;  %v8179_v29 = vld [vmem:[%s11870_s1 + $0x344] ss:$16 sps:$4 sm:$0xff]   ;;  %v9691_v58 = vpack.c.bf16 %v386_v56, %v367_v55  ;;  %v8264_v55 = vld [vmem:[%s11870_s1 + $0x468] ss:$16 sps:$4 sm:$0xff]  }
  0x67   : > { %5020 = vmatpush1.bf16.msra.mxu1 %v8150_v60  ;;  %4301 = vmatprep.subr.bf16.mxu0 %v8155_v63  ;;  %v406_v60 = vld [vmem:[%s9303_s26 + $0x148] sm:$0xff]  ;;  %v8269_v56 = vld [vmem:[%s11870_s1 + $0x524] ss:$16 sps:$4 sm:$0xff]  }
  0x68   : > { %5021 = vmatprep.subr.bf16.mxu1 %v8158_v0  ;;  %4988 = vmatprep.mubr.bf16.mxu1 %v537_v44  ;;  %v8195_v44 = vld [vmem:[%s11870_s1 + $0x3a0] ss:$16 sps:$4 sm:$0xff]   ;;  %v8216_v63 = vld [vmem:[%s11870_s1 + $0x368] ss:$16 sps:$4 sm:$0xff]   ;;  %v8221_v0 = vld [vmem:[%s11870_s1 + $0x424] ss:$16 sps:$4 sm:$0xff]   ;;  %v9710_v3 = vpack.c.bf16 %v425_v61, %v406_v60 }
  0x69   : > { %4279 = vmatmul.mubr.bf16.gmra.mrb[12].mxu0 %v574_v20  ;;  %v8270_v60 = vld [vmem:[%s11870_s1 + $0x488] ss:$16 sps:$4 sm:$0xff]   ;;  %v8275_v61 = vld [vmem:[%s11870_s1 + $0x544] ss:$16 sps:$4 sm:$0xff]  }
  0x6a   : > { %4302 = vmatpush1.bf16.msra.mxu0 %v8153_v5  ;;  %4321 = vmatprep.mubr.bf16.mxu0 %v520_v21  ;;  %v8222_v5 = vld [vmem:[%s11870_s1 + $0x388] ss:$16 sps:$4 sm:$0xff]  }
  0x6b   : > { %5022 = vmatpush1.bf16.msra.mxu1 %v8156_v6  ;;  %4303 = vmatprep.subr.bf16.mxu0 %v8161_v8  ;;  %v8227_v6 = vld [vmem:[%s11870_s1 + $0x444] ss:$16 sps:$4 sm:$0xff]   ;;  %v424_v8 = vld [vmem:[%s9303_s26 + $0x1d8] sm:$0xff] }
  0x6c   : > { %5023 = vmatprep.subr.bf16.mxu1 %v8164_v9  ;;  %v8230_v9 = vld [vmem:[%s11870_s1 + $0x3ac] ss:$16 sps:$4 sm:$0xff]  }
  0x6e   : > { %4989 = vmatmul.mubr.bf16.gmra.mrb[20].mxu1 %v536_v50  ;;  %4304 = vmatpush1.bf16.msra.mxu0 %v8159_v11  ;;  %v8209_v50 = vld [vmem:[%s11870_s1 + $0x3e4] ss:$16 sps:$4 sm:$0xff]   ;;  %v444_v11 = vld [vmem:[%s9303_s26 + $0x278] sm:$0xff] }
  0x6f   : > { %5024 = vmatpush1.bf16.msra.mxu1 %v8162_v12  ;;  %4305 = vmatprep.subr.bf16.mxu0 %v8167_v15  ;;  %v8228_v15 = vld [vmem:[%s11870_s1 + $0x3a8] ss:$16 sps:$4 sm:$0xff]  }
  0x70   : > { %5025 = vmatprep.subr.bf16.mxu1 %v8170_v16  ;;  %4998 = vmatprep.mubr.bf16.mxu1 %v556_v57  ;;  %v8218_v57 = vld [vmem:[%s11870_s1 + $0x36c] ss:$16 sps:$4 sm:$0xff]   ;;  %v8233_v16 = vld [vmem:[%s11870_s1 + $0x464] ss:$16 sps:$4 sm:$0xff]  }
  0x72   : > { %4306 = vmatpush1.bf16.msra.mxu0 %v8165_v23  ;;  %v443_v23 = vld [vmem:[%s9303_s26 + $0x270] sm:$0xff] }
  0x73   : > { %5026 = vmatpush1.bf16.msra.mxu1 %v8168_v24  ;;  %4307 = vmatprep.subr.bf16.mxu0 %v8173_v25  ;;  %v462_v24 = vld [vmem:[%s9303_s26 + $0x308] sm:$0xff]  ;;  %v8239_v25 = vld [vmem:[%s11870_s1 + $0x484] ss:$16 sps:$4 sm:$0xff]  }
  0x74   : > { %5027 = vmatprep.subr.bf16.mxu1 %v8176_v26  ;;  %v8242_v26 = vld [vmem:[%s11870_s1 + $0x3ec] ss:$16 sps:$4 sm:$0xff]  }
  0x76   : > { %4999 = vmatmul.mubr.bf16.gmra.mrb[24].mxu1 %v555_v1  ;;  %4308 = vmatpush1.bf16.msra.mxu0 %v8171_v27  ;;  %v8224_v1 = vld [vmem:[%s11870_s1 + $0x38c] ss:$16 sps:$4 sm:$0xff]  }
  0x77   : > { %5028 = vmatpush1.bf16.msra.mxu1 %v8174_v28  ;;  %4309 = vmatprep.subr.bf16.mxu0 %v8179_v29  ;;  %v482_v27 = vld [vmem:[%s9303_s26 + $0x3a8] sm:$0xff]  ;;  %v9760_v28 = vpack.c.bf16 %v462_v24, %v443_v23  ;;  %v501_v29 = vld [vmem:[%s9303_s26 + $0x440] sm:$0xff] }
  0x78   : > { %5029 = vmatprep.subr.bf16.mxu1 %v8182_v30  ;;  %5008 = vmatprep.mubr.bf16.mxu1 %v575_v7  ;;  %v405_v7 = vld [vmem:[%s9303_s26 + $0x140] sm:$0xff]  ;;  %v8306_v24 = vld [vmem:[%s11870_s1 + $0x548] ss:$16 sps:$4 sm:$0xff]  }
  0x79   : > { %v9726_v12 = vpack.c.bf16 %v424_v8, %v405_v7  ;;  %v8237_v30 = vld [vmem:[%s11870_s1 + $0x480] ss:$16 sps:$4 sm:$0xff]   ;;  %v8290_v7 = vld [vmem:[%s11870_s1 + $0x4ec] ss:$16 sps:$4 sm:$0xff]  }
  0x7a   : > { %4310 = vmatpush1.bf16.msra.mxu0 %v8177_v32  ;;  %v8240_v32 = vld [vmem:[%s11870_s1 + $0x3e8] ss:$16 sps:$4 sm:$0xff]   ;;  %v8285_v8 = vld [vmem:[%s11870_s1 + $0x580] ss:$16 sps:$4 sm:$0xff]  }
  0x7b   : > { %5030 = vmatpush1.bf16.msra.mxu1 %v8180_v33  ;;  %4311 = vmatprep.subr.bf16.mxu0 %v8185_v34  ;;  %v8245_v33 = vld [vmem:[%s11870_s1 + $0x4a4] ss:$16 sps:$4 sm:$0xff]   ;;  %v8248_v34 = vld [vmem:[%s11870_s1 + $0x40c] ss:$16 sps:$4 sm:$0xff]   ;;  %v8303_v23 = vld [vmem:[%s11870_s1 + $0x5e0] ss:$16 sps:$4 sm:$0xff]  }
  0x7c   : > { %5031 = vmatprep.subr.bf16.mxu1 %v8188_v35  ;;  %v8243_v35 = vld [vmem:[%s11870_s1 + $0x4a0] ss:$16 sps:$4 sm:$0xff]  }
  0x7e   : > { %5009 = vmatmul.mubr.bf16.gmra.mrb[28].mxu1 %v574_v20  ;;  %4312 = vmatpush1.bf16.msra.mxu0 %v8183_v36  ;;  %v9744_v20 = vpack.c.bf16 %v463_v13, %v444_v11  ;;  %v8246_v36 = vld [vmem:[%s11870_s1 + $0x408] ss:$16 sps:$4 sm:$0xff]   ;;  %v8293_v11 = vld [vmem:[%s11870_s1 + $0x5a4] ss:$16 sps:$4 sm:$0xff]   ;;  %v8291_v13 = vld [vmem:[%s11870_s1 + $0x5a0] ss:$16 sps:$4 sm:$0xff]  }
  0x7f   : > { %5032 = vmatpush1.bf16.msra.mxu1 %v8186_v37  ;;  %4313 = vmatprep.subr.bf16.mxu0 %v8191_v38  ;;  %v577_v37 = vpack.c.bf16 %v501_v29, %v482_v27  ;;  %v8251_v38 = vld [vmem:[%s11870_s1 + $0x4c4] ss:$16 sps:$4 sm:$0xff]   ;;  %v408_v29 = vld [vmem:[%s9303_s26 + $0x158] sm:$0xff] }
  0x80   : > { %5033 = vmatprep.subr.bf16.mxu1 %v8194_v39  ;;  %5051 = vmatprep.mubr.bf16.mxu1 %v520_v21  ;;  %v8234_v21 = vld [vmem:[%s11870_s1 + $0x3c8] ss:$16 sps:$4 sm:$0xff]   ;;  %v481_v39 = vld [vmem:[%s9303_s26 + $0x3a0] sm:$0xff] }
  0x81   : > { %v8311_v27 = vld [vmem:[%s11870_s1 + $0x604] ss:$16 sps:$4 sm:$0xff]  }
  0x82   : > { %4314 = vmatpush1.bf16.msra.mxu0 %v8189_v40  ;;  %v500_v40 = vld [vmem:[%s9303_s26 + $0x438] sm:$0xff] }
  0x83   : > { %5034 = vmatpush1.bf16.msra.mxu1 %v8192_v41  ;;  %4315 = vmatprep.subr.bf16.mxu0 %v8197_v42  ;;  %v8254_v41 = vld [vmem:[%s11870_s1 + $0x42c] ss:$16 sps:$4 sm:$0xff]   ;;  %v8249_v42 = vld [vmem:[%s11870_s1 + $0x4c0] ss:$16 sps:$4 sm:$0xff]  }
  0x84   : > { %5035 = vmatprep.subr.bf16.mxu1 %v8200_v43  ;;  %v8252_v43 = vld [vmem:[%s11870_s1 + $0x428] ss:$16 sps:$4 sm:$0xff]  }
  0x86   : > { %4316 = vmatpush1.bf16.msra.mxu0 %v8195_v44  ;;  %v576_v44 = vpack.c.bf16 %v500_v40, %v481_v39  ;;  %v8323_v40 = vld [vmem:[%s11870_s1 + $0x644] ss:$16 sps:$4 sm:$0xff]  }
  0x87   : > { %5036 = vmatpush1.bf16.msra.mxu1 %v8198_v45  ;;  %4317 = vmatprep.subr.bf16.mxu0 %v8203_v46  ;;  %v370_v45 = vld [vmem:[%s9303_s26 + $0x28] sm:$0xff]  ;;  %v389_v46 = vld [vmem:[%s9303_s26 + $0xc0] sm:$0xff] }
  0x88   : > { %5037 = vmatprep.subr.bf16.mxu1 %v8206_v47  ;;  %v8257_v47 = vld [vmem:[%s11870_s1 + $0x4e4] ss:$16 sps:$4 sm:$0xff]  }
  0x8a   : > { %4318 = vmatpush1.bf16.msra.mxu0 %v8201_v48  ;;  %v8260_v48 = vld [vmem:[%s11870_s1 + $0x44c] ss:$16 sps:$4 sm:$0xff]  }
  0x8b   : > { %5038 = vmatpush1.bf16.msra.mxu1 %v8204_v49  ;;  %4319 = vmatprep.subr.bf16.mxu0 %v8209_v50  ;;  %v522_v49 = vpack.c.bf16 %v389_v46, %v370_v45  ;;  %v8255_v50 = vld [vmem:[%s11870_s1 + $0x4e0] ss:$16 sps:$4 sm:$0xff]   ;;  %v8324_v45 = vld [vmem:[%s11870_s1 + $0x5a8] ss:$16 sps:$4 sm:$0xff]  }
  0x8c   : > { %5039 = vmatprep.subr.bf16.mxu1 %v8212_v51  ;;  %v8258_v51 = vld [vmem:[%s11870_s1 + $0x448] ss:$16 sps:$4 sm:$0xff]  }
  0x8e   : > { %4320 = vmatpush1.bf16.msra.mxu0 %v8207_v52  ;;  %v8263_v52 = vld [vmem:[%s11870_s1 + $0x504] ss:$16 sps:$4 sm:$0xff]  }
  0x8f   : > { %5040 = vmatpush1.bf16.msra.mxu1 %v8210_v53  ;;  %4362 = vmatprep.subr.bf16.mxu0 %v8215_v54  ;;  %v8266_v53 = vld [vmem:[%s11870_s1 + $0x46c] ss:$16 sps:$4 sm:$0xff]   ;;  %v8261_v54 = vld [vmem:[%s11870_s1 + $0x500] ss:$16 sps:$4 sm:$0xff]  }
  0x90   : > { %5041 = vmatprep.subr.bf16.mxu1 %v8218_v57  ;;  %v8272_v57 = vld [vmem:[%s11870_s1 + $0x48c] ss:$16 sps:$4 sm:$0xff]  }
  0x91   : > { %4322 = vmatmul.mubr.bf16.vlgmr.msra.gmra.mrb[0].mxu0 %v9691_v58 }
  0x92   : > { %4363 = vmatpush1.bf16.msra.mxu0 %v8213_v62  ;;  %4331 = vmatprep.mubr.bf16.mxu0 %v9710_v3  ;;  %v8278_v62 = vld [vmem:[%s11870_s1 + $0x4ac] ss:$16 sps:$4 sm:$0xff]  }
  0x93   : > { %5042 = vmatpush1.bf16.msra.mxu1 %v8216_v63  ;;  %4364 = vmatprep.subr.bf16.mxu0 %v8221_v0  ;;  %v8273_v63 = vld [vmem:[%s11870_s1 + $0x540] ss:$16 sps:$4 sm:$0xff]   ;;  %v8276_v0 = vld [vmem:[%s11870_s1 + $0x4a8] ss:$16 sps:$4 sm:$0xff]  }
  0x94   : > { %5043 = vmatprep.subr.bf16.mxu1 %v8224_v1  ;;  %v8281_v1 = vld [vmem:[%s11870_s1 + $0x564] ss:$16 sps:$4 sm:$0xff]  }
  0x96   : > { %4365 = vmatpush1.bf16.msra.mxu0 %v8219_v2  ;;  %v8284_v2 = vld [vmem:[%s11870_s1 + $0x4cc] ss:$16 sps:$4 sm:$0xff]  }
  0x97   : > { %5044 = vmatpush1.bf16.msra.mxu1 %v8222_v5  ;;  %4366 = vmatprep.subr.bf16.mxu0 %v8227_v6  ;;  %v8282_v5 = vld [vmem:[%s11870_s1 + $0x4c8] ss:$16 sps:$4 sm:$0xff]   ;;  %v8287_v6 = vld [vmem:[%s11870_s1 + $0x584] ss:$16 sps:$4 sm:$0xff]  }
  0x98   : > { %5045 = vmatprep.subr.bf16.mxu1 %v8230_v9  ;;  %v8288_v9 = vld [vmem:[%s11870_s1 + $0x4e8] ss:$16 sps:$4 sm:$0xff]  }
  0x99   : > { %4332 = vmatmul.mubr.bf16.gmra.mrb[4].mxu0 %v9726_v12 }
  0x9a   : > { %4367 = vmatpush1.bf16.msra.mxu0 %v8225_v14  ;;  %4341 = vmatprep.mubr.bf16.mxu0 %v9744_v20  ;;  %v8294_v14 = vld [vmem:[%s11870_s1 + $0x508] ss:$16 sps:$4 sm:$0xff]  }
  0x9b   : > { %5046 = vmatpush1.bf16.msra.mxu1 %v8228_v15  ;;  %4368 = vmatprep.subr.bf16.mxu0 %v8233_v16  ;;  %v8299_v15 = vld [vmem:[%s11870_s1 + $0x5c4] ss:$16 sps:$4 sm:$0xff]   ;;  %v8302_v16 = vld [vmem:[%s11870_s1 + $0x52c] ss:$16 sps:$4 sm:$0xff]  }
  0x9c   : > { %5047 = vmatprep.subr.bf16.mxu1 %v8236_v17  ;;  %v8297_v17 = vld [vmem:[%s11870_s1 + $0x5c0] ss:$16 sps:$4 sm:$0xff]  }
  0x9e   : > { %4369 = vmatpush1.bf16.msra.mxu0 %v8231_v18  ;;  %v8300_v18 = vld [vmem:[%s11870_s1 + $0x528] ss:$16 sps:$4 sm:$0xff]  }
  0x9f   : > { %5048 = vmatpush1.bf16.msra.mxu1 %v8234_v21  ;;  %4370 = vmatprep.subr.bf16.mxu0 %v8239_v25  ;;  %v8308_v21 = vld [vmem:[%s11870_s1 + $0x54c] ss:$16 sps:$4 sm:$0xff]   ;;  %v369_v25 = vld [vmem:[%s9303_s26 + $0x20] sm:$0xff] }
  0xa0   : > { %5049 = vmatprep.subr.bf16.mxu1 %v8242_v26  ;;  %v388_v26 = vld [vmem:[%s9303_s26 + $0xb8] sm:$0xff] }
  0xa1   : > { %4342 = vmatmul.mubr.bf16.gmra.mrb[8].mxu0 %v9760_v28 }
  0xa2   : > { %4371 = vmatpush1.bf16.msra.mxu0 %v8237_v30  ;;  %4351 = vmatprep.mubr.bf16.mxu0 %v577_v37  ;;  %v9920_v30 = vpack.c.bf16 %v388_v26, %v369_v25  ;;  %v8357_v25 = vld [vmem:[%s11870_s1 + $0x700] ss:$16 sps:$4 sm:$0xff]   ;;  %v8360_v26 = vld [vmem:[%s11870_s1 + $0x668] ss:$16 sps:$4 sm:$0xff]  }
  0xa3   : > { %5050 = vmatpush1.bf16.msra.mxu1 %v8240_v32  ;;  %4372 = vmatprep.subr.bf16.mxu0 %v8245_v33  ;;  %v427_v32 = vld [vmem:[%s9303_s26 + $0x1f0] sm:$0xff] }
  0xa4   : > { %5092 = vmatprep.subr.bf16.mxu1 %v8248_v34  ;;  %v8309_v33 = vld [vmem:[%s11870_s1 + $0x600] ss:$16 sps:$4 sm:$0xff]   ;;  %v8312_v34 = vld [vmem:[%s11870_s1 + $0x568] ss:$16 sps:$4 sm:$0xff]   ;;  %v9941_v39 = vpack.c.bf16 %v427_v32, %v408_v29  ;;  %v8371_v32 = vld [vmem:[%s11870_s1 + $0x744] ss:$16 sps:$4 sm:$0xff]  }
  0xa5   : > { %v8363_v29 = vld [vmem:[%s11870_s1 + $0x720] ss:$16 sps:$4 sm:$0xff]  }
  0xa6   : > { %5052 = vmatmul.mubr.bf16.vlgmr.msra.gmra.mrb[16].mxu1 %v9691_v58  ;;  %4373 = vmatpush1.bf16.msra.mxu0 %v8243_v35  ;;  %v8267_v58 = vld [vmem:[%s11870_s1 + $0x520] ss:$16 sps:$4 sm:$0xff]   ;;  %v8317_v35 = vld [vmem:[%s11870_s1 + $0x624] ss:$16 sps:$4 sm:$0xff]  }
  0xa7   : > { %5093 = vmatpush1.bf16.msra.mxu1 %v8246_v36  ;;  %4374 = vmatprep.subr.bf16.mxu0 %v8251_v38  ;;  %v8320_v36 = vld [vmem:[%s11870_s1 + $0x58c] ss:$16 sps:$4 sm:$0xff]   ;;  %v8318_v38 = vld [vmem:[%s11870_s1 + $0x588] ss:$16 sps:$4 sm:$0xff]  }
  0xa8   : > { %5094 = vmatprep.subr.bf16.mxu1 %v8254_v41  ;;  %5061 = vmatprep.mubr.bf16.mxu1 %v9710_v3  ;;  %v8279_v3 = vld [vmem:[%s11870_s1 + $0x560] ss:$16 sps:$4 sm:$0xff]  }
  0xa9   : > { %4352 = vmatmul.mubr.bf16.gmra.mrb[12].mxu0 %v576_v44  ;;  %v407_v41 = vld [vmem:[%s9303_s26 + $0x150] sm:$0xff] }
  0xaa   : > { %4375 = vmatpush1.bf16.msra.mxu0 %v8249_v42  ;;  %4394 = vmatprep.mubr.bf16.mxu0 %v522_v49  ;;  %v426_v42 = vld [vmem:[%s9303_s26 + $0x1e8] sm:$0xff] }
  0xab   : > { %5095 = vmatpush1.bf16.msra.mxu1 %v8252_v43  ;;  %4376 = vmatprep.subr.bf16.mxu0 %v8257_v47  ;;  %v8326_v43 = vld [vmem:[%s11870_s1 + $0x5ac] ss:$16 sps:$4 sm:$0xff]   ;;  %v9959_v46 = vpack.c.bf16 %v426_v42, %v407_v41  ;;  %v8378_v41 = vld [vmem:[%s11870_s1 + $0x6c8] ss:$16 sps:$4 sm:$0xff]  }
  0xac   : > { %5096 = vmatprep.subr.bf16.mxu1 %v8260_v48  ;;  %v446_v47 = vld [vmem:[%s9303_s26 + $0x288] sm:$0xff]  ;;  %v465_v48 = vld [vmem:[%s9303_s26 + $0x320] sm:$0xff] }
  0xae   : > { %5062 = vmatmul.mubr.bf16.gmra.mrb[20].mxu1 %v9726_v12  ;;  %4377 = vmatpush1.bf16.msra.mxu0 %v8255_v50  ;;  %v8296_v12 = vld [vmem:[%s11870_s1 + $0x50c] ss:$16 sps:$4 sm:$0xff]  }
  0xaf   : > { %5097 = vmatpush1.bf16.msra.mxu1 %v8258_v51  ;;  %4378 = vmatprep.subr.bf16.mxu0 %v8263_v52  ;;  %v8332_v50 = vld [vmem:[%s11870_s1 + $0x5cc] ss:$16 sps:$4 sm:$0xff]   ;;  %v8327_v51 = vld [vmem:[%s11870_s1 + $0x660] ss:$16 sps:$4 sm:$0xff]   ;;  %v8330_v52 = vld [vmem:[%s11870_s1 + $0x5c8] ss:$16 sps:$4 sm:$0xff]  }
  0xb0   : > { %5098 = vmatprep.subr.bf16.mxu1 %v8266_v53  ;;  %5071 = vmatprep.mubr.bf16.mxu1 %v9744_v20  ;;  %v8305_v20 = vld [vmem:[%s11870_s1 + $0x5e4] ss:$16 sps:$4 sm:$0xff]   ;;  %v9975_v53 = vpack.c.bf16 %v465_v48, %v446_v47  ;;  %v8384_v47 = vld [vmem:[%s11870_s1 + $0x6e8] ss:$16 sps:$4 sm:$0xff]  }
  0xb1   : > { %v8389_v48 = vld [vmem:[%s11870_s1 + $0x7a4] ss:$16 sps:$4 sm:$0xff]  }
  0xb2   : > { %4379 = vmatpush1.bf16.msra.mxu0 %v8261_v54  ;;  %v8335_v54 = vld [vmem:[%s11870_s1 + $0x684] ss:$16 sps:$4 sm:$0xff]  }
  0xb3   : > { %5099 = vmatpush1.bf16.msra.mxu1 %v8264_v55  ;;  %4380 = vmatprep.subr.bf16.mxu0 %v8269_v56  ;;  %v445_v55 = vld [vmem:[%s9303_s26 + $0x280] sm:$0xff]  ;;  %v464_v56 = vld [vmem:[%s9303_s26 + $0x318] sm:$0xff] }
  0xb4   : > { %5100 = vmatprep.subr.bf16.mxu1 %v8272_v57  ;;  %v8338_v57 = vld [vmem:[%s11870_s1 + $0x5ec] ss:$16 sps:$4 sm:$0xff]  }
  0xb6   : > { %5072 = vmatmul.mubr.bf16.gmra.mrb[24].mxu1 %v9760_v28  ;;  %4381 = vmatpush1.bf16.msra.mxu0 %v8267_v58  ;;  %v8314_v28 = vld [vmem:[%s11870_s1 + $0x56c] ss:$16 sps:$4 sm:$0xff]   ;;  %v8333_v58 = vld [vmem:[%s11870_s1 + $0x680] ss:$16 sps:$4 sm:$0xff]  }
  0xb7   : > { %5101 = vmatpush1.bf16.msra.mxu1 %v8270_v60  ;;  %4382 = vmatprep.subr.bf16.mxu0 %v8275_v61  ;;  %v8336_v60 = vld [vmem:[%s11870_s1 + $0x5e8] ss:$16 sps:$4 sm:$0xff]   ;;  %v9993_v61 = vpack.c.bf16 %v464_v56, %v445_v55  ;;  %v8401_v56 = vld [vmem:[%s11870_s1 + $0x7e4] ss:$16 sps:$4 sm:$0xff]  }
  0xb8   : > { %5102 = vmatprep.subr.bf16.mxu1 %v8278_v62  ;;  %5081 = vmatprep.mubr.bf16.mxu1 %v577_v37  ;;  %v8315_v37 = vld [vmem:[%s11870_s1 + $0x620] ss:$16 sps:$4 sm:$0xff]   ;;  %v484_v62 = vld [vmem:[%s9303_s26 + $0x3b8] sm:$0xff] }
  0xb9   : > { %v8396_v55 = vld [vmem:[%s11870_s1 + $0x728] ss:$16 sps:$4 sm:$0xff]  }
  0xba   : > { %4383 = vmatpush1.bf16.msra.mxu0 %v8273_v63  ;;  %v503_v63 = vld [vmem:[%s9303_s26 + $0x450] sm:$0xff] }
  0xbb   : > { %5103 = vmatpush1.bf16.msra.mxu1 %v8276_v0  ;;  %4384 = vmatprep.subr.bf16.mxu0 %v8281_v1  ;;  %v8341_v0 = vld [vmem:[%s11870_s1 + $0x6a4] ss:$16 sps:$4 sm:$0xff]   ;;  %v8344_v1 = vld [vmem:[%s11870_s1 + $0x60c] ss:$16 sps:$4 sm:$0xff]  }
  0xbc   : > { %5104 = vmatprep.subr.bf16.mxu1 %v8284_v2  ;;  %v8339_v2 = vld [vmem:[%s11870_s1 + $0x6a0] ss:$16 sps:$4 sm:$0xff]  }
  0xbe   : > { %5082 = vmatmul.mubr.bf16.gmra.mrb[28].mxu1 %v576_v44  ;;  %4385 = vmatpush1.bf16.msra.mxu0 %v8279_v3  ;;  %v8321_v44 = vld [vmem:[%s11870_s1 + $0x640] ss:$16 sps:$4 sm:$0xff]   ;;  %v8342_v3 = vld [vmem:[%s11870_s1 + $0x608] ss:$16 sps:$4 sm:$0xff]  }
  0xbf   : > { %5105 = vmatpush1.bf16.msra.mxu1 %v8282_v5  ;;  %4386 = vmatprep.subr.bf16.mxu0 %v8287_v6  ;;  %v579_v5 = vpack.c.bf16 %v503_v63, %v484_v62  ;;  %v8347_v6 = vld [vmem:[%s11870_s1 + $0x6c4] ss:$16 sps:$4 sm:$0xff]   ;;  %v390_v63 = vld [vmem:[%s9303_s26 + $0xc8] sm:$0xff] }
  0xc0   : > { %5106 = vmatprep.subr.bf16.mxu1 %v8290_v7  ;;  %5124 = vmatprep.mubr.bf16.mxu1 %v522_v49  ;;  %v8329_v49 = vld [vmem:[%s11870_s1 + $0x664] ss:$16 sps:$4 sm:$0xff]  }
  0xc1   : > { %v483_v7 = vld [vmem:[%s9303_s26 + $0x3b0] sm:$0xff] }
  0xc2   : > { %4387 = vmatpush1.bf16.msra.mxu0 %v8285_v8  ;;  %v502_v8 = vld [vmem:[%s9303_s26 + $0x448] sm:$0xff]  ;;  %v371_v62 = vld [vmem:[%s9303_s26 + $0x30] sm:$0xff] }
  0xc3   : > { %5107 = vmatpush1.bf16.msra.mxu1 %v8288_v9  ;;  %4388 = vmatprep.subr.bf16.mxu0 %v8293_v11  ;;  %v8350_v9 = vld [vmem:[%s11870_s1 + $0x62c] ss:$16 sps:$4 sm:$0xff]   ;;  %v8345_v11 = vld [vmem:[%s11870_s1 + $0x6c0] ss:$16 sps:$4 sm:$0xff]  }
  0xc4   : > { %5108 = vmatprep.subr.bf16.mxu1 %v8296_v12  ;;  %v578_v12 = vpack.c.bf16 %v502_v8, %v483_v7  ;;  %v8413_v7 = vld [vmem:[%s11870_s1 + $0x824] ss:$16 sps:$4 sm:$0xff]   ;;  %v8416_v8 = vld [vmem:[%s11870_s1 + $0x78c] ss:$16 sps:$4 sm:$0xff]  }
  0xc6   : > { %4389 = vmatpush1.bf16.msra.mxu0 %v8291_v13  ;;  %v372_v13 = vld [vmem:[%s9303_s26 + $0x38] sm:$0xff] }
  0xc7   : > { %5109 = vmatpush1.bf16.msra.mxu1 %v8294_v14  ;;  %4390 = vmatprep.subr.bf16.mxu0 %v8299_v15  ;;  %v391_v14 = vld [vmem:[%s9303_s26 + $0xd0] sm:$0xff]  ;;  %v8348_v15 = vld [vmem:[%s11870_s1 + $0x628] ss:$16 sps:$4 sm:$0xff]  }
  0xc8   : > { %5110 = vmatprep.subr.bf16.mxu1 %v8302_v16  ;;  %v8353_v16 = vld [vmem:[%s11870_s1 + $0x6e4] ss:$16 sps:$4 sm:$0xff]  }
  0xca   : > { %4391 = vmatpush1.bf16.msra.mxu0 %v8297_v17  ;;  %v8356_v17 = vld [vmem:[%s11870_s1 + $0x64c] ss:$16 sps:$4 sm:$0xff]  }
  0xcb   : > { %5111 = vmatpush1.bf16.msra.mxu1 %v8300_v18  ;;  %4392 = vmatprep.subr.bf16.mxu0 %v8305_v20  ;;  %v524_v18 = vpack.c.bf16 %v391_v14, %v372_v13  ;;  %v8351_v20 = vld [vmem:[%s11870_s1 + $0x6e0] ss:$16 sps:$4 sm:$0xff]  }
  0xcc   : > { %5112 = vmatprep.subr.bf16.mxu1 %v8308_v21  ;;  %v8354_v21 = vld [vmem:[%s11870_s1 + $0x648] ss:$16 sps:$4 sm:$0xff]  }
  0xce   : > { %4393 = vmatpush1.bf16.msra.mxu0 %v8303_v23  ;;  %v8359_v23 = vld [vmem:[%s11870_s1 + $0x704] ss:$16 sps:$4 sm:$0xff]  }
  0xcf   : > { %5113 = vmatpush1.bf16.msra.mxu1 %v8306_v24  ;;  %4435 = vmatprep.subr.bf16.mxu0 %v8311_v27  ;;  %v8362_v24 = vld [vmem:[%s11870_s1 + $0x66c] ss:$16 sps:$4 sm:$0xff]   ;;  %v8365_v27 = vld [vmem:[%s11870_s1 + $0x724] ss:$16 sps:$4 sm:$0xff]  }
  0xd0   : > { %5114 = vmatprep.subr.bf16.mxu1 %v8314_v28  ;;  %v8368_v28 = vld [vmem:[%s11870_s1 + $0x68c] ss:$16 sps:$4 sm:$0xff]  }
  0xd1   : > { %4395 = vmatmul.mubr.bf16.vlgmr.msra.gmra.mrb[0].mxu0 %v9920_v30 }
  0xd2   : > { %4436 = vmatpush1.bf16.msra.mxu0 %v8309_v33  ;;  %4404 = vmatprep.mubr.bf16.mxu0 %v9941_v39  ;;  %v8374_v33 = vld [vmem:[%s11870_s1 + $0x6ac] ss:$16 sps:$4 sm:$0xff]  }
  0xd3   : > { %5115 = vmatpush1.bf16.msra.mxu1 %v8312_v34  ;;  %4437 = vmatprep.subr.bf16.mxu0 %v8317_v35  ;;  %v8369_v34 = vld [vmem:[%s11870_s1 + $0x740] ss:$16 sps:$4 sm:$0xff]   ;;  %v8372_v35 = vld [vmem:[%s11870_s1 + $0x6a8] ss:$16 sps:$4 sm:$0xff]  }
  0xd4   : > { %5116 = vmatprep.subr.bf16.mxu1 %v8320_v36  ;;  %v8377_v36 = vld [vmem:[%s11870_s1 + $0x764] ss:$16 sps:$4 sm:$0xff]  }
  0xd6   : > { %4438 = vmatpush1.bf16.msra.mxu0 %v8315_v37  ;;  %v8380_v37 = vld [vmem:[%s11870_s1 + $0x6cc] ss:$16 sps:$4 sm:$0xff]  }
  0xd7   : > { %5117 = vmatpush1.bf16.msra.mxu1 %v8318_v38  ;;  %4439 = vmatprep.subr.bf16.mxu0 %v8323_v40 }
  0xd8   : > { %5118 = vmatprep.subr.bf16.mxu1 %v8326_v43  ;;  %v8383_v43 = vld [vmem:[%s11870_s1 + $0x784] ss:$16 sps:$4 sm:$0xff]  }
  0xd9   : > { %4405 = vmatmul.mubr.bf16.gmra.mrb[4].mxu0 %v9959_v46 }
  0xda   : > { %4440 = vmatpush1.bf16.msra.mxu0 %v8321_v44  ;;  %4414 = vmatprep.mubr.bf16.mxu0 %v9975_v53  ;;  %v8386_v44 = vld [vmem:[%s11870_s1 + $0x6ec] ss:$16 sps:$4 sm:$0xff]  }
  0xdb   : > { %5119 = vmatpush1.bf16.msra.mxu1 %v8324_v45  ;;  %4441 = vmatprep.subr.bf16.mxu0 %v8329_v49  ;;  %v8392_v49 = vld [vmem:[%s11870_s1 + $0x70c] ss:$16 sps:$4 sm:$0xff]  }
  0xdc   : > { %5120 = vmatprep.subr.bf16.mxu1 %v8332_v50  ;;  %v8387_v50 = vld [vmem:[%s11870_s1 + $0x7a0] ss:$16 sps:$4 sm:$0xff]  }
  0xde   : > { %4442 = vmatpush1.bf16.msra.mxu0 %v8327_v51  ;;  %v8390_v51 = vld [vmem:[%s11870_s1 + $0x708] ss:$16 sps:$4 sm:$0xff]  }
  0xdf   : > { %5121 = vmatpush1.bf16.msra.mxu1 %v8330_v52  ;;  %4443 = vmatprep.subr.bf16.mxu0 %v8335_v54  ;;  %v8395_v52 = vld [vmem:[%s11870_s1 + $0x7c4] ss:$16 sps:$4 sm:$0xff]   ;;  %v8393_v54 = vld [vmem:[%s11870_s1 + $0x7c0] ss:$16 sps:$4 sm:$0xff]  }
  0xe0   : > { %5122 = vmatprep.subr.bf16.mxu1 %v8338_v57  ;;  %v8404_v57 = vld [vmem:[%s11870_s1 + $0x74c] ss:$16 sps:$4 sm:$0xff]  }
  0xe1   : > { %4415 = vmatmul.mubr.bf16.gmra.mrb[8].mxu0 %v9993_v61 }
  0xe2   : > { %4444 = vmatpush1.bf16.msra.mxu0 %v8333_v58  ;;  %4424 = vmatprep.mubr.bf16.mxu0 %v579_v5  ;;  %v8399_v58 = vld [vmem:[%s11870_s1 + $0x7e0] ss:$16 sps:$4 sm:$0xff]  }
  0xe3   : > { %5123 = vmatpush1.bf16.msra.mxu1 %v8336_v60  ;;  %4445 = vmatprep.subr.bf16.mxu0 %v8341_v0  ;;  %v8402_v60 = vld [vmem:[%s11870_s1 + $0x748] ss:$16 sps:$4 sm:$0xff]   ;;  %v8410_v0 = vld [vmem:[%s11870_s1 + $0x76c] ss:$16 sps:$4 sm:$0xff]  }
  0xe4   : > { %5165 = vmatprep.subr.bf16.mxu1 %v8344_v1  ;;  %v8405_v1 = vld [vmem:[%s11870_s1 + $0x800] ss:$16 sps:$4 sm:$0xff]  }
  0xe6   : > { %5125 = vmatmul.mubr.bf16.vlgmr.msra.gmra.mrb[16].mxu1 %v9920_v30  ;;  %4446 = vmatpush1.bf16.msra.mxu0 %v8339_v2  ;;  %v8366_v30 = vld [vmem:[%s11870_s1 + $0x688] ss:$16 sps:$4 sm:$0xff]  }
  0xe7   : > { %5166 = vmatpush1.bf16.msra.mxu1 %v8342_v3  ;;  %4447 = vmatprep.subr.bf16.mxu0 %v8347_v6  ;;  %v8408_v2 = vld [vmem:[%s11870_s1 + $0x768] ss:$16 sps:$4 sm:$0xff]   ;;  %v10161_v3 = vpack.c.bf16 %v390_v63, %v371_v62  ;;  %v429_v6 = vld [vmem:[%s9303_s26 + $0x200] sm:$0xff] }
  0xe8   : > { %5167 = vmatprep.subr.bf16.mxu1 %v8350_v9  ;;  %5134 = vmatprep.mubr.bf16.mxu1 %v9941_v39  ;;  %v8375_v39 = vld [vmem:[%s11870_s1 + $0x760] ss:$16 sps:$4 sm:$0xff]   ;;  %v504_v63 = vld [vmem:[%s9303_s26 + $0x458] sm:$0xff] }
  0xe9   : > { %4425 = vmatmul.mubr.bf16.gmra.mrb[12].mxu0 %v578_v12 }
  0xea   : > { %4448 = vmatpush1.bf16.msra.mxu0 %v8345_v11  ;;  %4467 = vmatprep.mubr.bf16.mxu0 %v524_v18  ;;  %v8411_v11 = vld [vmem:[%s11870_s1 + $0x820] ss:$16 sps:$4 sm:$0xff]  }
  0xeb   : > { %5168 = vmatpush1.bf16.msra.mxu1 %v8348_v15  ;;  %4449 = vmatprep.subr.bf16.mxu0 %v8353_v16  ;;  %v8419_v15 = vld [vmem:[%s11870_s1 + $0x844] ss:$16 sps:$4 sm:$0xff]  }
  0xec   : > { %5169 = vmatprep.subr.bf16.mxu1 %v8356_v17  ;;  %v409_v17 = vld [vmem:[%s9303_s26 + $0x160] sm:$0xff] }
  0xee   : > { %5135 = vmatmul.mubr.bf16.gmra.mrb[20].mxu1 %v9959_v46  ;;  %4450 = vmatpush1.bf16.msra.mxu0 %v8351_v20  ;;  %v8381_v46 = vld [vmem:[%s11870_s1 + $0x780] ss:$16 sps:$4 sm:$0xff]   ;;  %v428_v20 = vld [vmem:[%s9303_s26 + $0x1f8] sm:$0xff] }
  0xef   : > { %5170 = vmatpush1.bf16.msra.mxu1 %v8354_v21  ;;  %4451 = vmatprep.subr.bf16.mxu0 %v8359_v23  ;;  %v8422_v21 = vld [vmem:[%s11870_s1 + $0x7ac] ss:$16 sps:$4 sm:$0xff]   ;;  %v8417_v23 = vld [vmem:[%s11870_s1 + $0x840] ss:$16 sps:$4 sm:$0xff]  }
  0xf0   : > { %5171 = vmatprep.subr.bf16.mxu1 %v8362_v24  ;;  %5144 = vmatprep.mubr.bf16.mxu1 %v9975_v53  ;;  %v8398_v53 = vld [vmem:[%s11870_s1 + $0x72c] ss:$16 sps:$4 sm:$0xff]   ;;  %v10200_v24 = vpack.c.bf16 %v428_v20, %v409_v17  ;;  %v8455_v17 = vld [vmem:[%s11870_s1 + $0x904] ss:$16 sps:$4 sm:$0xff]   ;;  %v8453_v20 = vld [vmem:[%s11870_s1 + $0x900] ss:$16 sps:$4 sm:$0xff]  }
  0xf2   : > { %4452 = vmatpush1.bf16.msra.mxu0 %v8357_v25  ;;  %v448_v25 = vld [vmem:[%s9303_s26 + $0x298] sm:$0xff] }
  0xf3   : > { %5172 = vmatpush1.bf16.msra.mxu1 %v8360_v26  ;;  %4453 = vmatprep.subr.bf16.mxu0 %v8365_v27  ;;  %v467_v26 = vld [vmem:[%s9303_s26 + $0x330] sm:$0xff]  ;;  %v8420_v27 = vld [vmem:[%s11870_s1 + $0x7a8] ss:$16 sps:$4 sm:$0xff]  }
  0xf4   : > { %5173 = vmatprep.subr.bf16.mxu1 %v8368_v28  ;;  %v8425_v28 = vld [vmem:[%s11870_s1 + $0x864] ss:$16 sps:$4 sm:$0xff]  }
  0xf6   : > { %5145 = vmatmul.mubr.bf16.gmra.mrb[24].mxu1 %v9993_v61  ;;  %4454 = vmatpush1.bf16.msra.mxu0 %v8363_v29  ;;  %v8407_v61 = vld [vmem:[%s11870_s1 + $0x804] ss:$16 sps:$4 sm:$0xff]   ;;  %v8428_v29 = vld [vmem:[%s11870_s1 + $0x7cc] ss:$16 sps:$4 sm:$0xff]  }
  0xf7   : > { %5174 = vmatpush1.bf16.msra.mxu1 %v8366_v30  ;;  %4455 = vmatprep.subr.bf16.mxu0 %v8371_v32  ;;  %v8423_v32 = vld [vmem:[%s11870_s1 + $0x860] ss:$16 sps:$4 sm:$0xff]  }
  0xf8   : > { %5175 = vmatprep.subr.bf16.mxu1 %v8374_v33  ;;  %5154 = vmatprep.mubr.bf16.mxu1 %v579_v5  ;;  %v410_v5 = vld [vmem:[%s9303_s26 + $0x168] sm:$0xff] }
  0xf9   : > { %v10085_v38 = vpop.f32.mrb[0].mxu1  ;;  %v10181_v14 = vpack.c.bf16 %v429_v6, %v410_v5  ;;  %v393_v5 = vld [vmem:[%s9303_s26 + $0xe0] sm:$0xff] }
  0xfa   : > { %v10090_v40 = vpop.f32.mrb[1].mxu1  ;;  %4456 = vmatpush1.bf16.msra.mxu0 %v8369_v34  ;;  %v10220_v34 = vpack.c.bf16 %v467_v26, %v448_v25  ;;  %v8441_v6 = vld [vmem:[%s11870_s1 + $0x8c0] ss:$16 sps:$4 sm:$0xff]   ;;  %v8462_v26 = vld [vmem:[%s11870_s1 + $0x888] ss:$16 sps:$4 sm:$0xff]  }
  0xfb   : > { %5176 = vmatpush1.bf16.msra.mxu1 %v8372_v35  ;;  %v10095_v42 = vpop.f32.mrb[2].mxu1  ;;  %4457 = vmatprep.subr.bf16.mxu0 %v8377_v36  ;;  %v8426_v35 = vld [vmem:[%s11870_s1 + $0x7c8] ss:$16 sps:$4 sm:$0xff]   ;;  %v8459_v25 = vld [vmem:[%s11870_s1 + $0x920] ss:$16 sps:$4 sm:$0xff]  }
  0xfc   : > { %5177 = vmatprep.subr.bf16.mxu1 %v8380_v37  ;;  %v10103_v45 = vpop.f32.mrb[3].mxu1  ;;  %v8431_v37 = vld [vmem:[%s11870_s1 + $0x884] ss:$16 sps:$4 sm:$0xff]  }
  0xfe   : > { %5155 = vmatmul.mubr.bf16.gmra.mrb[28].mxu1 %v578_v12  ;;  %4458 = vmatpush1.bf16.msra.mxu0 %v8375_v39  ;;  %v8414_v12 = vld [vmem:[%s11870_s1 + $0x788] ss:$16 sps:$4 sm:$0xff]  }
  0xff   : > { %5178 = vmatpush1.bf16.msra.mxu1 %v8378_v41  ;;  %4459 = vmatprep.subr.bf16.mxu0 %v8383_v43  ;;  %v447_v41 = vld [vmem:[%s9303_s26 + $0x290] sm:$0xff]  ;;  %v466_v43 = vld [vmem:[%s9303_s26 + $0x328] sm:$0xff] }
 0x100   : > { %5179 = vmatprep.subr.bf16.mxu1 %v8386_v44  ;;  %5197 = vmatprep.mubr.bf16.mxu1 %v524_v18  ;;  %v8434_v44 = vld [vmem:[%s11870_s1 + $0x7ec] ss:$16 sps:$4 sm:$0xff]  }
 0x101   : > { %v10171_v9 = vpop.f32.mrb[4].mxu1 }
 0x102   : > { %4460 = vmatpush1.bf16.msra.mxu0 %v8381_v46  ;;  %v10179_v13 = vpop.f32.mrb[5].mxu1  ;;  %v10239_v46 = vpack.c.bf16 %v466_v43, %v447_v41  ;;  %v8474_v41 = vld [vmem:[%s11870_s1 + $0x8c8] ss:$16 sps:$4 sm:$0xff]   ;;  %v8479_v43 = vld [vmem:[%s11870_s1 + $0x984] ss:$16 sps:$4 sm:$0xff]  }
 0x103   : > { %5180 = vmatpush1.bf16.msra.mxu1 %v8384_v47  ;;  %4461 = vmatprep.subr.bf16.mxu0 %v8389_v48  ;;  %v10187_v16 = vpop.f32.mrb[6].mxu1  ;;  %v486_v47 = vld [vmem:[%s9303_s26 + $0x3c8] sm:$0xff]  ;;  %v505_v48 = vld [vmem:[%s9303_s26 + $0x460] sm:$0xff] }
 0x104   : > { %5181 = vmatprep.subr.bf16.mxu1 %v8392_v49  ;;  %v10190_v18 = vpop.f32.mrb[7].mxu1  ;;  %v8429_v49 = vld [vmem:[%s11870_s1 + $0x880] ss:$16 sps:$4 sm:$0xff]  }
 0x106   : > { %4462 = vmatpush1.bf16.msra.mxu0 %v8387_v50  ;;  %v8432_v50 = vld [vmem:[%s11870_s1 + $0x7e8] ss:$16 sps:$4 sm:$0xff]  }
 0x107   : > { %5182 = vmatpush1.bf16.msra.mxu1 %v8390_v51  ;;  %4463 = vmatprep.subr.bf16.mxu0 %v8395_v52  ;;  %v8437_v51 = vld [vmem:[%s11870_s1 + $0x8a4] ss:$16 sps:$4 sm:$0xff]   ;;  %v8440_v52 = vld [vmem:[%s11870_s1 + $0x80c] ss:$16 sps:$4 sm:$0xff]  }
 0x108   : > { %5183 = vmatprep.subr.bf16.mxu1 %v8398_v53 }
 0x109   : > { %v10213_v30 = vpop.f32.mrb[8].mxu1 }
 0x10a   : > { %4464 = vmatpush1.bf16.msra.mxu0 %v8393_v54  ;;  %v10218_v33 = vpop.f32.mrb[9].mxu1  ;;  %v8435_v54 = vld [vmem:[%s11870_s1 + $0x8a0] ss:$16 sps:$4 sm:$0xff]  }
 0x10b   : > { %5184 = vmatpush1.bf16.msra.mxu1 %v8396_v55  ;;  %4465 = vmatprep.subr.bf16.mxu0 %v8401_v56  ;;  %v10225_v36 = vpop.f32.mrb[10].mxu1  ;;  %v10262_v56 = vpack.c.bf16 %v505_v48, %v486_v47  ;;  %v8480_v47 = vld [vmem:[%s11870_s1 + $0x8e8] ss:$16 sps:$4 sm:$0xff]   ;;  %v8485_v48 = vld [vmem:[%s11870_s1 + $0x9a4] ss:$16 sps:$4 sm:$0xff]  }
 0x10c   : > { %5185 = vmatprep.subr.bf16.mxu1 %v8404_v57  ;;  %v10231_v39 = vpop.f32.mrb[11].mxu1  ;;  %v8438_v57 = vld [vmem:[%s11870_s1 + $0x808] ss:$16 sps:$4 sm:$0xff]  }
 0x10e   : > { %4466 = vmatpush1.bf16.msra.mxu0 %v8399_v58  ;;  %v8443_v58 = vld [vmem:[%s11870_s1 + $0x8c4] ss:$16 sps:$4 sm:$0xff]  }
 0x10f   : > { %5186 = vmatpush1.bf16.msra.mxu1 %v8402_v60  ;;  %4508 = vmatprep.subr.bf16.mxu0 %v8407_v61  ;;  %v485_v61 = vld [vmem:[%s9303_s26 + $0x3c0] sm:$0xff] }
 0x110   : > { %5187 = vmatprep.subr.bf16.mxu1 %v8410_v0  ;;  %v8446_v0 = vld [vmem:[%s11870_s1 + $0x82c] ss:$16 sps:$4 sm:$0xff]  }
 0x111   : > { %4468 = vmatmul.mubr.bf16.vlgmr.msra.gmra.mrb[0].mxu0 %v10161_v3  ;;  %v10255_v53 = vpop.f32.mrb[12].mxu1 }
 0x112   : > { %4509 = vmatpush1.bf16.msra.mxu0 %v8405_v1  ;;  %4477 = vmatprep.mubr.bf16.mxu0 %v10181_v14  ;;  %v10260_v55 = vpop.f32.mrb[13].mxu1  ;;  %v374_v1 = vld [vmem:[%s9303_s26 + $0x48] sm:$0xff] }
 0x113   : > { %5188 = vmatpush1.bf16.msra.mxu1 %v8408_v2  ;;  %4510 = vmatprep.subr.bf16.mxu0 %v8413_v7  ;;  %v10270_v60 = vpop.f32.mrb[14].mxu1  ;;  %v580_v2 = vpack.c.bf16 %v504_v63, %v485_v61  ;;  %v8444_v7 = vld [vmem:[%s11870_s1 + $0x828] ss:$16 sps:$4 sm:$0xff]   ;;  %v8500_v61 = vld [vmem:[%s11870_s1 + $0x94c] ss:$16 sps:$4 sm:$0xff]  }
 0x114   : > { %5189 = vmatprep.subr.bf16.mxu1 %v8416_v8  ;;  %v10274_v62 = vpop.f32.mrb[15].mxu1  ;;  %v8449_v8 = vld [vmem:[%s11870_s1 + $0x8e4] ss:$16 sps:$4 sm:$0xff]   ;;  %v8495_v63 = vld [vmem:[%s11870_s1 + $0x9e0] ss:$16 sps:$4 sm:$0xff]  }
 0x116   : > { %4511 = vmatpush1.bf16.msra.mxu0 %v8411_v11  ;;  %v526_v11 = vpack.c.bf16 %v393_v5, %v374_v1  ;;  %v8503_v1 = vld [vmem:[%s11870_s1 + $0xa04] ss:$16 sps:$4 sm:$0xff]   ;;  %v392_v5 = vld [vmem:[%s9303_s26 + $0xd8] sm:$0xff] }
 0x117   : > { %5190 = vmatpush1.bf16.msra.mxu1 %v8414_v12  ;;  %4512 = vmatprep.subr.bf16.mxu0 %v8419_v15  ;;  %v8447_v12 = vld [vmem:[%s11870_s1 + $0x8e0] ss:$16 sps:$4 sm:$0xff]   ;;  %v8450_v15 = vld [vmem:[%s11870_s1 + $0x848] ss:$16 sps:$4 sm:$0xff]  }
 0x118   : > { %5191 = vmatprep.subr.bf16.mxu1 %v8422_v21  ;;  %v8456_v21 = vld [vmem:[%s11870_s1 + $0x868] ss:$16 sps:$4 sm:$0xff]  }
 0x119   : > { %4478 = vmatmul.mubr.bf16.gmra.mrb[4].mxu0 %v10200_v24 }
 0x11a   : > { %4513 = vmatpush1.bf16.msra.mxu0 %v8417_v23  ;;  %4487 = vmatprep.mubr.bf16.mxu0 %v10220_v34  ;;  %v8461_v23 = vld [vmem:[%s11870_s1 + $0x924] ss:$16 sps:$4 sm:$0xff]  }
 0x11b   : > { %5192 = vmatpush1.bf16.msra.mxu1 %v8420_v27  ;;  %4514 = vmatprep.subr.bf16.mxu0 %v8425_v28  ;;  %v8467_v27 = vld [vmem:[%s11870_s1 + $0x944] ss:$16 sps:$4 sm:$0xff]   ;;  %v8470_v28 = vld [vmem:[%s11870_s1 + $0x8ac] ss:$16 sps:$4 sm:$0xff]  }
 0x11c   : > { %5193 = vmatprep.subr.bf16.mxu1 %v8428_v29  ;;  %v8465_v29 = vld [vmem:[%s11870_s1 + $0x940] ss:$16 sps:$4 sm:$0xff]  }
 0x11e   : > { %4515 = vmatpush1.bf16.msra.mxu0 %v8423_v32  ;;  %v8468_v32 = vld [vmem:[%s11870_s1 + $0x8a8] ss:$16 sps:$4 sm:$0xff]  }
 0x11f   : > { %5194 = vmatpush1.bf16.msra.mxu1 %v8426_v35  ;;  %4516 = vmatprep.subr.bf16.mxu0 %v8431_v37  ;;  %v8476_v35 = vld [vmem:[%s11870_s1 + $0x8cc] ss:$16 sps:$4 sm:$0xff]   ;;  %v8471_v37 = vld [vmem:[%s11870_s1 + $0x960] ss:$16 sps:$4 sm:$0xff]  }
 0x120   : > { %5195 = vmatprep.subr.bf16.mxu1 %v8434_v44  ;;  %v8482_v44 = vld [vmem:[%s11870_s1 + $0x8ec] ss:$16 sps:$4 sm:$0xff]  }
 0x121   : > { %4488 = vmatmul.mubr.bf16.gmra.mrb[8].mxu0 %v10239_v46 }
 0x122   : > { %4517 = vmatpush1.bf16.msra.mxu0 %v8429_v49  ;;  %4497 = vmatprep.mubr.bf16.mxu0 %v10262_v56  ;;  %v8488_v49 = vld [vmem:[%s11870_s1 + $0x90c] ss:$16 sps:$4 sm:$0xff]  }
 0x123   : > { %5196 = vmatpush1.bf16.msra.mxu1 %v8432_v50  ;;  %4518 = vmatprep.subr.bf16.mxu0 %v8437_v51  ;;  %v8483_v50 = vld [vmem:[%s11870_s1 + $0x9a0] ss:$16 sps:$4 sm:$0xff]   ;;  %v8486_v51 = vld [vmem:[%s11870_s1 + $0x908] ss:$16 sps:$4 sm:$0xff]  }
 0x124   : > { %5238 = vmatprep.subr.bf16.mxu1 %v8440_v52  ;;  %v8491_v52 = vld [vmem:[%s11870_s1 + $0x9c4] ss:$16 sps:$4 sm:$0xff]  }
 0x126   : > { %5198 = vmatmul.mubr.bf16.vlgmr.msra.gmra.mrb[16].mxu1 %v10161_v3  ;;  %4519 = vmatpush1.bf16.msra.mxu0 %v8435_v54  ;;  %v8452_v3 = vld [vmem:[%s11870_s1 + $0x84c] ss:$16 sps:$4 sm:$0xff]  }
 0x127   : > { %5239 = vmatpush1.bf16.msra.mxu1 %v8438_v57  ;;  %4520 = vmatprep.subr.bf16.mxu0 %v8443_v58  ;;  %v8494_v54 = vld [vmem:[%s11870_s1 + $0x92c] ss:$16 sps:$4 sm:$0xff]   ;;  %v8492_v57 = vld [vmem:[%s11870_s1 + $0x928] ss:$16 sps:$4 sm:$0xff]   ;;  %v8497_v58 = vld [vmem:[%s11870_s1 + $0x9e4] ss:$16 sps:$4 sm:$0xff]  }
 0x128   : > { %5240 = vmatprep.subr.bf16.mxu1 %v8446_v0  ;;  %5207 = vmatprep.mubr.bf16.mxu1 %v10181_v14  ;;  %v8458_v14 = vld [vmem:[%s11870_s1 + $0x86c] ss:$16 sps:$4 sm:$0xff]   ;;  %v8498_v0 = vld [vmem:[%s11870_s1 + $0x948] ss:$16 sps:$4 sm:$0xff]  }
 0x129   : > { %4498 = vmatmul.mubr.bf16.gmra.mrb[12].mxu0 %v580_v2 }
 0x12a   : > { %4521 = vmatpush1.bf16.msra.mxu0 %v8441_v6  ;;  %4540 = vmatprep.mubr.bf16.mxu0 %v526_v11  ;;  %v8506_v6 = vld [vmem:[%s11870_s1 + $0x96c] ss:$16 sps:$4 sm:$0xff]  }
 0x12b   : > { %5241 = vmatpush1.bf16.msra.mxu1 %v8444_v7  ;;  %4522 = vmatprep.subr.bf16.mxu0 %v8449_v8  ;;  %v412_v8 = vld [vmem:[%s9303_s26 + $0x178] sm:$0xff] }
 0x12c   : > { %5242 = vmatprep.subr.bf16.mxu1 %v8452_v3  ;;  %v431_v3 = vld [vmem:[%s9303_s26 + $0x210] sm:$0xff] }
 0x12e   : > { %5208 = vmatmul.mubr.bf16.gmra.mrb[20].mxu1 %v10200_v24  ;;  %4523 = vmatpush1.bf16.msra.mxu0 %v8447_v12  ;;  %v8464_v24 = vld [vmem:[%s11870_s1 + $0x88c] ss:$16 sps:$4 sm:$0xff]   ;;  %v8504_v12 = vld [vmem:[%s11870_s1 + $0x968] ss:$16 sps:$4 sm:$0xff]  }
 0x12f   : > { %5243 = vmatpush1.bf16.msra.mxu1 %v8450_v15  ;;  %4524 = vmatprep.subr.bf16.mxu0 %v8455_v17  ;;  %v8509_v15 = vld [vmem:[%s11870_s1 + $0xa24] ss:$16 sps:$4 sm:$0xff]   ;;  %v8512_v17 = vld [vmem:[%s11870_s1 + $0x98c] ss:$16 sps:$4 sm:$0xff]  }
 0x130   : > { %5244 = vmatprep.subr.bf16.mxu1 %v8458_v14  ;;  %5217 = vmatprep.mubr.bf16.mxu1 %v10220_v34  ;;  %v8473_v34 = vld [vmem:[%s11870_s1 + $0x964] ss:$16 sps:$4 sm:$0xff]   ;;  %v8507_v14 = vld [vmem:[%s11870_s1 + $0xa20] ss:$16 sps:$4 sm:$0xff]  }
 0x132   : > { %4525 = vmatpush1.bf16.msra.mxu0 %v8453_v20  ;;  %v10430_v20 = vpack.c.bf16 %v431_v3, %v412_v8  ;;  %v8537_v8 = vld [vmem:[%s11870_s1 + $0xac0] ss:$16 sps:$4 sm:$0xff]   ;;  %v8540_v3 = vld [vmem:[%s11870_s1 + $0xa28] ss:$16 sps:$4 sm:$0xff]  }
 0x133   : > { %5245 = vmatpush1.bf16.msra.mxu1 %v8456_v21  ;;  %4526 = vmatprep.subr.bf16.mxu0 %v8461_v23  ;;  %v8510_v21 = vld [vmem:[%s11870_s1 + $0x988] ss:$16 sps:$4 sm:$0xff]   ;;  %v8515_v23 = vld [vmem:[%s11870_s1 + $0xa44] ss:$16 sps:$4 sm:$0xff]  }
 0x134   : > { %5246 = vmatprep.subr.bf16.mxu1 %v8464_v24  ;;  %v411_v24 = vld [vmem:[%s9303_s26 + $0x170] sm:$0xff] }
 0x136   : > { %5218 = vmatmul.mubr.bf16.gmra.mrb[24].mxu1 %v10239_v46  ;;  %4527 = vmatpush1.bf16.msra.mxu0 %v8459_v25  ;;  %v8477_v46 = vld [vmem:[%s11870_s1 + $0x980] ss:$16 sps:$4 sm:$0xff]   ;;  %v430_v25 = vld [vmem:[%s9303_s26 + $0x208] sm:$0xff] }
 0x137   : > { %5247 = vmatpush1.bf16.msra.mxu1 %v8462_v26  ;;  %4528 = vmatprep.subr.bf16.mxu0 %v8467_v27  ;;  %v8518_v26 = vld [vmem:[%s11870_s1 + $0x9ac] ss:$16 sps:$4 sm:$0xff]  }
 0x138   : > { %5248 = vmatprep.subr.bf16.mxu1 %v8470_v28  ;;  %5227 = vmatprep.mubr.bf16.mxu1 %v10262_v56  ;;  %v8489_v56 = vld [vmem:[%s11870_s1 + $0x9c0] ss:$16 sps:$4 sm:$0xff]   ;;  %v450_v27 = vld [vmem:[%s9303_s26 + $0x2a8] sm:$0xff]  ;;  %v10446_v28 = vpack.c.bf16 %v430_v25, %v411_v24  ;;  %v8551_v24 = vld [vmem:[%s11870_s1 + $0xb04] ss:$16 sps:$4 sm:$0xff]  }
 0x139   : > { %v8549_v25 = vld [vmem:[%s11870_s1 + $0xb00] ss:$16 sps:$4 sm:$0xff]  }
 0x13a   : > { %4529 = vmatpush1.bf16.msra.mxu0 %v8465_v29  ;;  %v469_v29 = vld [vmem:[%s9303_s26 + $0x340] sm:$0xff] }
 0x13b   : > { %5249 = vmatpush1.bf16.msra.mxu1 %v8468_v32  ;;  %4530 = vmatprep.subr.bf16.mxu0 %v8473_v34  ;;  %v8513_v32 = vld [vmem:[%s11870_s1 + $0xa40] ss:$16 sps:$4 sm:$0xff]   ;;  %v8516_v34 = vld [vmem:[%s11870_s1 + $0x9a8] ss:$16 sps:$4 sm:$0xff]  }
 0x13c   : > { %5250 = vmatprep.subr.bf16.mxu1 %v8476_v35  ;;  %v8521_v35 = vld [vmem:[%s11870_s1 + $0xa64] ss:$16 sps:$4 sm:$0xff]  }
 0x13e   : > { %5228 = vmatmul.mubr.bf16.gmra.mrb[28].mxu1 %v580_v2  ;;  %4531 = vmatpush1.bf16.msra.mxu0 %v8471_v37  ;;  %v373_v2 = vld [vmem:[%s9303_s26 + $0x40] sm:$0xff]  ;;  %v8524_v37 = vld [vmem:[%s11870_s1 + $0x9cc] ss:$16 sps:$4 sm:$0xff]  }
 0x13f   : > { %5251 = vmatpush1.bf16.msra.mxu1 %v8474_v41  ;;  %4532 = vmatprep.subr.bf16.mxu0 %v8479_v43  ;;  %v10411_v7 = vpack.c.bf16 %v392_v5, %v373_v2  ;;  %v8519_v41 = vld [vmem:[%s11870_s1 + $0xa60] ss:$16 sps:$4 sm:$0xff]   ;;  %v10464_v43 = vpack.c.bf16 %v469_v29, %v450_v27  ;;  %v506_v5 = vld [vmem:[%s9303_s26 + $0x468] sm:$0xff]  ;;  %v8557_v27 = vld [vmem:[%s11870_s1 + $0xb24] ss:$16 sps:$4 sm:$0xff]  }
 0x140   : > { %5252 = vmatprep.subr.bf16.mxu1 %v8482_v44  ;;  %5270 = vmatprep.mubr.bf16.mxu1 %v526_v11  ;;  %v8501_v11 = vld [vmem:[%s11870_s1 + $0xa00] ss:$16 sps:$4 sm:$0xff]   ;;  %v8522_v44 = vld [vmem:[%s11870_s1 + $0x9c8] ss:$16 sps:$4 sm:$0xff]   ;;  %v8560_v29 = vld [vmem:[%s11870_s1 + $0xa8c] ss:$16 sps:$4 sm:$0xff]  }
 0x141   : > { %v487_v2 = vld [vmem:[%s9303_s26 + $0x3d0] sm:$0xff] }
 0x142   : > { %4533 = vmatpush1.bf16.msra.mxu0 %v8477_v46  ;;  %v449_v46 = vld [vmem:[%s9303_s26 + $0x2a0] sm:$0xff] }
 0x143   : > { %5253 = vmatpush1.bf16.msra.mxu1 %v8480_v47  ;;  %4534 = vmatprep.subr.bf16.mxu0 %v8485_v48  ;;  %v468_v47 = vld [vmem:[%s9303_s26 + $0x338] sm:$0xff]  ;;  %v8527_v48 = vld [vmem:[%s11870_s1 + $0xa84] ss:$16 sps:$4 sm:$0xff]  }
 0x144   : > { %5254 = vmatprep.subr.bf16.mxu1 %v8488_v49  ;;  %v8530_v49 = vld [vmem:[%s11870_s1 + $0x9ec] ss:$16 sps:$4 sm:$0xff]  }
 0x146   : > { %4535 = vmatpush1.bf16.msra.mxu0 %v8483_v50  ;;  %v488_v50 = vld [vmem:[%s9303_s26 + $0x3d8] sm:$0xff] }
 0x147   : > { %5255 = vmatpush1.bf16.msra.mxu1 %v8486_v51  ;;  %4536 = vmatprep.subr.bf16.mxu0 %v8491_v52  ;;  %v10480_v51 = vpack.c.bf16 %v468_v47, %v449_v46  ;;  %v507_v52 = vld [vmem:[%s9303_s26 + $0x470] sm:$0xff]  ;;  %v8570_v47 = vld [vmem:[%s11870_s1 + $0xac8] ss:$16 sps:$4 sm:$0xff]  }
 0x148   : > { %5256 = vmatprep.subr.bf16.mxu1 %v8494_v54  ;;  %v8525_v54 = vld [vmem:[%s11870_s1 + $0xa80] ss:$16 sps:$4 sm:$0xff]  }
 0x149   : > { %v8567_v46 = vld [vmem:[%s11870_s1 + $0xb60] ss:$16 sps:$4 sm:$0xff]  }
 0x14a   : > { %4537 = vmatpush1.bf16.msra.mxu0 %v8489_v56  ;;  %v8528_v56 = vld [vmem:[%s11870_s1 + $0x9e8] ss:$16 sps:$4 sm:$0xff]  }
 0x14b   : > { %5257 = vmatpush1.bf16.msra.mxu1 %v8492_v57  ;;  %4538 = vmatprep.subr.bf16.mxu0 %v8497_v58  ;;  %v8533_v57 = vld [vmem:[%s11870_s1 + $0xaa4] ss:$16 sps:$4 sm:$0xff]   ;;  %v8536_v58 = vld [vmem:[%s11870_s1 + $0xa0c] ss:$16 sps:$4 sm:$0xff]  }
 0x14c   : > { %5258 = vmatprep.subr.bf16.mxu1 %v8500_v61  ;;  %v8531_v61 = vld [vmem:[%s11870_s1 + $0xaa0] ss:$16 sps:$4 sm:$0xff]  }
 0x14e   : > { %4539 = vmatpush1.bf16.msra.mxu0 %v8495_v63  ;;  %v8534_v63 = vld [vmem:[%s11870_s1 + $0xa08] ss:$16 sps:$4 sm:$0xff]  }
 0x14f   : > { %5259 = vmatpush1.bf16.msra.mxu1 %v8498_v0  ;;  %4581 = vmatprep.subr.bf16.mxu0 %v8503_v1  ;;  %v583_v0 = vpack.c.bf16 %v507_v52, %v488_v50  ;;  %v8539_v1 = vld [vmem:[%s11870_s1 + $0xac4] ss:$16 sps:$4 sm:$0xff]   ;;  %v8573_v50 = vld [vmem:[%s11870_s1 + $0xb80] ss:$16 sps:$4 sm:$0xff]  }
 0x150   : > { %5260 = vmatprep.subr.bf16.mxu1 %v8506_v6  ;;  %v8542_v6 = vld [vmem:[%s11870_s1 + $0xa2c] ss:$16 sps:$4 sm:$0xff]   ;;  %v8581_v52 = vld [vmem:[%s11870_s1 + $0xba4] ss:$16 sps:$4 sm:$0xff]  }
 0x151   : > { %4541 = vmatmul.mubr.bf16.vlgmr.msra.gmra.mrb[0].mxu0 %v10411_v7 }
 0x152   : > { %4582 = vmatpush1.bf16.msra.mxu0 %v8501_v11  ;;  %4550 = vmatprep.mubr.bf16.mxu0 %v10430_v20  ;;  %v582_v11 = vpack.c.bf16 %v506_v5, %v487_v2  ;;  %v8596_v2 = vld [vmem:[%s11870_s1 + $0xb4c] ss:$16 sps:$4 sm:$0xff]   ;;  %v8591_v5 = vld [vmem:[%s11870_s1 + $0xbe0] ss:$16 sps:$4 sm:$0xff]  }
 0x153   : > { %5261 = vmatpush1.bf16.msra.mxu1 %v8504_v12  ;;  %4583 = vmatprep.subr.bf16.mxu0 %v8509_v15  ;;  %v376_v12 = vld [vmem:[%s9303_s26 + $0x58] sm:$0xff]  ;;  %v395_v15 = vld [vmem:[%s9303_s26 + $0xf0] sm:$0xff] }
 0x154   : > { %5262 = vmatprep.subr.bf16.mxu1 %v8512_v17  ;;  %v8545_v17 = vld [vmem:[%s11870_s1 + $0xae4] ss:$16 sps:$4 sm:$0xff]  }
 0x156   : > { %4584 = vmatpush1.bf16.msra.mxu0 %v8507_v14  ;;  %v8548_v14 = vld [vmem:[%s11870_s1 + $0xa4c] ss:$16 sps:$4 sm:$0xff]  }
 0x157   : > { %5263 = vmatpush1.bf16.msra.mxu1 %v8510_v21  ;;  %4585 = vmatprep.subr.bf16.mxu0 %v8515_v23  ;;  %v528_v21 = vpack.c.bf16 %v395_v15, %v376_v12  ;;  %v8546_v23 = vld [vmem:[%s11870_s1 + $0xa48] ss:$16 sps:$4 sm:$0xff]  }
 0x158   : > { %5264 = vmatprep.subr.bf16.mxu1 %v8518_v26  ;;  %v8552_v26 = vld [vmem:[%s11870_s1 + $0xa68] ss:$16 sps:$4 sm:$0xff]  }
 0x159   : > { %4551 = vmatmul.mubr.bf16.gmra.mrb[4].mxu0 %v10446_v28  ;;  %v394_v12 = vld [vmem:[%s9303_s26 + $0xe8] sm:$0xff] }
 0x15a   : > { %4586 = vmatpush1.bf16.msra.mxu0 %v8513_v32  ;;  %4560 = vmatprep.mubr.bf16.mxu0 %v10464_v43  ;;  %v8555_v32 = vld [vmem:[%s11870_s1 + $0xb20] ss:$16 sps:$4 sm:$0xff]   ;;  %v414_v15 = vld [vmem:[%s9303_s26 + $0x188] sm:$0xff] }
 0x15b   : > { %5265 = vmatpush1.bf16.msra.mxu1 %v8516_v34  ;;  %4587 = vmatprep.subr.bf16.mxu0 %v8521_v35  ;;  %v8563_v34 = vld [vmem:[%s11870_s1 + $0xb44] ss:$16 sps:$4 sm:$0xff]   ;;  %v8566_v35 = vld [vmem:[%s11870_s1 + $0xaac] ss:$16 sps:$4 sm:$0xff]  }
 0x15c   : > { %5266 = vmatprep.subr.bf16.mxu1 %v8524_v37  ;;  %v8561_v37 = vld [vmem:[%s11870_s1 + $0xb40] ss:$16 sps:$4 sm:$0xff]  }
 0x15e   : > { %4588 = vmatpush1.bf16.msra.mxu0 %v8519_v41  ;;  %v8564_v41 = vld [vmem:[%s11870_s1 + $0xaa8] ss:$16 sps:$4 sm:$0xff]  }
 0x15f   : > { %5267 = vmatpush1.bf16.msra.mxu1 %v8522_v44  ;;  %4589 = vmatprep.subr.bf16.mxu0 %v8527_v48  ;;  %v8572_v44 = vld [vmem:[%s11870_s1 + $0xacc] ss:$16 sps:$4 sm:$0xff]   ;;  %v8575_v48 = vld [vmem:[%s11870_s1 + $0xb84] ss:$16 sps:$4 sm:$0xff]  }
 0x160   : > { %5268 = vmatprep.subr.bf16.mxu1 %v8530_v49  ;;  %v8578_v49 = vld [vmem:[%s11870_s1 + $0xaec] ss:$16 sps:$4 sm:$0xff]  }
 0x161   : > { %4561 = vmatmul.mubr.bf16.gmra.mrb[8].mxu0 %v10480_v51 }
 0x162   : > { %4590 = vmatpush1.bf16.msra.mxu0 %v8525_v54  ;;  %4570 = vmatprep.mubr.bf16.mxu0 %v583_v0  ;;  %v8584_v54 = vld [vmem:[%s11870_s1 + $0xb0c] ss:$16 sps:$4 sm:$0xff]  }
 0x163   : > { %5269 = vmatpush1.bf16.msra.mxu1 %v8528_v56  ;;  %4591 = vmatprep.subr.bf16.mxu0 %v8533_v57  ;;  %v8579_v56 = vld [vmem:[%s11870_s1 + $0xba0] ss:$16 sps:$4 sm:$0xff]   ;;  %v8582_v57 = vld [vmem:[%s11870_s1 + $0xb08] ss:$16 sps:$4 sm:$0xff]  }
 0x164   : > { %5311 = vmatprep.subr.bf16.mxu1 %v8536_v58  ;;  %v8587_v58 = vld [vmem:[%s11870_s1 + $0xbc4] ss:$16 sps:$4 sm:$0xff]  }
 0x166   : > { %5271 = vmatmul.mubr.bf16.vlgmr.msra.gmra.mrb[16].mxu1 %v10411_v7  ;;  %4592 = vmatpush1.bf16.msra.mxu0 %v8531_v61  ;;  %v8543_v7 = vld [vmem:[%s11870_s1 + $0xae0] ss:$16 sps:$4 sm:$0xff]   ;;  %v8590_v61 = vld [vmem:[%s11870_s1 + $0xb2c] ss:$16 sps:$4 sm:$0xff]  }
 0x167   : > { %5312 = vmatpush1.bf16.msra.mxu1 %v8534_v63  ;;  %4593 = vmatprep.subr.bf16.mxu0 %v8539_v1  ;;  %v8585_v63 = vld [vmem:[%s11870_s1 + $0xbc0] ss:$16 sps:$4 sm:$0xff]   ;;  %v8593_v1 = vld [vmem:[%s11870_s1 + $0xbe4] ss:$16 sps:$4 sm:$0xff]  }
 0x168   : > { %5313 = vmatprep.subr.bf16.mxu1 %v8542_v6  ;;  %5280 = vmatprep.mubr.bf16.mxu1 %v10430_v20  ;;  %v8554_v20 = vld [vmem:[%s11870_s1 + $0xa6c] ss:$16 sps:$4 sm:$0xff]   ;;  %v8594_v6 = vld [vmem:[%s11870_s1 + $0xb48] ss:$16 sps:$4 sm:$0xff]  }
 0x169   : > { %4571 = vmatmul.mubr.bf16.gmra.mrb[12].mxu0 %v582_v11 }
 0x16a   : > { %4594 = vmatpush1.bf16.msra.mxu0 %v8537_v8  ;;  %4613 = vmatprep.mubr.bf16.mxu0 %v528_v21  ;;  %v8599_v8 = vld [vmem:[%s11870_s1 + $0xc04] ss:$16 sps:$4 sm:$0xff]  }
 0x16b   : > { %5314 = vmatpush1.bf16.msra.mxu1 %v8540_v3  ;;  %4595 = vmatprep.subr.bf16.mxu0 %v8545_v17  ;;  %v8602_v3 = vld [vmem:[%s11870_s1 + $0xb6c] ss:$16 sps:$4 sm:$0xff]   ;;  %v433_v17 = vld [vmem:[%s9303_s26 + $0x220] sm:$0xff] }
 0x16c   : > { %5315 = vmatprep.subr.bf16.mxu1 %v8548_v14 }
 0x16e   : > { %5281 = vmatmul.mubr.bf16.gmra.mrb[20].mxu1 %v10446_v28  ;;  %4596 = vmatpush1.bf16.msra.mxu0 %v8543_v7  ;;  %v8558_v28 = vld [vmem:[%s11870_s1 + $0xa88] ss:$16 sps:$4 sm:$0xff]  }
 0x16f   : > { %5316 = vmatpush1.bf16.msra.mxu1 %v8546_v23  ;;  %4597 = vmatprep.subr.bf16.mxu0 %v8551_v24  ;;  %v8600_v7 = vld [vmem:[%s11870_s1 + $0xb68] ss:$16 sps:$4 sm:$0xff]   ;;  %v8605_v23 = vld [vmem:[%s11870_s1 + $0xc24] ss:$16 sps:$4 sm:$0xff]   ;;  %v8608_v24 = vld [vmem:[%s11870_s1 + $0xb8c] ss:$16 sps:$4 sm:$0xff]  }
 0x170   : > { %5317 = vmatprep.subr.bf16.mxu1 %v8554_v20  ;;  %5290 = vmatprep.mubr.bf16.mxu1 %v10464_v43  ;;  %v8569_v43 = vld [vmem:[%s11870_s1 + $0xb64] ss:$16 sps:$4 sm:$0xff]   ;;  %v8603_v20 = vld [vmem:[%s11870_s1 + $0xc20] ss:$16 sps:$4 sm:$0xff]  }
 0x172   : > { %4598 = vmatpush1.bf16.msra.mxu0 %v8549_v25  ;;  %v8606_v25 = vld [vmem:[%s11870_s1 + $0xb88] ss:$16 sps:$4 sm:$0xff]  }
 0x173   : > { %5318 = vmatpush1.bf16.msra.mxu1 %v8552_v26  ;;  %4599 = vmatprep.subr.bf16.mxu0 %v8557_v27  ;;  %v10661_v26 = vpack.c.bf16 %v433_v17, %v414_v15  ;;  %v8611_v27 = vld [vmem:[%s11870_s1 + $0xc44] ss:$16 sps:$4 sm:$0xff]   ;;  %v378_v15 = vld [vmem:[%s9303_s26 + $0x68] sm:$0xff] }
 0x174   : > { %5319 = vmatprep.subr.bf16.mxu1 %v8560_v29  ;;  %v8614_v29 = vld [vmem:[%s11870_s1 + $0xbac] ss:$16 sps:$4 sm:$0xff]   ;;  %v397_v17 = vld [vmem:[%s9303_s26 + $0x100] sm:$0xff] }
 0x176   : > { %5291 = vmatmul.mubr.bf16.gmra.mrb[24].mxu1 %v10480_v51  ;;  %4600 = vmatpush1.bf16.msra.mxu0 %v8555_v32  ;;  %v8576_v51 = vld [vmem:[%s11870_s1 + $0xae8] ss:$16 sps:$4 sm:$0xff]   ;;  %v413_v32 = vld [vmem:[%s9303_s26 + $0x180] sm:$0xff] }
 0x177   : > { %5320 = vmatpush1.bf16.msra.mxu1 %v8558_v28  ;;  %4601 = vmatprep.subr.bf16.mxu0 %v8563_v34  ;;  %v432_v28 = vld [vmem:[%s9303_s26 + $0x218] sm:$0xff] }
 0x178   : > { %5321 = vmatprep.subr.bf16.mxu1 %v8566_v35  ;;  %5300 = vmatprep.mubr.bf16.mxu1 %v583_v0  ;;  %v8588_v0 = vld [vmem:[%s11870_s1 + $0xb28] ss:$16 sps:$4 sm:$0xff]   ;;  %v471_v35 = vld [vmem:[%s9303_s26 + $0x350] sm:$0xff] }
 0x179   : > { %v452_v34 = vld [vmem:[%s9303_s26 + $0x2b8] sm:$0xff] }
 0x17a   : > { %4602 = vmatpush1.bf16.msra.mxu0 %v8561_v37  ;;  %v10675_v37 = vpack.c.bf16 %v432_v28, %v413_v32  ;;  %v8645_v32 = vld [vmem:[%s11870_s1 + $0xd00] ss:$16 sps:$4 sm:$0xff]   ;;  %v8648_v28 = vld [vmem:[%s11870_s1 + $0xc68] ss:$16 sps:$4 sm:$0xff]  }
 0x17b   : > { %5322 = vmatpush1.bf16.msra.mxu1 %v8564_v41  ;;  %4603 = vmatprep.subr.bf16.mxu0 %v8569_v43  ;;  %v8609_v41 = vld [vmem:[%s11870_s1 + $0xc40] ss:$16 sps:$4 sm:$0xff]   ;;  %v8612_v43 = vld [vmem:[%s11870_s1 + $0xba8] ss:$16 sps:$4 sm:$0xff]  }
 0x17c   : > { %5323 = vmatprep.subr.bf16.mxu1 %v8572_v44  ;;  %v8617_v44 = vld [vmem:[%s11870_s1 + $0xc64] ss:$16 sps:$4 sm:$0xff]  }
 0x17e   : > { %5301 = vmatmul.mubr.bf16.gmra.mrb[28].mxu1 %v582_v11  ;;  %4604 = vmatpush1.bf16.msra.mxu0 %v8567_v46  ;;  %v375_v11 = vld [vmem:[%s9303_s26 + $0x50] sm:$0xff]  ;;  %v8620_v46 = vld [vmem:[%s11870_s1 + $0xbcc] ss:$16 sps:$4 sm:$0xff]  }
 0x17f   : > { %5324 = vmatpush1.bf16.msra.mxu1 %v8570_v47  ;;  %4605 = vmatprep.subr.bf16.mxu0 %v8575_v48  ;;  %v10641_v14 = vpack.c.bf16 %v394_v12, %v375_v11  ;;  %v8615_v47 = vld [vmem:[%s11870_s1 + $0xc60] ss:$16 sps:$4 sm:$0xff]   ;;  %v8618_v48 = vld [vmem:[%s11870_s1 + $0xbc8] ss:$16 sps:$4 sm:$0xff]  }
 0x180   : > { %5325 = vmatprep.subr.bf16.mxu1 %v8578_v49  ;;  %5343 = vmatprep.mubr.bf16.mxu1 %v528_v21  ;;  %v8597_v21 = vld [vmem:[%s11870_s1 + $0xc00] ss:$16 sps:$4 sm:$0xff]   ;;  %v10695_v49 = vpack.c.bf16 %v471_v35, %v452_v34  ;;  %v508_v12 = vld [vmem:[%s9303_s26 + $0x478] sm:$0xff]  ;;  %v8653_v34 = vld [vmem:[%s11870_s1 + $0xd24] ss:$16 sps:$4 sm:$0xff]  }
 0x181   : > { %v489_v11 = vld [vmem:[%s9303_s26 + $0x3e0] sm:$0xff]  ;;  %v8656_v35 = vld [vmem:[%s11870_s1 + $0xc8c] ss:$16 sps:$4 sm:$0xff]  }
 0x182   : > { %4606 = vmatpush1.bf16.msra.mxu0 %v8573_v50  ;;  %v8623_v50 = vld [vmem:[%s11870_s1 + $0xc84] ss:$16 sps:$4 sm:$0xff]  }
 0x183   : > { %5326 = vmatpush1.bf16.msra.mxu1 %v8576_v51  ;;  %4607 = vmatprep.subr.bf16.mxu0 %v8581_v52  ;;  %v8626_v51 = vld [vmem:[%s11870_s1 + $0xbec] ss:$16 sps:$4 sm:$0xff]   ;;  %v451_v52 = vld [vmem:[%s9303_s26 + $0x2b0] sm:$0xff] }
 0x184   : > { %5327 = vmatprep.subr.bf16.mxu1 %v8584_v54  ;;  %v470_v54 = vld [vmem:[%s9303_s26 + $0x348] sm:$0xff] }
 0x186   : > { %4608 = vmatpush1.bf16.msra.mxu0 %v8579_v56  ;;  %v490_v56 = vld [vmem:[%s9303_s26 + $0x3e8] sm:$0xff] }
 0x187   : > { %5328 = vmatpush1.bf16.msra.mxu1 %v8582_v57  ;;  %4609 = vmatprep.subr.bf16.mxu0 %v8587_v58  ;;  %v509_v57 = vld [vmem:[%s9303_s26 + $0x480] sm:$0xff]  ;;  %v10709_v58 = vpack.c.bf16 %v470_v54, %v451_v52  ;;  %v8674_v54 = vld [vmem:[%s11870_s1 + $0xcec] ss:$16 sps:$4 sm:$0xff]  }
 0x188   : > { %5329 = vmatprep.subr.bf16.mxu1 %v8590_v61  ;;  %v8621_v61 = vld [vmem:[%s11870_s1 + $0xc80] ss:$16 sps:$4 sm:$0xff]   ;;  %v8671_v52 = vld [vmem:[%s11870_s1 + $0xd84] ss:$16 sps:$4 sm:$0xff]  }
 0x18a   : > { %4610 = vmatpush1.bf16.msra.mxu0 %v8585_v63  ;;  %v8624_v63 = vld [vmem:[%s11870_s1 + $0xbe8] ss:$16 sps:$4 sm:$0xff]  }
 0x18b   : > { %5330 = vmatpush1.bf16.msra.mxu1 %v8588_v0  ;;  %4611 = vmatprep.subr.bf16.mxu0 %v8593_v1  ;;  %v8629_v0 = vld [vmem:[%s11870_s1 + $0xca4] ss:$16 sps:$4 sm:$0xff]   ;;  %v8632_v1 = vld [vmem:[%s11870_s1 + $0xc0c] ss:$16 sps:$4 sm:$0xff]  }
 0x18c   : > { %5331 = vmatprep.subr.bf16.mxu1 %v8596_v2  ;;  %v8627_v2 = vld [vmem:[%s11870_s1 + $0xca0] ss:$16 sps:$4 sm:$0xff]  }
 0x18e   : > { %4612 = vmatpush1.bf16.msra.mxu0 %v8591_v5  ;;  %v8630_v5 = vld [vmem:[%s11870_s1 + $0xc08] ss:$16 sps:$4 sm:$0xff]  }
 0x18f   : > { %5332 = vmatpush1.bf16.msra.mxu1 %v8594_v6  ;;  %4654 = vmatprep.subr.bf16.mxu0 %v8599_v8  ;;  %v585_v6 = vpack.c.bf16 %v509_v57, %v490_v56  ;;  %v8635_v8 = vld [vmem:[%s11870_s1 + $0xcc4] ss:$16 sps:$4 sm:$0xff]   ;;  %v8669_v56 = vld [vmem:[%s11870_s1 + $0xd80] ss:$16 sps:$4 sm:$0xff]   ;;  %v8672_v57 = vld [vmem:[%s11870_s1 + $0xce8] ss:$16 sps:$4 sm:$0xff]  }
 0x190   : > { %5333 = vmatprep.subr.bf16.mxu1 %v8602_v3  ;;  %v8638_v3 = vld [vmem:[%s11870_s1 + $0xc2c] ss:$16 sps:$4 sm:$0xff]  }
 0x191   : > { %4614 = vmatmul.mubr.bf16.vlgmr.msra.gmra.mrb[0].mxu0 %v10641_v14 }
 0x192   : > { %4655 = vmatpush1.bf16.msra.mxu0 %v8597_v21  ;;  %4623 = vmatprep.mubr.bf16.mxu0 %v10661_v26  ;;  %v584_v21 = vpack.c.bf16 %v508_v12, %v489_v11  ;;  %v8687_v11 = vld [vmem:[%s11870_s1 + $0xde0] ss:$16 sps:$4 sm:$0xff]   ;;  %v8690_v12 = vld [vmem:[%s11870_s1 + $0xd48] ss:$16 sps:$4 sm:$0xff]  }
 0x193   : > { %5334 = vmatpush1.bf16.msra.mxu1 %v8600_v7  ;;  %4656 = vmatprep.subr.bf16.mxu0 %v8605_v23  ;;  %v8633_v7 = vld [vmem:[%s11870_s1 + $0xcc0] ss:$16 sps:$4 sm:$0xff]   ;;  %v8636_v23 = vld [vmem:[%s11870_s1 + $0xc28] ss:$16 sps:$4 sm:$0xff]  }
 0x194   : > { %5335 = vmatprep.subr.bf16.mxu1 %v8608_v24  ;;  %v8641_v24 = vld [vmem:[%s11870_s1 + $0xce4] ss:$16 sps:$4 sm:$0xff]  }
 0x196   : > { %4657 = vmatpush1.bf16.msra.mxu0 %v8603_v20  ;;  %v530_v20 = vpack.c.bf16 %v397_v17, %v378_v15  ;;  %v377_v15 = vld [vmem:[%s9303_s26 + $0x60] sm:$0xff]  ;;  %v396_v17 = vld [vmem:[%s9303_s26 + $0xf8] sm:$0xff] }
 0x197   : > { %5336 = vmatpush1.bf16.msra.mxu1 %v8606_v25  ;;  %4658 = vmatprep.subr.bf16.mxu0 %v8611_v27  ;;  %v8639_v25 = vld [vmem:[%s11870_s1 + $0xce0] ss:$16 sps:$4 sm:$0xff]   ;;  %v8642_v27 = vld [vmem:[%s11870_s1 + $0xc48] ss:$16 sps:$4 sm:$0xff]  }
 0x198   : > { %5337 = vmatprep.subr.bf16.mxu1 %v8614_v29  ;;  %v8647_v29 = vld [vmem:[%s11870_s1 + $0xd04] ss:$16 sps:$4 sm:$0xff]  }
 0x199   : > { %4624 = vmatmul.mubr.bf16.gmra.mrb[4].mxu0 %v10675_v37 }
 0x19a   : > { %4659 = vmatpush1.bf16.msra.mxu0 %v8609_v41  ;;  %4633 = vmatprep.mubr.bf16.mxu0 %v10695_v49  ;;  %v8654_v41 = vld [vmem:[%s11870_s1 + $0xc88] ss:$16 sps:$4 sm:$0xff]  }
 0x19b   : > { %5338 = vmatpush1.bf16.msra.mxu1 %v8612_v43  ;;  %4660 = vmatprep.subr.bf16.mxu0 %v8617_v44  ;;  %v8659_v43 = vld [vmem:[%s11870_s1 + $0xd44] ss:$16 sps:$4 sm:$0xff]   ;;  %v8662_v44 = vld [vmem:[%s11870_s1 + $0xcac] ss:$16 sps:$4 sm:$0xff]  }
 0x19c   : > { %5339 = vmatprep.subr.bf16.mxu1 %v8620_v46  ;;  %v8657_v46 = vld [vmem:[%s11870_s1 + $0xd40] ss:$16 sps:$4 sm:$0xff]  }
 0x19e   : > { %4661 = vmatpush1.bf16.msra.mxu0 %v8615_v47  ;;  %v8660_v47 = vld [vmem:[%s11870_s1 + $0xca8] ss:$16 sps:$4 sm:$0xff]  }
 0x19f   : > { %5340 = vmatpush1.bf16.msra.mxu1 %v8618_v48  ;;  %4662 = vmatprep.subr.bf16.mxu0 %v8623_v50  ;;  %v8665_v48 = vld [vmem:[%s11870_s1 + $0xd64] ss:$16 sps:$4 sm:$0xff]   ;;  %v8663_v50 = vld [vmem:[%s11870_s1 + $0xd60] ss:$16 sps:$4 sm:$0xff]  }
 0x1a0   : > { %5341 = vmatprep.subr.bf16.mxu1 %v8626_v51  ;;  %v8666_v51 = vld [vmem:[%s11870_s1 + $0xcc8] ss:$16 sps:$4 sm:$0xff]  }
 0x1a1   : > { %4634 = vmatmul.mubr.bf16.gmra.mrb[8].mxu0 %v10709_v58 }
 0x1a2   : > { %4663 = vmatpush1.bf16.msra.mxu0 %v8621_v61  ;;  %4643 = vmatprep.mubr.bf16.mxu0 %v585_v6  ;;  %v8680_v61 = vld [vmem:[%s11870_s1 + $0xd0c] ss:$16 sps:$4 sm:$0xff]  }
 0x1a3   : > { %5342 = vmatpush1.bf16.msra.mxu1 %v8624_v63  ;;  %4664 = vmatprep.subr.bf16.mxu0 %v8629_v0  ;;  %v8675_v63 = vld [vmem:[%s11870_s1 + $0xda0] ss:$16 sps:$4 sm:$0xff]   ;;  %v8678_v0 = vld [vmem:[%s11870_s1 + $0xd08] ss:$16 sps:$4 sm:$0xff]  }
 0x1a4   : > { %5384 = vmatprep.subr.bf16.mxu1 %v8632_v1  ;;  %v8683_v1 = vld [vmem:[%s11870_s1 + $0xdc4] ss:$16 sps:$4 sm:$0xff]  }
 0x1a6   : > { %5344 = vmatmul.mubr.bf16.vlgmr.msra.gmra.mrb[16].mxu1 %v10641_v14  ;;  %4665 = vmatpush1.bf16.msra.mxu0 %v8627_v2  ;;  %v8644_v14 = vld [vmem:[%s11870_s1 + $0xc4c] ss:$16 sps:$4 sm:$0xff]  }
 0x1a7   : > { %5385 = vmatpush1.bf16.msra.mxu1 %v8630_v5  ;;  %4666 = vmatprep.subr.bf16.mxu0 %v8635_v8  ;;  %v8686_v2 = vld [vmem:[%s11870_s1 + $0xd2c] ss:$16 sps:$4 sm:$0xff]   ;;  %v8681_v5 = vld [vmem:[%s11870_s1 + $0xdc0] ss:$16 sps:$4 sm:$0xff]   ;;  %v8689_v8 = vld [vmem:[%s11870_s1 + $0xde4] ss:$16 sps:$4 sm:$0xff]  }
 0x1a8   : > { %5386 = vmatprep.subr.bf16.mxu1 %v8638_v3  ;;  %5353 = vmatprep.mubr.bf16.mxu1 %v10661_v26  ;;  %v8650_v26 = vld [vmem:[%s11870_s1 + $0xc6c] ss:$16 sps:$4 sm:$0xff]  }
 0x1a9   : > { %4644 = vmatmul.mubr.bf16.gmra.mrb[12].mxu0 %v584_v21  ;;  %v8692_v3 = vld [vmem:[%s11870_s1 + $0xd4c] ss:$16 sps:$4 sm:$0xff]  }
 0x1aa   : > { %4667 = vmatpush1.bf16.msra.mxu0 %v8633_v7  ;;  %4686 = vmatprep.mubr.bf16.mxu0 %v530_v20  ;;  %v8698_v7 = vld [vmem:[%s11870_s1 + $0xd6c] ss:$16 sps:$4 sm:$0xff]  }
 0x1ab   : > { %5387 = vmatpush1.bf16.msra.mxu1 %v8636_v23  ;;  %4668 = vmatprep.subr.bf16.mxu0 %v8641_v24  ;;  %v8693_v23 = vld [vmem:[%s11870_s1 + $0xe00] ss:$16 sps:$4 sm:$0xff]   ;;  %v10870_v24 = vpack.c.bf16 %v396_v17, %v377_v15  ;;  %v510_v17 = vld [vmem:[%s9303_s26 + $0x488] sm:$0xff] }
 0x1ac   : > { %5388 = vmatprep.subr.bf16.mxu1 %v8644_v14  ;;  %v416_v14 = vld [vmem:[%s9303_s26 + $0x198] sm:$0xff]  ;;  %v491_v15 = vld [vmem:[%s9303_s26 + $0x3f0] sm:$0xff] }
 0x1ae   : > { %5354 = vmatmul.mubr.bf16.gmra.mrb[20].mxu1 %v10675_v37  ;;  %4669 = vmatpush1.bf16.msra.mxu0 %v8639_v25  ;;  %v8651_v37 = vld [vmem:[%s11870_s1 + $0xd20] ss:$16 sps:$4 sm:$0xff]   ;;  %v8696_v25 = vld [vmem:[%s11870_s1 + $0xd68] ss:$16 sps:$4 sm:$0xff]  }
 0x1af   : > { %5389 = vmatpush1.bf16.msra.mxu1 %v8642_v27  ;;  %4670 = vmatprep.subr.bf16.mxu0 %v8647_v29  ;;  %v8701_v27 = vld [vmem:[%s11870_s1 + $0xe24] ss:$16 sps:$4 sm:$0xff]   ;;  %v8704_v29 = vld [vmem:[%s11870_s1 + $0xd8c] ss:$16 sps:$4 sm:$0xff]  }
 0x1b0   : > { %5390 = vmatprep.subr.bf16.mxu1 %v8650_v26  ;;  %5363 = vmatprep.mubr.bf16.mxu1 %v10695_v49  ;;  %v8668_v49 = vld [vmem:[%s11870_s1 + $0xccc] ss:$16 sps:$4 sm:$0xff]   ;;  %v8699_v26 = vld [vmem:[%s11870_s1 + $0xe20] ss:$16 sps:$4 sm:$0xff]  }
 0x1b2   : > { %4671 = vmatpush1.bf16.msra.mxu0 %v8645_v32  ;;  %v8702_v32 = vld [vmem:[%s11870_s1 + $0xd88] ss:$16 sps:$4 sm:$0xff]  }
 0x1b3   : > { %5391 = vmatpush1.bf16.msra.mxu1 %v8648_v28  ;;  %4672 = vmatprep.subr.bf16.mxu0 %v8653_v34  ;;  %v8707_v34 = vld [vmem:[%s11870_s1 + $0xe44] ss:$16 sps:$4 sm:$0xff]  }
 0x1b4   : > { %5392 = vmatprep.subr.bf16.mxu1 %v8656_v35  ;;  %v8710_v35 = vld [vmem:[%s11870_s1 + $0xdac] ss:$16 sps:$4 sm:$0xff]  }
 0x1b6   : > { %5364 = vmatmul.mubr.bf16.gmra.mrb[24].mxu1 %v10709_v58  ;;  %4673 = vmatpush1.bf16.msra.mxu0 %v8651_v37  ;;  %v8677_v58 = vld [vmem:[%s11870_s1 + $0xda4] ss:$16 sps:$4 sm:$0xff]  }
 0x1b7   : > { %5393 = vmatpush1.bf16.msra.mxu1 %v8654_v41  ;;  %4674 = vmatprep.subr.bf16.mxu0 %v8659_v43  ;;  %v415_v37 = vld [vmem:[%s9303_s26 + $0x190] sm:$0xff]  ;;  %v434_v41 = vld [vmem:[%s9303_s26 + $0x228] sm:$0xff] }
 0x1b8   : > { %5394 = vmatprep.subr.bf16.mxu1 %v8662_v44  ;;  %5373 = vmatprep.mubr.bf16.mxu1 %v585_v6  ;;  %v8684_v6 = vld [vmem:[%s11870_s1 + $0xd28] ss:$16 sps:$4 sm:$0xff]   ;;  %v8705_v43 = vld [vmem:[%s11870_s1 + $0xe40] ss:$16 sps:$4 sm:$0xff]   ;;  %v10904_v44 = vpack.c.bf16 %v434_v41, %v415_v37  ;;  %v8746_v37 = vld [vmem:[%s11870_s1 + $0xe6c] ss:$16 sps:$4 sm:$0xff]  }
 0x1b9   : > { %v8741_v41 = vld [vmem:[%s11870_s1 + $0xf00] ss:$16 sps:$4 sm:$0xff]  }
 0x1ba   : > { %4675 = vmatpush1.bf16.msra.mxu0 %v8657_v46  ;;  %v454_v46 = vld [vmem:[%s9303_s26 + $0x2c8] sm:$0xff] }
 0x1bb   : > { %5395 = vmatpush1.bf16.msra.mxu1 %v8660_v47  ;;  %4676 = vmatprep.subr.bf16.mxu0 %v8665_v48  ;;  %v473_v47 = vld [vmem:[%s9303_s26 + $0x360] sm:$0xff]  ;;  %v8708_v48 = vld [vmem:[%s11870_s1 + $0xda8] ss:$16 sps:$4 sm:$0xff]  }
 0x1bc   : > { %5396 = vmatprep.subr.bf16.mxu1 %v8668_v49  ;;  %v8713_v49 = vld [vmem:[%s11870_s1 + $0xe64] ss:$16 sps:$4 sm:$0xff]  }
 0x1be   : > { %5374 = vmatmul.mubr.bf16.gmra.mrb[28].mxu1 %v584_v21  ;;  %4677 = vmatpush1.bf16.msra.mxu0 %v8663_v50  ;;  %v8695_v21 = vld [vmem:[%s11870_s1 + $0xe04] ss:$16 sps:$4 sm:$0xff]   ;;  %v8716_v50 = vld [vmem:[%s11870_s1 + $0xdcc] ss:$16 sps:$4 sm:$0xff]  }
 0x1bf   : > { %5397 = vmatpush1.bf16.msra.mxu1 %v8666_v51  ;;  %4678 = vmatprep.subr.bf16.mxu0 %v8671_v52  ;;  %v8711_v51 = vld [vmem:[%s11870_s1 + $0xe60] ss:$16 sps:$4 sm:$0xff]   ;;  %v8714_v52 = vld [vmem:[%s11870_s1 + $0xdc8] ss:$16 sps:$4 sm:$0xff]  }
 0x1c0   : > { %5398 = vmatprep.subr.bf16.mxu1 %v8674_v54  ;;  %5416 = vmatprep.mubr.bf16.mxu1 %v530_v20  ;;  %v435_v20 = vld [vmem:[%s9303_s26 + $0x230] sm:$0xff]  ;;  %v10923_v54 = vpack.c.bf16 %v473_v47, %v454_v46  ;;  %v8752_v46 = vld [vmem:[%s11870_s1 + $0xe8c] ss:$16 sps:$4 sm:$0xff]  }
 0x1c1   : > { %v10889_v28 = vpack.c.bf16 %v435_v20, %v416_v14  ;;  %v8732_v14 = vld [vmem:[%s11870_s1 + $0xe28] ss:$16 sps:$4 sm:$0xff]   ;;  %v8737_v20 = vld [vmem:[%s11870_s1 + $0xee4] ss:$16 sps:$4 sm:$0xff]   ;;  %v8747_v47 = vld [vmem:[%s11870_s1 + $0xf20] ss:$16 sps:$4 sm:$0xff]  }
 0x1c2   : > { %4679 = vmatpush1.bf16.msra.mxu0 %v8669_v56  ;;  %v8719_v56 = vld [vmem:[%s11870_s1 + $0xe84] ss:$16 sps:$4 sm:$0xff]  }
 0x1c3   : > { %5399 = vmatpush1.bf16.msra.mxu1 %v8672_v57  ;;  %4680 = vmatprep.subr.bf16.mxu0 %v8677_v58  ;;  %v8722_v57 = vld [vmem:[%s11870_s1 + $0xdec] ss:$16 sps:$4 sm:$0xff]   ;;  %v453_v58 = vld [vmem:[%s9303_s26 + $0x2c0] sm:$0xff] }
 0x1c4   : > { %5400 = vmatprep.subr.bf16.mxu1 %v8680_v61  ;;  %v472_v61 = vld [vmem:[%s9303_s26 + $0x358] sm:$0xff] }
 0x1c6   : > { %4681 = vmatpush1.bf16.msra.mxu0 %v8675_v63  ;;  %v8717_v63 = vld [vmem:[%s11870_s1 + $0xe80] ss:$16 sps:$4 sm:$0xff]  }
 0x1c7   : > { %5401 = vmatpush1.bf16.msra.mxu1 %v8678_v0  ;;  %4682 = vmatprep.subr.bf16.mxu0 %v8683_v1  ;;  %v10938_v0 = vpack.c.bf16 %v472_v61, %v453_v58  ;;  %v492_v1 = vld [vmem:[%s9303_s26 + $0x3f8] sm:$0xff]  ;;  %v8767_v58 = vld [vmem:[%s11870_s1 + $0xf84] ss:$16 sps:$4 sm:$0xff]  }
 0x1c8   : > { %5402 = vmatprep.subr.bf16.mxu1 %v8686_v2  ;;  %v511_v2 = vld [vmem:[%s9303_s26 + $0x490] sm:$0xff]  ;;  %v8770_v61 = vld [vmem:[%s11870_s1 + $0xeec] ss:$16 sps:$4 sm:$0xff]  }
 0x1ca   : > { %4683 = vmatpush1.bf16.msra.mxu0 %v8681_v5  ;;  %v8720_v5 = vld [vmem:[%s11870_s1 + $0xde8] ss:$16 sps:$4 sm:$0xff]  }
 0x1cb   : > { %5403 = vmatpush1.bf16.msra.mxu1 %v8684_v6  ;;  %4684 = vmatprep.subr.bf16.mxu0 %v8689_v8  ;;  %v8725_v6 = vld [vmem:[%s11870_s1 + $0xea4] ss:$16 sps:$4 sm:$0xff]   ;;  %v8728_v8 = vld [vmem:[%s11870_s1 + $0xe0c] ss:$16 sps:$4 sm:$0xff]  }
 0x1cc   : > { %5404 = vmatprep.subr.bf16.mxu1 %v8692_v3  ;;  %v8723_v3 = vld [vmem:[%s11870_s1 + $0xea0] ss:$16 sps:$4 sm:$0xff]  }
 0x1ce   : > { %4685 = vmatpush1.bf16.msra.mxu0 %v8687_v11  ;;  %v8726_v11 = vld [vmem:[%s11870_s1 + $0xe08] ss:$16 sps:$4 sm:$0xff]  }
 0x1cf   : > { %5405 = vmatpush1.bf16.msra.mxu1 %v8690_v12  ;;  %4727 = vmatprep.subr.bf16.mxu0 %v8695_v21  ;;  %v587_v12 = vpack.c.bf16 %v511_v2, %v492_v1  ;;  %v8731_v21 = vld [vmem:[%s11870_s1 + $0xec4] ss:$16 sps:$4 sm:$0xff]   ;;  %v8776_v2 = vld [vmem:[%s11870_s1 + $0xf0c] ss:$16 sps:$4 sm:$0xff]  }
 0x1d0   : > { %5406 = vmatprep.subr.bf16.mxu1 %v8698_v7  ;;  %v8734_v7 = vld [vmem:[%s11870_s1 + $0xe2c] ss:$16 sps:$4 sm:$0xff]   ;;  %v8773_v1 = vld [vmem:[%s11870_s1 + $0xfa4] ss:$16 sps:$4 sm:$0xff]  }
 0x1d1   : > { %4687 = vmatmul.mubr.bf16.vlgmr.msra.gmra.mrb[0].mxu0 %v10870_v24 }
 0x1d2   : > { %4728 = vmatpush1.bf16.msra.mxu0 %v8693_v23  ;;  %4696 = vmatprep.mubr.bf16.mxu0 %v10889_v28  ;;  %v8729_v23 = vld [vmem:[%s11870_s1 + $0xec0] ss:$16 sps:$4 sm:$0xff]  }
 0x1d3   : > { %5407 = vmatpush1.bf16.msra.mxu1 %v8696_v25  ;;  %4729 = vmatprep.subr.bf16.mxu0 %v8701_v27  ;;  %v586_v25 = vpack.c.bf16 %v510_v17, %v491_v15  ;;  %v380_v27 = vld [vmem:[%s9303_s26 + $0x78] sm:$0xff]  ;;  %v8785_v15 = vld [vmem:[%s11870_s1 + $0xfe4] ss:$16 sps:$4 sm:$0xff]  }
 0x1d4   : > { %5408 = vmatprep.subr.bf16.mxu1 %v8704_v29  ;;  %v399_v29 = vld [vmem:[%s9303_s26 + $0x110] sm:$0xff]  ;;  %v8788_v17 = vld [vmem:[%s11870_s1 + $0xf4c] ss:$16 sps:$4 sm:$0xff]  }
 0x1d6   : > { %4730 = vmatpush1.bf16.msra.mxu0 %v8699_v26  ;;  %v8740_v26 = vld [vmem:[%s11870_s1 + $0xe4c] ss:$16 sps:$4 sm:$0xff]  }
 0x1d7   : > { %5409 = vmatpush1.bf16.msra.mxu1 %v8702_v32  ;;  %4731 = vmatprep.subr.bf16.mxu0 %v8707_v34  ;;  %v8735_v32 = vld [vmem:[%s11870_s1 + $0xee0] ss:$16 sps:$4 sm:$0xff]   ;;  %v532_v34 = vpack.c.bf16 %v399_v29, %v380_v27  ;;  %v418_v29 = vld [vmem:[%s9303_s26 + $0x1a8] sm:$0xff] }
 0x1d8   : > { %5410 = vmatprep.subr.bf16.mxu1 %v8710_v35  ;;  %v8743_v35 = vld [vmem:[%s11870_s1 + $0xf04] ss:$16 sps:$4 sm:$0xff]  }
 0x1d9   : > { %4697 = vmatmul.mubr.bf16.gmra.mrb[4].mxu0 %v10904_v44 }
 0x1da   : > { %4732 = vmatpush1.bf16.msra.mxu0 %v8705_v43  ;;  %4706 = vmatprep.mubr.bf16.mxu0 %v10923_v54  ;;  %v8749_v43 = vld [vmem:[%s11870_s1 + $0xf24] ss:$16 sps:$4 sm:$0xff]  }
 0x1db   : > { %5411 = vmatpush1.bf16.msra.mxu1 %v8708_v48  ;;  %4733 = vmatprep.subr.bf16.mxu0 %v8713_v49  ;;  %v8750_v48 = vld [vmem:[%s11870_s1 + $0xe88] ss:$16 sps:$4 sm:$0xff]   ;;  %v8758_v49 = vld [vmem:[%s11870_s1 + $0xeac] ss:$16 sps:$4 sm:$0xff]  }
 0x1dc   : > { %5412 = vmatprep.subr.bf16.mxu1 %v8716_v50  ;;  %v8753_v50 = vld [vmem:[%s11870_s1 + $0xf40] ss:$16 sps:$4 sm:$0xff]  }
 0x1de   : > { %4734 = vmatpush1.bf16.msra.mxu0 %v8711_v51  ;;  %v8756_v51 = vld [vmem:[%s11870_s1 + $0xea8] ss:$16 sps:$4 sm:$0xff]  }
 0x1df   : > { %5413 = vmatpush1.bf16.msra.mxu1 %v8714_v52  ;;  %4735 = vmatprep.subr.bf16.mxu0 %v8719_v56  ;;  %v8761_v52 = vld [vmem:[%s11870_s1 + $0xf64] ss:$16 sps:$4 sm:$0xff]   ;;  %v8759_v56 = vld [vmem:[%s11870_s1 + $0xf60] ss:$16 sps:$4 sm:$0xff]  }
 0x1e0   : > { %5414 = vmatprep.subr.bf16.mxu1 %v8722_v57  ;;  %v8762_v57 = vld [vmem:[%s11870_s1 + $0xec8] ss:$16 sps:$4 sm:$0xff]  }
 0x1e1   : > { %4707 = vmatmul.mubr.bf16.gmra.mrb[8].mxu0 %v10938_v0 }
 0x1e2   : > { %4736 = vmatpush1.bf16.msra.mxu0 %v8717_v63  ;;  %4716 = vmatprep.mubr.bf16.mxu0 %v587_v12  ;;  %v8765_v63 = vld [vmem:[%s11870_s1 + $0xf80] ss:$16 sps:$4 sm:$0xff]  }
 0x1e3   : > { %5415 = vmatpush1.bf16.msra.mxu1 %v8720_v5  ;;  %4737 = vmatprep.subr.bf16.mxu0 %v8725_v6  ;;  %v8771_v5 = vld [vmem:[%s11870_s1 + $0xfa0] ss:$16 sps:$4 sm:$0xff]   ;;  %v8774_v6 = vld [vmem:[%s11870_s1 + $0xf08] ss:$16 sps:$4 sm:$0xff]  }
 0x1e4   : > { %5457 = vmatprep.subr.bf16.mxu1 %v8728_v8  ;;  %v8779_v8 = vld [vmem:[%s11870_s1 + $0xfc4] ss:$16 sps:$4 sm:$0xff]  }
 0x1e6   : > { %5417 = vmatmul.mubr.bf16.vlgmr.msra.gmra.mrb[16].mxu1 %v10870_v24  ;;  %4738 = vmatpush1.bf16.msra.mxu0 %v8723_v3  ;;  %v8738_v24 = vld [vmem:[%s11870_s1 + $0xe48] ss:$16 sps:$4 sm:$0xff]   ;;  %v8782_v3 = vld [vmem:[%s11870_s1 + $0xf2c] ss:$16 sps:$4 sm:$0xff]  }
 0x1e7   : > { %5458 = vmatpush1.bf16.msra.mxu1 %v8726_v11  ;;  %4739 = vmatprep.subr.bf16.mxu0 %v8731_v21  ;;  %v8777_v11 = vld [vmem:[%s11870_s1 + $0xfc0] ss:$16 sps:$4 sm:$0xff]  }
 0x1e8   : > { %5459 = vmatprep.subr.bf16.mxu1 %v8734_v7  ;;  %5426 = vmatprep.mubr.bf16.mxu1 %v10889_v28  ;;  %v8744_v28 = vld [vmem:[%s11870_s1 + $0xe68] ss:$16 sps:$4 sm:$0xff]   ;;  %v8783_v21 = vld [vmem:[%s11870_s1 + $0xfe0] ss:$16 sps:$4 sm:$0xff]  }
 0x1e9   : > { %4717 = vmatmul.mubr.bf16.gmra.mrb[12].mxu0 %v586_v25  ;;  %v8786_v7 = vld [vmem:[%s11870_s1 + $0xf48] ss:$16 sps:$4 sm:$0xff]  }
 0x1ea   : > { %4740 = vmatpush1.bf16.msra.mxu0 %v8729_v23  ;;  %4759 = vmatprep.mubr.bf16.mxu0 %v532_v34  ;;  %v379_v23 = vld [vmem:[%s9303_s26 + $0x70] sm:$0xff] }
 0x1eb   : > { %5460 = vmatpush1.bf16.msra.mxu1 %v8732_v14  ;;  %4741 = vmatprep.subr.bf16.mxu0 %v8737_v20  ;;  %v398_v14 = vld [vmem:[%s9303_s26 + $0x108] sm:$0xff]  ;;  %v8791_v20 = vld [vmem:[%s11870_s1 + $0x1004] ss:$16 sps:$4 sm:$0xff]  }
 0x1ec   : > { %5461 = vmatprep.subr.bf16.mxu1 %v8740_v26  ;;  %v11095_v27 = vpack.c.bf16 %v398_v14, %v379_v23  ;;  %v437_v26 = vld [vmem:[%s9303_s26 + $0x240] sm:$0xff]  ;;  %v512_v14 = vld [vmem:[%s9303_s26 + $0x498] sm:$0xff] }
 0x1ed   : > { %v493_v23 = vld [vmem:[%s9303_s26 + $0x400] sm:$0xff] }
 0x1ee   : > { %5427 = vmatmul.mubr.bf16.gmra.mrb[20].mxu1 %v10904_v44  ;;  %4742 = vmatpush1.bf16.msra.mxu0 %v8735_v32  ;;  %v8755_v44 = vld [vmem:[%s11870_s1 + $0xf44] ss:$16 sps:$4 sm:$0xff]   ;;  %v8789_v32 = vld [vmem:[%s11870_s1 + $0x1000] ss:$16 sps:$4 sm:$0xff]  }
 0x1ef   : > { %5462 = vmatpush1.bf16.msra.mxu1 %v8738_v24  ;;  %4743 = vmatprep.subr.bf16.mxu0 %v8743_v35  ;;  %v8792_v24 = vld [vmem:[%s11870_s1 + $0xf68] ss:$16 sps:$4 sm:$0xff]   ;;  %v8800_v35 = vld [vmem:[%s11870_s1 + $0xf8c] ss:$16 sps:$4 sm:$0xff]  }
 0x1f0   : > { %5463 = vmatprep.subr.bf16.mxu1 %v8746_v37  ;;  %5436 = vmatprep.mubr.bf16.mxu1 %v10923_v54  ;;  %v8764_v54 = vld [vmem:[%s11870_s1 + $0xecc] ss:$16 sps:$4 sm:$0xff]   ;;  %v11111_v37 = vpack.c.bf16 %v437_v26, %v418_v29  ;;  %v588_v29 = vpack.c.bf16 %v512_v14, %v493_v23  ;;  %v8881_v23 = vld [vmem:[%s11870_s1 + $0x11e4] ss:$16 sps:$4 sm:$0xff]  }
 0x1f1   : > { %v382_v26 = vld [vmem:[%s9303_s26 + $0x88] sm:$0xff] }
 0x1f2   : > { %4744 = vmatpush1.bf16.msra.mxu0 %v8741_v41  ;;  %v8795_v41 = vld [vmem:[%s11870_s1 + $0x1020] ss:$16 sps:$4 sm:$0xff]   ;;  %v8884_v14 = vld [vmem:[%s11870_s1 + $0x114c] ss:$16 sps:$4 sm:$0xff]  }
 0x1f3   : > { %5464 = vmatpush1.bf16.msra.mxu1 %v8744_v28  ;;  %4745 = vmatprep.subr.bf16.mxu0 %v8749_v43  ;;  %v8798_v28 = vld [vmem:[%s11870_s1 + $0xf88] ss:$16 sps:$4 sm:$0xff]   ;;  %v417_v43 = vld [vmem:[%s9303_s26 + $0x1a0] sm:$0xff] }
 0x1f4   : > { %5465 = vmatprep.subr.bf16.mxu1 %v8752_v46  ;;  %v436_v46 = vld [vmem:[%s9303_s26 + $0x238] sm:$0xff] }
 0x1f6   : > { %5437 = vmatmul.mubr.bf16.gmra.mrb[24].mxu1 %v10938_v0  ;;  %4746 = vmatpush1.bf16.msra.mxu0 %v8747_v47  ;;  %v8768_v0 = vld [vmem:[%s11870_s1 + $0xee8] ss:$16 sps:$4 sm:$0xff]   ;;  %v8803_v47 = vld [vmem:[%s11870_s1 + $0x1044] ss:$16 sps:$4 sm:$0xff]  }
 0x1f7   : > { %5466 = vmatpush1.bf16.msra.mxu1 %v8750_v48  ;;  %4747 = vmatprep.subr.bf16.mxu0 %v8755_v44  ;;  %v8806_v48 = vld [vmem:[%s11870_s1 + $0xfac] ss:$16 sps:$4 sm:$0xff]   ;;  %v11129_v44 = vpack.c.bf16 %v436_v46, %v417_v43  ;;  %v8834_v43 = vld [vmem:[%s11870_s1 + $0x1048] ss:$16 sps:$4 sm:$0xff]   ;;  %v8839_v46 = vld [vmem:[%s11870_s1 + $0x1104] ss:$16 sps:$4 sm:$0xff]  }
 0x1f8   : > { %5467 = vmatprep.subr.bf16.mxu1 %v8758_v49  ;;  %5446 = vmatprep.mubr.bf16.mxu1 %v587_v12  ;;  %v8780_v12 = vld [vmem:[%s11870_s1 + $0xf28] ss:$16 sps:$4 sm:$0xff]  }
 0x1f9   : > { %v456_v49 = vld [vmem:[%s9303_s26 + $0x2d8] sm:$0xff] }
 0x1fa   : > { %4748 = vmatpush1.bf16.msra.mxu0 %v8753_v50  ;;  %v475_v50 = vld [vmem:[%s9303_s26 + $0x370] sm:$0xff] }
 0x1fb   : > { %5468 = vmatpush1.bf16.msra.mxu1 %v8756_v51  ;;  %4749 = vmatprep.subr.bf16.mxu0 %v8761_v52  ;;  %v8801_v51 = vld [vmem:[%s11870_s1 + $0x1040] ss:$16 sps:$4 sm:$0xff]   ;;  %v8804_v52 = vld [vmem:[%s11870_s1 + $0xfa8] ss:$16 sps:$4 sm:$0xff]  }
 0x1fc   : > { %5469 = vmatprep.subr.bf16.mxu1 %v8764_v54  ;;  %v8809_v54 = vld [vmem:[%s11870_s1 + $0x1064] ss:$16 sps:$4 sm:$0xff]  }
 0x1fe   : > { %5447 = vmatmul.mubr.bf16.gmra.mrb[28].mxu1 %v586_v25  ;;  %4750 = vmatpush1.bf16.msra.mxu0 %v8759_v56  ;;  %v8794_v25 = vld [vmem:[%s11870_s1 + $0xf6c] ss:$16 sps:$4 sm:$0xff]  }
 0x1ff   : > { %5470 = vmatpush1.bf16.msra.mxu1 %v8762_v57  ;;  %4751 = vmatprep.subr.bf16.mxu0 %v8767_v58  ;;  %v8812_v56 = vld [vmem:[%s11870_s1 + $0xfcc] ss:$16 sps:$4 sm:$0xff]   ;;  %v11145_v57 = vpack.c.bf16 %v475_v50, %v456_v49  ;;  %v8807_v58 = vld [vmem:[%s11870_s1 + $0x1060] ss:$16 sps:$4 sm:$0xff]   ;;  %v8845_v49 = vld [vmem:[%s11870_s1 + $0x1124] ss:$16 sps:$4 sm:$0xff]  }
 0x200   : > { %5471 = vmatprep.subr.bf16.mxu1 %v8770_v61  ;;  %5489 = vmatprep.mubr.bf16.mxu1 %v532_v34  ;;  %v8797_v34 = vld [vmem:[%s11870_s1 + $0x1024] ss:$16 sps:$4 sm:$0xff]   ;;  %v8810_v61 = vld [vmem:[%s11870_s1 + $0xfc8] ss:$16 sps:$4 sm:$0xff]   ;;  %v8843_v50 = vld [vmem:[%s11870_s1 + $0x1120] ss:$16 sps:$4 sm:$0xff]  }
 0x202   : > { %4752 = vmatpush1.bf16.msra.mxu0 %v8765_v63  ;;  %v455_v63 = vld [vmem:[%s9303_s26 + $0x2d0] sm:$0xff] }
 0x203   : > { %5472 = vmatpush1.bf16.msra.mxu1 %v8768_v0  ;;  %4753 = vmatprep.subr.bf16.mxu0 %v8773_v1  ;;  %v474_v0 = vld [vmem:[%s9303_s26 + $0x368] sm:$0xff]  ;;  %v8815_v1 = vld [vmem:[%s11870_s1 + $0x1084] ss:$16 sps:$4 sm:$0xff]  }
 0x204   : > { %5473 = vmatprep.subr.bf16.mxu1 %v8776_v2  ;;  %v8818_v2 = vld [vmem:[%s11870_s1 + $0xfec] ss:$16 sps:$4 sm:$0xff]  }
 0x206   : > { %4754 = vmatpush1.bf16.msra.mxu0 %v8771_v5  ;;  %v11163_v5 = vpack.c.bf16 %v474_v0, %v455_v63  ;;  %v8855_v63 = vld [vmem:[%s11870_s1 + $0x1160] ss:$16 sps:$4 sm:$0xff]   ;;  %v8858_v0 = vld [vmem:[%s11870_s1 + $0x10c8] ss:$16 sps:$4 sm:$0xff]  }
 0x207   : > { %5474 = vmatpush1.bf16.msra.mxu1 %v8774_v6  ;;  %4755 = vmatprep.subr.bf16.mxu0 %v8779_v8  ;;  %v494_v6 = vld [vmem:[%s9303_s26 + $0x408] sm:$0xff]  ;;  %v513_v8 = vld [vmem:[%s9303_s26 + $0x4a0] sm:$0xff] }
 0x208   : > { %5475 = vmatprep.subr.bf16.mxu1 %v8782_v3  ;;  %v8813_v3 = vld [vmem:[%s11870_s1 + $0x1080] ss:$16 sps:$4 sm:$0xff]  }
 0x20a   : > { %4756 = vmatpush1.bf16.msra.mxu0 %v8777_v11  ;;  %v8816_v11 = vld [vmem:[%s11870_s1 + $0xfe8] ss:$16 sps:$4 sm:$0xff]  }
 0x20b   : > { %5476 = vmatpush1.bf16.msra.mxu1 %v8780_v12  ;;  %4757 = vmatprep.subr.bf16.mxu0 %v8785_v15  ;;  %v8821_v12 = vld [vmem:[%s11870_s1 + $0x10a4] ss:$16 sps:$4 sm:$0xff]   ;;  %v8824_v15 = vld [vmem:[%s11870_s1 + $0x100c] ss:$16 sps:$4 sm:$0xff]  }
 0x20c   : > { %5477 = vmatprep.subr.bf16.mxu1 %v8788_v17  ;;  %v11179_v17 = vpack.c.bf16 %v513_v8, %v494_v6  ;;  %v8864_v6 = vld [vmem:[%s11870_s1 + $0x10e8] ss:$16 sps:$4 sm:$0xff]   ;;  %v8869_v8 = vld [vmem:[%s11870_s1 + $0x11a4] ss:$16 sps:$4 sm:$0xff]  }
 0x20e   : > { %4758 = vmatpush1.bf16.msra.mxu0 %v8783_v21  ;;  %v8819_v21 = vld [vmem:[%s11870_s1 + $0x10a0] ss:$16 sps:$4 sm:$0xff]  }
 0x20f   : > { %5478 = vmatpush1.bf16.msra.mxu1 %v8786_v7  ;;  %4800 = vmatprep.subr.bf16.mxu0 %v8791_v20  ;;  %v8822_v7 = vld [vmem:[%s11870_s1 + $0x1008] ss:$16 sps:$4 sm:$0xff]   ;;  %v8827_v20 = vld [vmem:[%s11870_s1 + $0x10c4] ss:$16 sps:$4 sm:$0xff]  }
 0x210   : > { %5479 = vmatprep.subr.bf16.mxu1 %v8794_v25  ;;  %v8830_v25 = vld [vmem:[%s11870_s1 + $0x102c] ss:$16 sps:$4 sm:$0xff]  }
 0x211   : > { %4760 = vmatmul.mubr.bf16.vlgmr.msra.gmra.mrb[0].mxu0 %v11095_v27 }
 0x212   : > { %4801 = vmatpush1.bf16.msra.mxu0 %v8789_v32  ;;  %4769 = vmatprep.mubr.bf16.mxu0 %v11111_v37  ;;  %v401_v32 = vld [vmem:[%s9303_s26 + $0x120] sm:$0xff] }
 0x213   : > { %5480 = vmatpush1.bf16.msra.mxu1 %v8792_v24  ;;  %4802 = vmatprep.subr.bf16.mxu0 %v8797_v34  ;;  %v8825_v24 = vld [vmem:[%s11870_s1 + $0x10c0] ss:$16 sps:$4 sm:$0xff]   ;;  %v8828_v34 = vld [vmem:[%s11870_s1 + $0x1028] ss:$16 sps:$4 sm:$0xff]  }
 0x214   : > { %5481 = vmatprep.subr.bf16.mxu1 %v8800_v35  ;;  %v8833_v35 = vld [vmem:[%s11870_s1 + $0x10e4] ss:$16 sps:$4 sm:$0xff]  }
 0x216   : > { %4803 = vmatpush1.bf16.msra.mxu0 %v8795_v41  ;;  %v534_v41 = vpack.c.bf16 %v401_v32, %v382_v26  ;;  %v400_v26 = vld [vmem:[%s9303_s26 + $0x118] sm:$0xff] }
 0x217   : > { %5482 = vmatpush1.bf16.msra.mxu1 %v8798_v28  ;;  %4804 = vmatprep.subr.bf16.mxu0 %v8803_v47  ;;  %v8831_v28 = vld [vmem:[%s11870_s1 + $0x10e0] ss:$16 sps:$4 sm:$0xff]   ;;  %v8887_v32 = vld [vmem:[%s11870_s1 + $0x116c] ss:$16 sps:$4 sm:$0xff]  }
 0x218   : > { %5483 = vmatprep.subr.bf16.mxu1 %v8806_v48  ;;  %v8837_v47 = vld [vmem:[%s11870_s1 + $0x1100] ss:$16 sps:$4 sm:$0xff]   ;;  %v8840_v48 = vld [vmem:[%s11870_s1 + $0x1068] ss:$16 sps:$4 sm:$0xff]  }
 0x219   : > { %4770 = vmatmul.mubr.bf16.gmra.mrb[4].mxu0 %v11129_v44 }
 0x21a   : > { %4805 = vmatpush1.bf16.msra.mxu0 %v8801_v51  ;;  %4779 = vmatprep.mubr.bf16.mxu0 %v11145_v57  ;;  %v8846_v51 = vld [vmem:[%s11870_s1 + $0x1088] ss:$16 sps:$4 sm:$0xff]  }
 0x21b   : > { %5484 = vmatpush1.bf16.msra.mxu1 %v8804_v52  ;;  %4806 = vmatprep.subr.bf16.mxu0 %v8809_v54  ;;  %v8851_v52 = vld [vmem:[%s11870_s1 + $0x1144] ss:$16 sps:$4 sm:$0xff]   ;;  %v8854_v54 = vld [vmem:[%s11870_s1 + $0x10ac] ss:$16 sps:$4 sm:$0xff]  }
 0x21c   : > { %5485 = vmatprep.subr.bf16.mxu1 %v8812_v56  ;;  %v8849_v56 = vld [vmem:[%s11870_s1 + $0x1140] ss:$16 sps:$4 sm:$0xff]  }
 0x21e   : > { %4807 = vmatpush1.bf16.msra.mxu0 %v8807_v58  ;;  %v8857_v58 = vld [vmem:[%s11870_s1 + $0x1164] ss:$16 sps:$4 sm:$0xff]  }
 0x21f   : > { %5486 = vmatpush1.bf16.msra.mxu1 %v8810_v61  ;;  %4808 = vmatprep.subr.bf16.mxu0 %v8815_v1  ;;  %v8860_v61 = vld [vmem:[%s11870_s1 + $0x10cc] ss:$16 sps:$4 sm:$0xff]   ;;  %v8863_v1 = vld [vmem:[%s11870_s1 + $0x1184] ss:$16 sps:$4 sm:$0xff]  }
 0x220   : > { %5487 = vmatprep.subr.bf16.mxu1 %v8818_v2  ;;  %v8866_v2 = vld [vmem:[%s11870_s1 + $0x10ec] ss:$16 sps:$4 sm:$0xff]  }
 0x221   : > { %4780 = vmatmul.mubr.bf16.gmra.mrb[8].mxu0 %v11163_v5 }
 0x222   : > { %4809 = vmatpush1.bf16.msra.mxu0 %v8813_v3  ;;  %4789 = vmatprep.mubr.bf16.mxu0 %v11179_v17  ;;  %v8872_v3 = vld [vmem:[%s11870_s1 + $0x110c] ss:$16 sps:$4 sm:$0xff]  }
 0x223   : > { %5488 = vmatpush1.bf16.msra.mxu1 %v8816_v11  ;;  %4810 = vmatprep.subr.bf16.mxu0 %v8821_v12  ;;  %v8867_v11 = vld [vmem:[%s11870_s1 + $0x11a0] ss:$16 sps:$4 sm:$0xff]   ;;  %v8870_v12 = vld [vmem:[%s11870_s1 + $0x1108] ss:$16 sps:$4 sm:$0xff]  }
 0x224   : > { %5530 = vmatprep.subr.bf16.mxu1 %v8824_v15  ;;  %v8875_v15 = vld [vmem:[%s11870_s1 + $0x11c4] ss:$16 sps:$4 sm:$0xff]  }
 0x226   : > { %5490 = vmatmul.mubr.bf16.vlgmr.msra.gmra.mrb[16].mxu1 %v11095_v27  ;;  %4811 = vmatpush1.bf16.msra.mxu0 %v8819_v21  ;;  %v8836_v27 = vld [vmem:[%s11870_s1 + $0x104c] ss:$16 sps:$4 sm:$0xff]   ;;  %v8873_v21 = vld [vmem:[%s11870_s1 + $0x11c0] ss:$16 sps:$4 sm:$0xff]  }
 0x227   : > { %5531 = vmatpush1.bf16.msra.mxu1 %v8822_v7  ;;  %4812 = vmatprep.subr.bf16.mxu0 %v8827_v20  ;;  %v8876_v7 = vld [vmem:[%s11870_s1 + $0x1128] ss:$16 sps:$4 sm:$0xff]   ;;  %v8879_v20 = vld [vmem:[%s11870_s1 + $0x11e0] ss:$16 sps:$4 sm:$0xff]  }
 0x228   : > { %5532 = vmatprep.subr.bf16.mxu1 %v8830_v25  ;;  %5499 = vmatprep.mubr.bf16.mxu1 %v11111_v37  ;;  %v8842_v37 = vld [vmem:[%s11870_s1 + $0x106c] ss:$16 sps:$4 sm:$0xff]   ;;  %v8882_v25 = vld [vmem:[%s11870_s1 + $0x1148] ss:$16 sps:$4 sm:$0xff]  }
 0x229   : > { %4790 = vmatmul.mubr.bf16.gmra.mrb[12].mxu0 %v588_v29 }
 0x22a   : > { %4813 = vmatpush1.bf16.msra.mxu0 %v8825_v24  ;;  %4832 = vmatprep.mubr.bf16.mxu0 %v534_v41  ;;  %v420_v24 = vld [vmem:[%s9303_s26 + $0x1b8] sm:$0xff] }
 0x22b   : > { %5533 = vmatpush1.bf16.msra.mxu1 %v8828_v34  ;;  %4814 = vmatprep.subr.bf16.mxu0 %v8833_v35  ;;  %v439_v34 = vld [vmem:[%s9303_s26 + $0x250] sm:$0xff]  ;;  %v8917_v35 = vld [vmem:[%s11872_s3 + $0x4] ss:$8 sps:$4 sm:$0xff]  }
 0x22c   : > { %5534 = vmatprep.subr.bf16.mxu1 %v8836_v27 }
 0x22e   : > { %5500 = vmatmul.mubr.bf16.gmra.mrb[20].mxu1 %v11129_v44  ;;  %4815 = vmatpush1.bf16.msra.mxu0 %v8831_v28  ;;  %v8848_v44 = vld [vmem:[%s11870_s1 + $0x108c] ss:$16 sps:$4 sm:$0xff]   ;;  %v11334_v28 = vpack.c.bf16 %v439_v34, %v420_v24 }
 0x22f   : > { %5535 = vmatpush1.bf16.msra.mxu1 %v8834_v43  ;;  %4816 = vmatprep.subr.bf16.mxu0 %v8839_v46  ;;  %v8890_v43 = vld [vmem:[%s11870_s1 + $0x118c] ss:$16 sps:$4 sm:$0xff]   ;;  %v8915_v46 = vld [vmem:[%s11872_s3] ss:$8 sps:$4 sm:$0xff]  }
 0x230   : > { %5536 = vmatprep.subr.bf16.mxu1 %v8842_v37  ;;  %5509 = vmatprep.mubr.bf16.mxu1 %v11145_v57  ;;  %v8852_v57 = vld [vmem:[%s11870_s1 + $0x10a8] ss:$16 sps:$4 sm:$0xff]   ;;  %v8920_v37 = vld [vmem:[%s11872_s3 + $0x14] ss:$8 sps:$4 sm:$0xff]   ;;  %v8935_v24 = vld [vmem:[%s11872_s3 + $0x64] ss:$8 sps:$4 sm:$0xff]  }
 0x232   : > { %4817 = vmatpush1.bf16.msra.mxu0 %v8837_v47  ;;  %v8888_v47 = vld [vmem:[%s11870_s1 + $0x1188] ss:$16 sps:$4 sm:$0xff]  }
 0x233   : > { %5537 = vmatpush1.bf16.msra.mxu1 %v8840_v48  ;;  %4818 = vmatprep.subr.bf16.mxu0 %v8845_v49  ;;  %v419_v48 = vld [vmem:[%s9303_s26 + $0x1b0] sm:$0xff]  ;;  %v438_v49 = vld [vmem:[%s9303_s26 + $0x248] sm:$0xff] }
 0x234   : > { %5538 = vmatprep.subr.bf16.mxu1 %v8848_v44  ;;  %v8893_v44 = vld [vmem:[%s11870_s1 + $0x11ac] ss:$16 sps:$4 sm:$0xff]  }
 0x236   : > { %5510 = vmatmul.mubr.bf16.gmra.mrb[24].mxu1 %v11163_v5  ;;  %4819 = vmatpush1.bf16.msra.mxu0 %v8843_v50  ;;  %v8861_v5 = vld [vmem:[%s11870_s1 + $0x1180] ss:$16 sps:$4 sm:$0xff]   ;;  %v458_v50 = vld [vmem:[%s9303_s26 + $0x2e8] sm:$0xff] }
 0x237   : > { %5539 = vmatpush1.bf16.msra.mxu1 %v8846_v51  ;;  %4820 = vmatprep.subr.bf16.mxu0 %v8851_v52  ;;  %v477_v51 = vld [vmem:[%s9303_s26 + $0x380] sm:$0xff]  ;;  %v8918_v52 = vld [vmem:[%s11872_s3 + $0x10] ss:$8 sps:$4 sm:$0xff]  }
 0x238   : > { %5540 = vmatprep.subr.bf16.mxu1 %v8854_v54  ;;  %5519 = vmatprep.mubr.bf16.mxu1 %v11179_v17  ;;  %v8878_v17 = vld [vmem:[%s11870_s1 + $0x112c] ss:$16 sps:$4 sm:$0xff]  }
 0x239   : > { %v8923_v54 = vld [vmem:[%s11872_s3 + $0x24] ss:$8 sps:$4 sm:$0xff]  }
 0x23a   : > { %4821 = vmatpush1.bf16.msra.mxu0 %v8849_v56  ;;  %v11363_v56 = vpack.c.bf16 %v438_v49, %v419_v48  ;;  %v8941_v48 = vld [vmem:[%s11872_s3 + $0x84] ss:$8 sps:$4 sm:$0xff]   ;;  %v8909_v49 = vld [vmem:[%s11870_s1 + $0x1268] ss:$16 sps:$4 sm:$0xff]  }
 0x23b   : > { %5541 = vmatpush1.bf16.msra.mxu1 %v8852_v57  ;;  %4822 = vmatprep.subr.bf16.mxu0 %v8857_v58  ;;  %v8891_v57 = vld [vmem:[%s11870_s1 + $0x11a8] ss:$16 sps:$4 sm:$0xff]   ;;  %v11368_v58 = vpack.c.bf16 %v477_v51, %v458_v50 }
 0x23c   : > { %5542 = vmatprep.subr.bf16.mxu1 %v8860_v61  ;;  %v8896_v61 = vld [vmem:[%s11870_s1 + $0x11cc] ss:$16 sps:$4 sm:$0xff]   ;;  %v8939_v51 = vld [vmem:[%s11872_s3 + $0x80] ss:$8 sps:$4 sm:$0xff]  }
 0x23e   : > { %5520 = vmatmul.mubr.bf16.gmra.mrb[28].mxu1 %v588_v29  ;;  %4823 = vmatpush1.bf16.msra.mxu0 %v8855_v63  ;;  %v381_v29 = vld [vmem:[%s9303_s26 + $0x80] sm:$0xff] }
 0x23f   : > { %5543 = vmatpush1.bf16.msra.mxu1 %v8858_v0  ;;  %4824 = vmatprep.subr.bf16.mxu0 %v8863_v1  ;;  %v11329_v27 = vpack.c.bf16 %v400_v26, %v381_v29  ;;  %v8921_v63 = vld [vmem:[%s11872_s3 + $0x20] ss:$8 sps:$4 sm:$0xff]   ;;  %v8926_v0 = vld [vmem:[%s11872_s3 + $0x34] ss:$8 sps:$4 sm:$0xff]  }
 0x240   : > { %5544 = vmatprep.subr.bf16.mxu1 %v8866_v2  ;;  %5562 = vmatprep.mubr.bf16.mxu1 %v534_v41  ;;  %v8885_v41 = vld [vmem:[%s11870_s1 + $0x1168] ss:$16 sps:$4 sm:$0xff]   ;;  %v457_v2 = vld [vmem:[%s9303_s26 + $0x2e0] sm:$0xff]  ;;  %v8905_v26 = vld [vmem:[%s11870_s1 + $0x122c] ss:$16 sps:$4 sm:$0xff]  }
 0x241   : > { %v8894_v1 = vld [vmem:[%s11870_s1 + $0x11c8] ss:$16 sps:$4 sm:$0xff]  }
 0x242   : > { %4825 = vmatpush1.bf16.msra.mxu0 %v8861_v5  ;;  %v476_v5 = vld [vmem:[%s9303_s26 + $0x378] sm:$0xff] }
 0x243   : > { %5545 = vmatpush1.bf16.msra.mxu1 %v8864_v6  ;;  %4826 = vmatprep.subr.bf16.mxu0 %v8869_v8  ;;  %v8899_v6 = vld [vmem:[%s11870_s1 + $0x11ec] ss:$16 sps:$4 sm:$0xff]   ;;  %v8900_v29 = vld [vmem:[%s11870_s1 + $0x1208] ss:$16 sps:$4 sm:$0xff]  }
 0x244   : > { %5546 = vmatprep.subr.bf16.mxu1 %v8872_v3  ;;  %v496_v8 = vld [vmem:[%s9303_s26 + $0x418] sm:$0xff]  ;;  %v515_v3 = vld [vmem:[%s9303_s26 + $0x4b0] sm:$0xff] }
 0x246   : > { %4827 = vmatpush1.bf16.msra.mxu0 %v8867_v11  ;;  %v8924_v11 = vld [vmem:[%s11872_s3 + $0x30] ss:$8 sps:$4 sm:$0xff]  }
 0x247   : > { %5547 = vmatpush1.bf16.msra.mxu1 %v8870_v12  ;;  %4828 = vmatprep.subr.bf16.mxu0 %v8875_v15  ;;  %v8929_v12 = vld [vmem:[%s11872_s3 + $0x44] ss:$8 sps:$4 sm:$0xff]   ;;  %v571_v15 = vpack.c.bf16 %v476_v5, %v457_v2 }
 0x248   : > { %5548 = vmatprep.subr.bf16.mxu1 %v8878_v17  ;;  %v8897_v17 = vld [vmem:[%s11870_s1 + $0x11e8] ss:$16 sps:$4 sm:$0xff]   ;;  %v8965_v2 = vld [vmem:[%s11872_s3 + $0x104] ss:$8 sps:$4 sm:$0xff]  }
 0x249   : > { %v9011_v5 = vld [vmem:[%s11874_s5 + $0x40] sm:$0xff]  }
 0x24a   : > { %4829 = vmatpush1.bf16.msra.mxu0 %v8873_v21  ;;  %v591_v21 = vpack.c.bf16 %v515_v3, %v496_v8  ;;  %v9013_v8 = vld [vmem:[%s11874_s5 + $0x48] sm:$0xff]  }
 0x24b   : > { %5549 = vmatpush1.bf16.msra.mxu1 %v8876_v7  ;;  %4830 = vmatprep.subr.bf16.mxu0 %v8881_v23  ;;  %v8902_v7 = vld [vmem:[%s11870_s1 + $0x120c] ss:$16 sps:$4 sm:$0xff]   ;;  %v8927_v23 = vld [vmem:[%s11872_s3 + $0x40] ss:$8 sps:$4 sm:$0xff]  }
 0x24c   : > { %5550 = vmatprep.subr.bf16.mxu1 %v8884_v14  ;;  %v8932_v14 = vld [vmem:[%s11872_s3 + $0x54] ss:$8 sps:$4 sm:$0xff]   ;;  %v9014_v3 = vld [vmem:[%s11874_s5 + $0x8] sm:$0xff]  }
 0x24e   : > { %4831 = vmatpush1.bf16.msra.mxu0 %v8879_v20  ;;  %v495_v20 = vld [vmem:[%s9303_s26 + $0x410] sm:$0xff] }
 0x24f   : > { %5551 = vmatpush1.bf16.msra.mxu1 %v8882_v25  ;;  %6120 = vmatprep.subr.bf16.mxu0 %v8917_v35  ;;  %v514_v25 = vld [vmem:[%s9303_s26 + $0x4a8] sm:$0xff]  ;;  %s9067_s26 = scalar_lea.vmem %s11821_s20, 1024 }
 0x250   : > { %5552 = vmatprep.subr.bf16.mxu1 %v8887_v32  ;;  %v8930_v32 = vld [vmem:[%s11872_s3 + $0x50] ss:$8 sps:$4 sm:$0xff]   ;;  %v590_v34 = vpack.c.bf16 %v514_v25, %v495_v20  ;;  %v9021_v20 = vld [vmem:[%s11874_s5 + $0x68] sm:$0xff]   ;;  %p9068_p11 = scmp.ne.s32.totalorder %s11821_s20, %s9067_s26  ;;  %p9075_p1 = scmp.lt.s32.totalorder %s9073_s0, %s9067_s26 }
 0x251   : > { %4833 = vmatmul.mubr.bf16.vlgmr.msra.gmra.mrb[0].mxu0 %v11329_v27  ;;  %v8903_v35 = vld [vmem:[%s11870_s1 + $0x1228] ss:$16 sps:$4 sm:$0xff]  }
 0x252   : > { %4842 = vmatprep.mubr.bf16.mxu0 %v11334_v28  ;;  %6121 = vmatpush1.bf16.msra.mxu0 %v8915_v46  ;;  %v8911_v46 = vld [vmem:[%s11870_s1 + $0x126c] ss:$16 sps:$4 sm:$0xff]   ;;  %p9069_p12 = pnand %p9068_p11, %p9229_p5  ;;  %p9076_p2 = por %p9075_p1, %p9074_p0 }
 0x253   : > { %5553 = vmatpush1.bf16.msra.mxu1 %v8885_v41  ;;  %6122 = vmatprep.subr.bf16.mxu0 %v8920_v37  ;;  %v8908_v41 = vld [vmem:[%s11870_s1 + $0x124c] ss:$16 sps:$4 sm:$0xff]  }
 0x254   : > { %5554 = vmatprep.subr.bf16.mxu1 %v8890_v43  ;;  %v8933_v43 = vld [vmem:[%s11872_s3 + $0x60] ss:$8 sps:$4 sm:$0xff]   ;;  %v8914_v37 = vld [vmem:[%s11870_s1 + $0x128c] ss:$16 sps:$4 sm:$0x7f]   ;;  %p9070_p13 = pneg %p9069_p12 }
 0x255   : > { %v4214_v50 = vand.u32 %v8914_v37, %v9289_v19  ;;  %v9022_v25 = vld [vmem:[%s11874_s5 + $0x28] sm:$0xff]  }
 0x256   : > { %6123 = vmatpush1.bf16.msra.mxu0 %v8918_v52  ;;  %v8944_v52 = vld [vmem:[%s11872_s3 + $0x94] ss:$8 sps:$4 sm:$0xff]   ;;  %p9077_p3 = pnand %p9076_p2, %p9070_p13 }
 0x257   : > { %5555 = vmatpush1.bf16.msra.mxu1 %v8888_v47  ;;  %6124 = vmatprep.subr.bf16.mxu0 %v8923_v54  ;;  %v8936_v47 = vld [vmem:[%s11872_s3 + $0x70] ss:$8 sps:$4 sm:$0xff]  }
 0x258   : > { %5556 = vmatprep.subr.bf16.mxu1 %v8893_v44  ;;  %v8912_v44 = vld [vmem:[%s11870_s1 + $0x1288] ss:$16 sps:$4 sm:$0x7f]  }
 0x259   : > { %4843 = vmatmul.mubr.bf16.gmra.mrb[4].mxu0 %v11363_v56  ;;  %v4211_v54 = vand.u32 %v8912_v44, %v9289_v19  ;;  %v8950_v19 = vld [vmem:[%s11872_s3 + $0xb4] ss:$8 sps:$4 sm:$0xff]  }
 0x25a   : > { %4852 = vmatprep.mubr.bf16.mxu0 %v11368_v58  ;;  %6125 = vmatpush1.bf16.msra.mxu0 %v8921_v63  ;;  %v8953_v63 = vld [vmem:[%s11872_s3 + $0xc4] ss:$8 sps:$4 sm:$0xff]  }
 0x25b   : > { %5557 = vmatpush1.bf16.msra.mxu1 %v8891_v57  ;;  %6126 = vmatprep.subr.bf16.mxu0 %v8926_v0  ;;  %v8947_v57 = vld [vmem:[%s11872_s3 + $0xa4] ss:$8 sps:$4 sm:$0xff]   ;;  %v8951_v0 = vld [vmem:[%s11872_s3 + $0xc0] ss:$8 sps:$4 sm:$0xff]  }
 0x25c   : > { %5558 = vmatprep.subr.bf16.mxu1 %v8896_v61  ;;  %v8948_v61 = vld [vmem:[%s11872_s3 + $0xb0] ss:$8 sps:$4 sm:$0xff]  }
 0x25e   : > { %6127 = vmatpush1.bf16.msra.mxu0 %v8924_v11  ;;  %v9015_v11 = vld [vmem:[%s11874_s5 + $0x50] sm:$0xff]  }
 0x25f   : > { %5559 = vmatpush1.bf16.msra.mxu1 %v8894_v1  ;;  %6128 = vmatprep.subr.bf16.mxu0 %v8929_v12  ;;  %v8956_v1 = vld [vmem:[%s11872_s3 + $0xd4] ss:$8 sps:$4 sm:$0xff]  }
 0x260   : > { %5560 = vmatprep.subr.bf16.mxu1 %v8899_v6  ;;  %v9012_v6 = vld [vmem:[%s11874_s5] sm:$0xff]   ;;  %v9016_v12 = vld [vmem:[%s11874_s5 + $0x10] sm:$0xff]  }
 0x261   : > { %4853 = vmatmul.mubr.bf16.gmra.mrb[8].mxu0 %v571_v15 }
 0x262   : > { %4862 = vmatprep.mubr.bf16.mxu0 %v591_v21  ;;  %6129 = vmatpush1.bf16.msra.mxu0 %v8927_v23  ;;  %v9020_v23 = vld [vmem:[%s11874_s5 + $0x20] sm:$0xff]  }
 0x263   : > { %5561 = vmatpush1.bf16.msra.mxu1 %v8897_v17  ;;  %6130 = vmatprep.subr.bf16.mxu0 %v8932_v14  ;;  %v9018_v17 = vld [vmem:[%s11874_s5 + $0x18] sm:$0xff]  }
 0x264   : > { %5603 = vmatprep.subr.bf16.mxu1 %v8902_v7  ;;  %v9019_v7 = vld [vmem:[%s11874_s5 + $0x60] sm:$0xff]  }
 0x266   : > { %5563 = vmatmul.mubr.bf16.vlgmr.msra.gmra.mrb[16].mxu1 %v11329_v27  ;;  %6131 = vmatpush1.bf16.msra.mxu0 %v8930_v32  ;;  %v8938_v27 = vld [vmem:[%s11872_s3 + $0x74] ss:$8 sps:$4 sm:$0xff]  }
 0x267   : > { %5572 = vmatprep.mubr.bf16.mxu1 %v11334_v28  ;;  %5604 = vmatpush1.bf16.msra.mxu1 %v8900_v29  ;;  %v8906_v28 = vld [vmem:[%s11870_s1 + $0x1248] ss:$16 sps:$4 sm:$0xff]  }
 0x268   : > { %5605 = vmatprep.subr.bf16.mxu1 %v8905_v26  ;;  %6132 = vmatprep.subr.bf16.mxu0 %v8935_v24  ;;  %v11564_v26 = vld [vmem:[%s11871_s2] sm:$0xf] }
 0x269   : > { %4863 = vmatmul.mubr.bf16.gmra.mrb[12].mxu0 %v590_v34 }
 0x26a   : > { %6133 = vmatpush1.bf16.msra.mxu0 %v8933_v43 }
 0x26b   : > { %5606 = vmatpush1.bf16.msra.mxu1 %v8903_v35  ;;  %6134 = vmatprep.subr.bf16.mxu0 %v8938_v27 }
 0x26c   : > { %5607 = vmatprep.subr.bf16.mxu1 %v8908_v41 }
 0x26e   : > { %5573 = vmatmul.mubr.bf16.gmra.mrb[20].mxu1 %v11363_v56  ;;  %6135 = vmatpush1.bf16.msra.mxu0 %v8936_v47  ;;  %v8942_v56 = vld [vmem:[%s11872_s3 + $0x90] ss:$8 sps:$4 sm:$0xff]  }
 0x26f   : > { %5582 = vmatprep.mubr.bf16.mxu1 %v11368_v58  ;;  %5608 = vmatpush1.bf16.msra.mxu1 %v8906_v28  ;;  %v8945_v58 = vld [vmem:[%s11872_s3 + $0xa0] ss:$8 sps:$4 sm:$0xff]  }
 0x270   : > { %5609 = vmatprep.subr.bf16.mxu1 %v8911_v46  ;;  %6136 = vmatprep.subr.bf16.mxu0 %v8941_v48 }
 0x272   : > { %6137 = vmatpush1.bf16.msra.mxu0 %v8939_v51 }
 0x273   : > { %5610 = vmatpush1.bf16.msra.mxu1 %v8909_v49  ;;  %6138 = vmatprep.subr.bf16.mxu0 %v8944_v52 }
 0x274   : > { %5611 = vmatprep.subr.bf16.mxu1 %v4214_v50 }
 0x276   : > { %5583 = vmatmul.mubr.bf16.gmra.mrb[24].mxu1 %v571_v15  ;;  %6139 = vmatpush1.bf16.msra.mxu0 %v8942_v56  ;;  %v9017_v15 = vld [vmem:[%s11874_s5 + $0x58] sm:$0xff]  }
 0x277   : > { %5592 = vmatprep.mubr.bf16.mxu1 %v591_v21  ;;  %5612 = vmatpush1.bf16.msra.mxu1 %v4211_v54  ;;  %v1191_v21 = vlaneseq }
 0x278   : > { %6140 = vmatprep.subr.bf16.mxu0 %v8947_v57  ;;  %7549 = vmatprep.subr.bf16.mxu1 %v9011_v5 }
 0x279   : > { %v11552_v14 = vshrl.u32 %v1191_v21, 7  ;;  %v8969_v21 = vld [vmem:[%s11872_s3 + $0x120] ss:$8 sps:$4 sm:$0xff]  }
 0x27a   : > { %6141 = vmatpush1.bf16.msra.mxu0 %v8945_v58 }
 0x27b   : > { %6142 = vmatprep.subr.bf16.mxu0 %v8950_v19  ;;  %v1193_v29 = vsub.s32 0, %v11552_v14  ;;  %v1197_v32 = vsub.s32 1, %v11552_v14 }
 0x27d   : > { %v11570_v24 = vrot.slane %v11564_v26, %v1193_v29 }
 0x27e   : > { %5593 = vmatmul.mubr.bf16.gmra.mrb[28].mxu1 %v590_v34  ;;  %6143 = vmatpush1.bf16.msra.mxu0 %v8948_v61  ;;  %v11575_v34 = vrot.slane %v11564_v26, %v1197_v32 }
 0x27f   : > { %5635 = vmatprep.mubr.bf16.mxu1 %v9131_v4  ;;  %6144 = vmatprep.subr.bf16.mxu0 %v8953_v63 }
 0x282   : > { %6145 = vmatpush1.bf16.msra.mxu0 %v8951_v0 }
 0x283   : > { %6146 = vmatprep.subr.bf16.mxu0 %v8956_v1 }
 0x286   : > { %7448 = vmatmul.mubr.msk.bf16.vlgmr.msra.gmra.mrb[16].mxu1 %vm4187_vm2, %v9321_v31  ;;  %v8954_v31 = vld [vmem:[%s11872_s3 + $0xd0] ss:$8 sps:$4 sm:$0xff]  }
 0x287   : > { %5645 = vmatprep.mubr.bf16.mxu1 %v9131_v4  ;;  %6147 = vmatpush1.bf16.msra.mxu0 %v8954_v31  ;;  %v8968_v31 = vld [vmem:[%s11872_s3 + $0x114] ss:$8 sps:$4 sm:$0xff]  }
 0x288   : > { %7550 = vmatpush3.bf16.msra.mxu1 %v9012_v6 }
 0x289   : > { %7551 = vmatprep.subr.bf16.mxu1 %v9013_v8 }
 0x28c   : > { %7552 = vmatpush3.bf16.msra.mxu1 %v9014_v3 }
 0x28d   : > { %7553 = vmatprep.subr.bf16.mxu1 %v9015_v11 }
 0x28e   : > { %7449 = vmatmul.mubr.msk.bf16.gmra.mrb[20].mxu1 %vm4187_vm2, %v9403_v59  ;;  %v8959_v59 = vld [vmem:[%s11872_s3 + $0xe4] ss:$8 sps:$4 sm:$0xff]  }
 0x28f   : > { %5655 = vmatprep.mubr.bf16.mxu1 %v9131_v4  ;;  %6148 = vmatprep.subr.bf16.mxu0 %v8959_v59 }
 0x290   : > { %7554 = vmatpush3.bf16.msra.mxu1 %v9016_v12 }
 0x291   : > { %7555 = vmatprep.subr.bf16.mxu1 %v9017_v15 }
 0x294   : > { %7556 = vmatpush3.bf16.msra.mxu1 %v9018_v17 }
 0x295   : > { %7557 = vmatprep.subr.bf16.mxu1 %v9019_v7 }
 0x296   : > { %7450 = vmatmul.mubr.msk.bf16.gmra.mrb[24].mxu1 %vm4187_vm2, %v9436_v10  ;;  %v8962_v10 = vld [vmem:[%s11872_s3 + $0xf4] ss:$8 sps:$4 sm:$0xff]  }
 0x297   : > { %5665 = vmatprep.mubr.bf16.mxu1 %v9131_v4  ;;  %v8957_v4 = vld [vmem:[%s11872_s3 + $0xe0] ss:$8 sps:$4 sm:$0xff]  }
 0x298   : > { %6149 = vmatpush1.bf16.msra.mxu0 %v8957_v4  ;;  %7558 = vmatpush3.bf16.msra.mxu1 %v9020_v23 }
 0x299   : > { %6150 = vmatprep.subr.bf16.mxu0 %v8962_v10  ;;  %7559 = vmatprep.subr.bf16.mxu1 %v9021_v20 }
 0x29c   : > { %7560 = vmatpush3.bf16.msra.mxu1 %v9022_v25  ;;  %v8974_v25 = vld [vmem:[%s11872_s3 + $0x134] ss:$8 sps:$4 sm:$0xff]  }
 0x29e   : > { %7451 = vmatmul.mubr.msk.bf16.gmra.mrb[28].mxu1 %vm4187_vm2, %v9467_v22  ;;  %v8960_v22 = vld [vmem:[%s11872_s3 + $0xf0] ss:$8 sps:$4 sm:$0xff]  }
 0x29f   : > { %6151 = vmatpush1.bf16.msra.mxu0 %v8960_v22 }
 0x2a0   : > { %6193 = vmatprep.subr.bf16.mxu0 %v8965_v2 }
 0x324   : > { %v4834_v35 = vpop.f32.mrb[0].mxu0 }
 0x325   : > { %v7625_v41 = vadd.f32 %v4834_v35, %v11570_v24  ;;  %v4836_v43 = vpop.f32.mrb[1].mxu0 }
 0x326   : > { %v7627_v27 = vadd.f32 %v4836_v43, %v11575_v34  ;;  %v4838_v28 = vpop.f32.mrb[2].mxu0 }
 0x327   : > { %v7626_v46 = vadd.f32 %v7625_v41, %v10085_v38  ;;  %v7629_v37 = vadd.f32 %v4838_v28, %v11570_v24  ;;  %v4840_v47 = vpop.f32.mrb[3].mxu0 }
 0x328   : > { %v7628_v48 = vadd.f32 %v7627_v27, %v10090_v40  ;;  %v7631_v49 = vadd.f32 %v4840_v47, %v11575_v34  ;;  %v8963_v40 = vld [vmem:[%s11872_s3 + $0x100] ss:$8 sps:$4 sm:$0xff]  }
 0x329   : > { %v7630_v44 = vadd.f32 %v7629_v37, %v10095_v42  ;;  %v5676_v51 = vmax.f32 %v7626_v46, 0.0 }
 0x32a   : > { %v7632_v50 = vadd.f32 %v7631_v49, %v10103_v45  ;;  %v5677_v54 = vmax.f32 %v7628_v48, 0.0 }
 0x32b   : > { %v5680_v52 = vmax.f32 %v7630_v44, 0.0 }
 0x32c   : > { %v5681_v56 = vmax.f32 %v7632_v50, 0.0  ;;  %v4844_v57 = vpop.f32.mrb[4].mxu0 }
 0x32d   : > { %v5708_v58 = vpack.c.bf16 %v5680_v52, %v5676_v51  ;;  %v7633_v19 = vadd.f32 %v4844_v57, %v11570_v24  ;;  %v4846_v38 = vpop.f32.mrb[5].mxu0  ;;  %v8975_v52 = vld [vmem:[%s11872_s3 + $0x140] ss:$8 sps:$4 sm:$0xff]  }
 0x32e   : > { %v7635_v61 = vadd.f32 %v4846_v38, %v11575_v34  ;;  %v4848_v63 = vpop.f32.mrb[6].mxu0  ;;  %v5709_v0 = vpack.c.bf16 %v5681_v56, %v5677_v54 }
 0x32f   : > { %v7634_v42 = vadd.f32 %v7633_v19, %v10171_v9  ;;  %v7637_v45 = vadd.f32 %v4848_v63, %v11570_v24  ;;  %v4850_v1 = vpop.f32.mrb[7].mxu0  ;;  %v8966_v9 = vld [vmem:[%s11872_s3 + $0x110] ss:$8 sps:$4 sm:$0xff]  }
 0x330   : > { %v7636_v59 = vadd.f32 %v7635_v61, %v10179_v13  ;;  %v7639_v4 = vadd.f32 %v4850_v1, %v11575_v34  ;;  %6152 = vmatprep.mubr.bf16.mxu0 %v5709_v0  ;;  %v8971_v13 = vld [vmem:[%s11872_s3 + $0x124] ss:$8 sps:$4 sm:$0xff]   ;;  %v8984_v1 = vld [vmem:[%s11872_s3 + $0x170] ss:$8 sps:$4 sm:$0xff]  }
 0x331   : > { %v7638_v10 = vadd.f32 %v7637_v45, %v10187_v16  ;;  %6153 = vmatmul.mubr.bf16.vlgmr.msra.gmra.mrb[16].mxu0 %v5708_v58  ;;  %v5684_v2 = vmax.f32 %v7634_v42, 0.0  ;;  %v8980_v58 = vld [vmem:[%s11872_s3 + $0x154] ss:$8 sps:$4 sm:$0xff]  }
 0x332   : > { %v7640_v22 = vadd.f32 %v7639_v4, %v10190_v18  ;;  %6194 = vmatpush1.bf16.msra.mxu0 %v8963_v40  ;;  %v5685_v6 = vmax.f32 %v7636_v59, 0.0  ;;  %v8986_v45 = vld [vmem:[%s11872_s3 + $0x174] ss:$8 sps:$4 sm:$0xff]   ;;  %v8987_v59 = vld [vmem:[%s11872_s3 + $0x180] ss:$8 sps:$4 sm:$0xff]  }
 0x333   : > { %v5688_v5 = vmax.f32 %v7638_v10, 0.0  ;;  %6195 = vmatprep.subr.bf16.mxu0 %v8968_v31  ;;  %v8989_v31 = vld [vmem:[%s11872_s3 + $0x184] ss:$8 sps:$4 sm:$0xff]   ;;  %v8992_v4 = vld [vmem:[%s11872_s3 + $0x194] ss:$8 sps:$4 sm:$0xff]   ;;  %v1201_v10 = vsub.s32 2, %v11552_v14 }
 0x334   : > { %v5689_v8 = vmax.f32 %v7640_v22, 0.0  ;;  %v4854_v3 = vpop.f32.mrb[8].mxu0  ;;  %v8990_v22 = vld [vmem:[%s11872_s3 + $0x190] ss:$8 sps:$4 sm:$0xff]  }
 0x335   : > { %v7641_v16 = vadd.f32 %v4854_v3, %v11570_v24  ;;  %v4856_v11 = vpop.f32.mrb[9].mxu0  ;;  %v5712_v12 = vpack.c.bf16 %v5688_v5, %v5684_v2  ;;  %v8995_v2 = vld [vmem:[%s11872_s3 + $0x1a4] ss:$8 sps:$4 sm:$0xff]   ;;  %v11672_v5 = vrot.slane %v11564_v26, %v1201_v10 }
 0x336   : > { %v7643_v18 = vadd.f32 %v4856_v11, %v11575_v34  ;;  %6196 = vmatpush1.bf16.msra.mxu0 %v8966_v9  ;;  %v4858_v15 = vpop.f32.mrb[10].mxu0  ;;  %v5713_v17 = vpack.c.bf16 %v5689_v8, %v5685_v6  ;;  %v1205_v9 = vsub.s32 3, %v11552_v14  ;;  %v8998_v8 = vld [vmem:[%s11872_s3 + $0x1b4] ss:$8 sps:$4 sm:$0xff]  }
 0x337   : > { %v7642_v7 = vadd.f32 %v7641_v16, %v10213_v30  ;;  %v7645_v23 = vadd.f32 %v4858_v15, %v11570_v24  ;;  %v4860_v20 = vpop.f32.mrb[11].mxu0  ;;  %6197 = vmatprep.subr.bf16.mxu0 %v8971_v13  ;;  %v8972_v30 = vld [vmem:[%s11872_s3 + $0x130] ss:$8 sps:$4 sm:$0xff]   ;;  %v8993_v13 = vld [vmem:[%s11872_s3 + $0x1a0] ss:$8 sps:$4 sm:$0xff]  }
 0x338   : > { %v7644_v35 = vadd.f32 %v7643_v18, %v10218_v33  ;;  %v7647_v41 = vadd.f32 %v4860_v20, %v11575_v34  ;;  %6162 = vmatprep.mubr.bf16.mxu0 %v5713_v17  ;;  %v8977_v33 = vld [vmem:[%s11872_s3 + $0x144] ss:$8 sps:$4 sm:$0xff]   ;;  %v11678_v6 = vrot.slane %v11564_v26, %v1205_v9  ;;  %v8996_v15 = vld [vmem:[%s11872_s3 + $0x1b0] ss:$8 sps:$4 sm:$0xff]  }
 0x339   : > { %v7646_v43 = vadd.f32 %v7645_v23, %v10225_v36  ;;  %6163 = vmatmul.mubr.bf16.gmra.mrb[20].mxu0 %v5712_v12  ;;  %v5692_v28 = vmax.f32 %v7642_v7, 0.0 }
 0x33a   : > { %v7648_v27 = vadd.f32 %v7647_v41, %v10231_v39  ;;  %6198 = vmatpush1.bf16.msra.mxu0 %v8969_v21  ;;  %v5693_v37 = vmax.f32 %v7644_v35, 0.0  ;;  %v9001_v21 = vld [vmem:[%s11872_s3 + $0x1c4] ss:$8 sps:$4 sm:$0xff]   ;;  %v8999_v41 = vld [vmem:[%s11872_s3 + $0x1c0] ss:$8 sps:$4 sm:$0xff]  }
 0x33b   : > { %v5696_v46 = vmax.f32 %v7646_v43, 0.0  ;;  %6199 = vmatprep.subr.bf16.mxu0 %v8974_v25 }
 0x33c   : > { %v5697_v47 = vmax.f32 %v7648_v27, 0.0  ;;  %v4864_v48 = vpop.f32.mrb[12].mxu0  ;;  %v9004_v27 = vld [vmem:[%s11872_s3 + $0x1d4] ss:$8 sps:$4 sm:$0xff]  }
 0x33d   : > { %v7649_v36 = vadd.f32 %v4864_v48, %v11570_v24  ;;  %v4866_v49 = vpop.f32.mrb[13].mxu0  ;;  %v5716_v44 = vpack.c.bf16 %v5696_v46, %v5692_v28  ;;  %v9002_v48 = vld [vmem:[%s11872_s3 + $0x1d0] ss:$8 sps:$4 sm:$0xff]  }
 0x33e   : > { %v7651_v39 = vadd.f32 %v4866_v49, %v11575_v34  ;;  %6200 = vmatpush1.bf16.msra.mxu0 %v8972_v30  ;;  %v4868_v50 = vpop.f32.mrb[14].mxu0  ;;  %v5717_v51 = vpack.c.bf16 %v5697_v47, %v5693_v37 }
 0x33f   : > { %v7650_v54 = vadd.f32 %v7649_v36, %v10255_v53  ;;  %v7653_v56 = vadd.f32 %v4868_v50, %v11570_v24  ;;  %v4870_v57 = vpop.f32.mrb[15].mxu0  ;;  %6201 = vmatprep.subr.bf16.mxu0 %v8977_v33  ;;  %v8978_v53 = vld [vmem:[%s11872_s3 + $0x150] ss:$8 sps:$4 sm:$0xff]  }
 0x340   : > { %v7652_v19 = vadd.f32 %v7651_v39, %v10260_v55  ;;  %v7655_v38 = vadd.f32 %v4870_v57, %v11575_v34  ;;  %6172 = vmatprep.mubr.bf16.mxu0 %v5717_v51  ;;  %v8983_v55 = vld [vmem:[%s11872_s3 + $0x164] ss:$8 sps:$4 sm:$0xff]  }
 0x341   : > { %v7654_v61 = vadd.f32 %v7653_v56, %v10270_v60  ;;  %6173 = vmatmul.mubr.bf16.gmra.mrb[24].mxu0 %v5716_v44  ;;  %v5700_v24 = vmax.f32 %v7650_v54, 0.0  ;;  %v9007_v44 = vld [vmem:[%s11872_s3 + $0x1e4] ss:$8 sps:$4 sm:$0xff]   ;;  %v9005_v56 = vld [vmem:[%s11872_s3 + $0x1e0] ss:$8 sps:$4 sm:$0xff]  }
 0x342   : > { %v7656_v63 = vadd.f32 %v7655_v38, %v10274_v62  ;;  %6202 = vmatpush1.bf16.msra.mxu0 %v8975_v52  ;;  %v5701_v40 = vmax.f32 %v7652_v19, 0.0  ;;  %v8981_v62 = vld [vmem:[%s11872_s3 + $0x160] ss:$8 sps:$4 sm:$0xff]  }
 0x343   : > { %v5704_v0 = vmax.f32 %v7654_v61, 0.0  ;;  %6203 = vmatprep.subr.bf16.mxu0 %v8980_v58  ;;  %v9010_v58 = vld [vmem:[%s11872_s3 + $0x1f4] ss:$8 sps:$4 sm:$0xff]  }
 0x344   : > { %v5705_v34 = vmax.f32 %v7656_v63, 0.0 }
 0x345   : > { %v5720_v42 = vpack.c.bf16 %v5704_v0, %v5700_v24  ;;  %v9008_v0 = vld [vmem:[%s11872_s3 + $0x1f0] ss:$8 sps:$4 sm:$0xff]  }
 0x346   : > { %6204 = vmatpush1.bf16.msra.mxu0 %v8978_v53  ;;  %v5721_v60 = vpack.c.bf16 %v5705_v34, %v5701_v40 }
 0x347   : > { %6205 = vmatprep.subr.bf16.mxu0 %v8983_v55 }
 0x348   : > { %6182 = vmatprep.mubr.bf16.mxu0 %v5721_v60 }
 0x349   : > { %6183 = vmatmul.mubr.bf16.gmra.mrb[28].mxu0 %v5720_v42 }
 0x34a   : > { %6206 = vmatpush1.bf16.msra.mxu0 %v8981_v62 }
 0x34b   : > { %6207 = vmatprep.subr.bf16.mxu0 %v8986_v45 }
 0x34e   : > { %6208 = vmatpush1.bf16.msra.mxu0 %v8984_v1 }
 0x34f   : > { %6209 = vmatprep.subr.bf16.mxu0 %v8989_v31 }
 0x352   : > { %6210 = vmatpush1.bf16.msra.mxu0 %v8987_v59 }
 0x353   : > { %6211 = vmatprep.subr.bf16.mxu0 %v8992_v4 }
 0x356   : > { %6212 = vmatpush1.bf16.msra.mxu0 %v8990_v22 }
 0x357   : > { %6213 = vmatprep.subr.bf16.mxu0 %v8995_v2 }
 0x359   : > { %v5637_v3 = vpop.f32.mrb[16].mxu1 }
 0x35a   : > { %v7657_v16 = vadd.f32 %v5637_v3, %v11672_v5  ;;  %v5639_v11 = vpop.f32.mrb[17].mxu1  ;;  %6214 = vmatpush1.bf16.msra.mxu0 %v8993_v13 }
 0x35b   : > { %v7658_v12 = vadd.f32 %v5639_v11, %v11678_v6  ;;  %v5641_v18 = vpop.f32.mrb[18].mxu1  ;;  %6215 = vmatprep.subr.bf16.mxu0 %v8998_v8 }
 0x35c   : > { %v7659_v26 = vadd.f32 %v5641_v18, %v11672_v5  ;;  %v5643_v17 = vpop.f32.mrb[19].mxu1  ;;  %v5678_v23 = vmax.f32 %v7657_v16, 0.0 }
 0x35d   : > { %v7660_v7 = vadd.f32 %v5643_v17, %v11678_v6  ;;  %v5679_v25 = vmax.f32 %v7658_v12, 0.0  ;;  %v9026_v17 = vld [vmem:[%s11874_s5 + $0x38] sm:$0xff]  }
 0x35e   : > { %v5682_v20 = vmax.f32 %v7659_v26, 0.0  ;;  %6216 = vmatpush1.bf16.msra.mxu0 %v8996_v15  ;;  %v9023_v26 = vld [vmem:[%s11874_s5 + $0x70] sm:$0xff]  }
 0x35f   : > { %v5683_v35 = vmax.f32 %v7660_v7, 0.0  ;;  %6217 = vmatprep.subr.bf16.mxu0 %v9001_v21  ;;  %7561 = vmatprep.subr.bf16.mxu1 %v9023_v26  ;;  %v9027_v21 = vld [vmem:[%s11876_s7] sm:$0xff]  }
 0x360   : > { %v5710_v43 = vpack.c.bf16 %v5682_v20, %v5678_v23  ;;  %v5788_v7 = vld [vmem:[%s11873_s4] sm:$0x3] }
 0x361   : > { %v5711_v30 = vpack.c.bf16 %v5683_v35, %v5679_v25  ;;  %v5647_v28 = vpop.f32.mrb[20].mxu1  ;;  %v5793_v23 = vrot.slane %v5788_v7, %v1193_v29  ;;  %v11748_v20 = vrot.slane %v5788_v7, %v1197_v32  ;;  %v9033_v7 = vld [vmem:[%s11876_s7 + $0x30] sm:$0xff]  }
 0x362   : > { %v7661_v46 = vadd.f32 %v5647_v28, %v11672_v5  ;;  %v5649_v33 = vpop.f32.mrb[21].mxu1  ;;  %6218 = vmatpush1.bf16.msra.mxu0 %v8999_v41 }
 0x363   : > { %v7662_v37 = vadd.f32 %v5649_v33, %v11678_v6  ;;  %v5651_v47 = vpop.f32.mrb[22].mxu1  ;;  %6225 = vmatprep.mubr.bf16.mxu0 %v5711_v30  ;;  %6219 = vmatprep.subr.bf16.mxu0 %v9004_v27 }
 0x364   : > { %v7663_v36 = vadd.f32 %v5651_v47, %v11672_v5  ;;  %v5653_v49 = vpop.f32.mrb[23].mxu1  ;;  %v5686_v50 = vmax.f32 %v7661_v46, 0.0 }
 0x365   : > { %v7664_v39 = vadd.f32 %v5653_v49, %v11678_v6  ;;  %v5687_v52 = vmax.f32 %v7662_v37, 0.0 }
 0x366   : > { %v5690_v51 = vmax.f32 %v7663_v36, 0.0  ;;  %6220 = vmatpush1.bf16.msra.mxu0 %v9002_v48 }
 0x367   : > { %v5691_v54 = vmax.f32 %v7664_v39, 0.0  ;;  %6221 = vmatprep.subr.bf16.mxu0 %v9007_v44  ;;  %v9028_v44 = vld [vmem:[%s11876_s7 + $0x8] sm:$0xff]  }
 0x368   : > { %v5714_v57 = vpack.c.bf16 %v5690_v51, %v5686_v50 }
 0x369   : > { %v5715_v19 = vpack.c.bf16 %v5691_v54, %v5687_v52  ;;  %v5657_v38 = vpop.f32.mrb[24].mxu1 }
 0x36a   : > { %v7665_v61 = vadd.f32 %v5657_v38, %v11672_v5  ;;  %v5659_v63 = vpop.f32.mrb[25].mxu1  ;;  %6222 = vmatpush1.bf16.msra.mxu0 %v9005_v56 }
 0x36b   : > { %v7666_v53 = vadd.f32 %v5659_v63, %v11678_v6  ;;  %v5661_v24 = vpop.f32.mrb[26].mxu1  ;;  %6223 = vmatprep.subr.bf16.mxu0 %v9010_v58  ;;  %v9029_v58 = vld [vmem:[%s11876_s7 + $0x10] sm:$0xff]  }
 0x36c   : > { %v7667_v55 = vadd.f32 %v5661_v24, %v11672_v5  ;;  %v5663_v40 = vpop.f32.mrb[27].mxu1  ;;  %v5694_v42 = vmax.f32 %v7665_v61, 0.0 }
 0x36d   : > { %v7668_v34 = vadd.f32 %v5663_v40, %v11678_v6  ;;  %v5695_v62 = vmax.f32 %v7666_v53, 0.0 }
 0x36e   : > { %v5698_v60 = vmax.f32 %v7667_v55, 0.0  ;;  %6224 = vmatpush1.bf16.msra.mxu0 %v9008_v0 }
 0x36f   : > { %v5699_v45 = vmax.f32 %v7668_v34, 0.0 }
 0x370   : > { %v5718_v1 = vpack.c.bf16 %v5698_v60, %v5694_v42 }
 0x371   : > { %v5719_v31 = vpack.c.bf16 %v5699_v45, %v5695_v62  ;;  %v5667_v59 = vpop.f32.mrb[28].mxu1  ;;  %6226 = vmatmul.mubr.bf16.vlgmr.msra.gmra.mrb[16].mxu0 %v5710_v43 }
 0x372   : > { %v7669_v4 = vadd.f32 %v5667_v59, %v11672_v5  ;;  %v5669_v10 = vpop.f32.mrb[29].mxu1  ;;  %6235 = vmatprep.mubr.bf16.mxu0 %v5715_v19 }
 0x373   : > { %v7670_v22 = vadd.f32 %v5669_v10, %v11678_v6  ;;  %v5671_v9 = vpop.f32.mrb[30].mxu1 }
 0x374   : > { %v7671_v2 = vadd.f32 %v5671_v9, %v11672_v5  ;;  %v5673_v13 = vpop.f32.mrb[31].mxu1  ;;  %v5702_v3 = vmax.f32 %v7669_v4, 0.0  ;;  %v9024_v5 = vld [vmem:[%s11874_s5 + $0x30] sm:$0xff]  }
 0x375   : > { %v7672_v8 = vadd.f32 %v5673_v13, %v11678_v6  ;;  %v5703_v11 = vmax.f32 %v7670_v22, 0.0  ;;  %7562 = vmatpush3.bf16.msra.mxu1 %v9024_v5  ;;  %v9025_v6 = vld [vmem:[%s11874_s5 + $0x78] sm:$0xff]  }
 0x376   : > { %v5706_v16 = vmax.f32 %v7671_v2, 0.0  ;;  %7563 = vmatprep.subr.bf16.mxu1 %v9025_v6  ;;  %v9030_v6 = vld [vmem:[%s11876_s7 + $0x18] sm:$0xff]  }
 0x377   : > { %v5707_v12 = vmax.f32 %v7672_v8, 0.0 }
 0x378   : > { %v5722_v18 = vpack.c.bf16 %v5706_v16, %v5702_v3 }
 0x379   : > { %v5723_v15 = vpack.c.bf16 %v5707_v12, %v5703_v11  ;;  %6236 = vmatmul.mubr.bf16.gmra.mrb[20].mxu0 %v5714_v57  ;;  %7564 = vmatpush3.bf16.msra.mxu1 %v9026_v17  ;;  %v9031_v17 = vld [vmem:[%s11876_s7 + $0x20] sm:$0xff]  }
 0x37a   : > { %6245 = vmatprep.mubr.bf16.mxu0 %v5719_v31  ;;  %7601 = vmatprep.subr.bf16.mxu1 %v9027_v21 }
 0x381   : > { %6246 = vmatmul.mubr.bf16.gmra.mrb[24].mxu0 %v5718_v1 }
 0x382   : > { %6255 = vmatprep.mubr.bf16.mxu0 %v5723_v15 }
 0x389   : > { %6256 = vmatmul.mubr.bf16.gmra.mrb[28].mxu0 %v5722_v18 }
 0x444   : > { %v6227_v25 = vpop.f32.mrb[16].mxu0 }
 0x445   : > { %v7673_v35 = vadd.f32 %v6227_v25, %v5793_v23  ;;  %v6229_v41 = vpop.f32.mrb[17].mxu0  ;;  %v7516_v25 = vld [vmem:[%s11875_s6] ss:$0 sm:$0xff] }
 0x446   : > { %v7674_v43 = vadd.f32 %v6229_v41, %v11748_v20  ;;  %v6231_v27 = vpop.f32.mrb[18].mxu0 }
 0x447   : > { %v7675_v30 = vadd.f32 %v6231_v27, %v5793_v23  ;;  %v6233_v28 = vpop.f32.mrb[19].mxu0  ;;  %v6266_v33 = vmax.f32 %v7673_v35, 0.0 }
 0x448   : > { %v7676_v46 = vadd.f32 %v6233_v28, %v11748_v20  ;;  %v6267_v47 = vmax.f32 %v7674_v43, 0.0 }
 0x449   : > { %v6268_v37 = vmax.f32 %v7675_v30, 0.0 }
 0x44a   : > { %v6269_v48 = vmax.f32 %v7676_v46, 0.0 }
 0x44b   : > { %v6282_v36 = vpack.c.bf16 %v6268_v37, %v6266_v33 }
 0x44c   : > { %v6283_v29 = vpack.c.bf16 %v6269_v48, %v6267_v47  ;;  %v6237_v49 = vpop.f32.mrb[20].mxu0 }
 0x44d   : > { %v7677_v14 = vadd.f32 %v6237_v49, %v5793_v23  ;;  %v6239_v32 = vpop.f32.mrb[21].mxu0 }
 0x44e   : > { %v7678_v39 = vadd.f32 %v6239_v32, %v11748_v20  ;;  %v6241_v50 = vpop.f32.mrb[22].mxu0  ;;  %6457 = vmatprep.mubr.bf16.mxu1 %v6283_v29 }
 0x44f   : > { %v7679_v51 = vadd.f32 %v6241_v50, %v5793_v23  ;;  %v6243_v52 = vpop.f32.mrb[23].mxu0  ;;  %6458 = vmatmul.mubr.bf16.vlgmr.msra.gmra.mrb[32].mxu1 %v6282_v36  ;;  %v6270_v56 = vmax.f32 %v7677_v14, 0.0 }
 0x450   : > { %v7680_v54 = vadd.f32 %v6243_v52, %v11748_v20  ;;  %7602 = vmatpush3.bf16.msra.mxu1 %v9027_v21  ;;  %v6271_v19 = vmax.f32 %v7678_v39, 0.0  ;;  %v9032_v21 = vld [vmem:[%s11876_s7 + $0x28] sm:$0xff]  }
 0x451   : > { %v6272_v57 = vmax.f32 %v7679_v51, 0.0  ;;  %7603 = vmatprep.subr.bf16.mxu1 %v9028_v44 }
 0x452   : > { %v6273_v38 = vmax.f32 %v7680_v54, 0.0 }
 0x453   : > { %v6284_v61 = vpack.c.bf16 %v6272_v57, %v6270_v56 }
 0x454   : > { %v6285_v63 = vpack.c.bf16 %v6273_v38, %v6271_v19  ;;  %v6247_v53 = vpop.f32.mrb[24].mxu0  ;;  %7604 = vmatpush3.bf16.msra.mxu1 %v9028_v44 }
 0x455   : > { %v7681_v24 = vadd.f32 %v6247_v53, %v5793_v23  ;;  %v6249_v0 = vpop.f32.mrb[25].mxu0  ;;  %7605 = vmatprep.subr.bf16.mxu1 %v9029_v58 }
 0x456   : > { %v7682_v55 = vadd.f32 %v6249_v0, %v11748_v20  ;;  %v6251_v40 = vpop.f32.mrb[26].mxu0  ;;  %6465 = vmatprep.mubr.bf16.mxu1 %v6285_v63 }
 0x457   : > { %v7683_v34 = vadd.f32 %v6251_v40, %v5793_v23  ;;  %v6253_v42 = vpop.f32.mrb[27].mxu0  ;;  %6466 = vmatmul.mubr.bf16.gmra.mrb[36].mxu1 %v6284_v61  ;;  %v6274_v62 = vmax.f32 %v7681_v24, 0.0 }
 0x458   : > { %v7684_v60 = vadd.f32 %v6253_v42, %v11748_v20  ;;  %7606 = vmatpush3.bf16.msra.mxu1 %v9029_v58  ;;  %v6275_v1 = vmax.f32 %v7682_v55, 0.0 }
 0x459   : > { %v6276_v45 = vmax.f32 %v7683_v34, 0.0  ;;  %7607 = vmatprep.subr.bf16.mxu1 %v9030_v6 }
 0x45a   : > { %v6277_v31 = vmax.f32 %v7684_v60, 0.0 }
 0x45b   : > { %v6286_v59 = vpack.c.bf16 %v6276_v45, %v6274_v62 }
 0x45c   : > { %v6287_v4 = vpack.c.bf16 %v6277_v31, %v6275_v1  ;;  %v6257_v10 = vpop.f32.mrb[28].mxu0  ;;  %7608 = vmatpush3.bf16.msra.mxu1 %v9030_v6 }
 0x45d   : > { %v7685_v22 = vadd.f32 %v6257_v10, %v5793_v23  ;;  %v6259_v9 = vpop.f32.mrb[29].mxu0  ;;  %7609 = vmatprep.subr.bf16.mxu1 %v9031_v17  ;;  %v7533_v10 = vld [vmem:[%s11877_s8] ss:$0 sm:$0xff] }
 0x45e   : > { %v7686_v2 = vadd.f32 %v6259_v9, %v11748_v20  ;;  %v6261_v13 = vpop.f32.mrb[30].mxu0  ;;  %6473 = vmatprep.mubr.bf16.mxu1 %v6287_v4 }
 0x45f   : > { %v7687_v8 = vadd.f32 %v6261_v13, %v5793_v23  ;;  %v6263_v3 = vpop.f32.mrb[31].mxu0  ;;  %6474 = vmatmul.mubr.bf16.gmra.mrb[40].mxu1 %v6286_v59  ;;  %v6278_v11 = vmax.f32 %v7685_v22, 0.0  ;;  %v9034_v23 = vld [vmem:[%s11876_s7 + $0x38] sm:$0xff]  }
 0x460   : > { %v7688_v16 = vadd.f32 %v6263_v3, %v11748_v20  ;;  %v6279_v18 = vmax.f32 %v7686_v2, 0.0  ;;  %7610 = vmatpush3.bf16.msra.mxu1 %v9031_v17  ;;  %v7542_v3 = vld [vmem:[%s11878_s9] ss:$0 sm:$0xff] }
 0x461   : > { %v6280_v12 = vmax.f32 %v7687_v8, 0.0  ;;  %7611 = vmatprep.subr.bf16.mxu1 %v9032_v21 }
 0x462   : > { %v6281_v15 = vmax.f32 %v7688_v16, 0.0 }
 0x463   : > { %v6288_v26 = vpack.c.bf16 %v6280_v12, %v6278_v11 }
 0x464   : > { %v6289_v5 = vpack.c.bf16 %v6281_v15, %v6279_v18  ;;  %7612 = vmatpush3.bf16.msra.mxu1 %v9032_v21 }
 0x465   : > { %7613 = vmatprep.subr.bf16.mxu1 %v9033_v7 }
 0x466   : > { %6481 = vmatprep.mubr.bf16.mxu1 %v6289_v5 }
 0x467   : > { %6482 = vmatmul.mubr.bf16.gmra.mrb[44].mxu1 %v6288_v26 }
 0x468   : > { %7614 = vmatpush3.bf16.msra.mxu1 %v9033_v7 }
 0x469   : > { %7615 = vmatprep.subr.bf16.mxu1 %v9034_v23 }
 0x46c   : > { %7616 = vmatpush3.bf16.msra.mxu1 %v9034_v23 }
 0x522   : > { %v7565_v20 = vpop.f32.mrb[32].mxu1 }
 0x523   : > { %v7566_v35 = vpop.f32.mrb[33].mxu1 }
 0x524   : > { %v7567_v41 = vadd.f32 %v7566_v35, %v7565_v20  ;;  %v7568_v43 = vpop.f32.mrb[34].mxu1 }
 0x525   : > { %v7569_v27 = vpop.f32.mrb[35].mxu1 }
 0x526   : > { %v6460_v30 = vadd.f32 %v7567_v41, %v7516_v25  ;;  %v7570_v28 = vadd.f32 %v7569_v27, %v7568_v43 }
 0x528   : > { %v6463_v46 = vadd.f32 %v7570_v28, %v7516_v25  ;;  %v6490_v33 = vmax.f32 %v6460_v30, 0.0 }
 0x52a   : > { %v6491_v37 = vmax.f32 %v6463_v46, 0.0  ;;  %v7571_v47 = vpop.f32.mrb[36].mxu1 }
 0x52b   : > { %v7572_v48 = vpop.f32.mrb[37].mxu1 }
 0x52c   : > { %v7573_v36 = vadd.f32 %v7572_v48, %v7571_v47  ;;  %v7574_v29 = vpop.f32.mrb[38].mxu1  ;;  %v6498_v49 = vpack.c.bf16 %v6491_v37, %v6490_v33 }
 0x52d   : > { %v7575_v14 = vpop.f32.mrb[39].mxu1 }
 0x52e   : > { %v6468_v32 = vadd.f32 %v7573_v36, %v7516_v25  ;;  %v7576_v44 = vadd.f32 %v7575_v14, %v7574_v29  ;;  %7617 = vmatprep.mubr.bf16.mxu1 %v6498_v49 }
 0x530   : > { %v6471_v39 = vadd.f32 %v7576_v44, %v7516_v25  ;;  %v6492_v50 = vmax.f32 %v6468_v32, 0.0 }
 0x532   : > { %v6493_v51 = vmax.f32 %v6471_v39, 0.0  ;;  %v7577_v52 = vpop.f32.mrb[40].mxu1 }
 0x533   : > { %v7578_v54 = vpop.f32.mrb[41].mxu1 }
 0x534   : > { %v6499_v56 = vpack.c.bf16 %v6493_v51, %v6492_v50  ;;  %v7579_v57 = vadd.f32 %v7578_v54, %v7577_v52  ;;  %v7580_v58 = vpop.f32.mrb[42].mxu1 }
 0x535   : > { %v7581_v19 = vpop.f32.mrb[43].mxu1 }
 0x536   : > { %v6476_v38 = vadd.f32 %v7579_v57, %v7516_v25  ;;  %v7582_v61 = vadd.f32 %v7581_v19, %v7580_v58  ;;  %7618 = vmatmul.mubr.bf16.vlgmr.msra.gmra.mrb[48].mxu1 %v6499_v56 }
 0x538   : > { %v6479_v63 = vadd.f32 %v7582_v61, %v7516_v25  ;;  %v6494_v53 = vmax.f32 %v6476_v38, 0.0 }
 0x53a   : > { %v6495_v24 = vmax.f32 %v6479_v63, 0.0  ;;  %v7583_v0 = vpop.f32.mrb[44].mxu1 }
 0x53b   : > { %v7584_v55 = vpop.f32.mrb[45].mxu1 }
 0x53c   : > { %v7585_v40 = vadd.f32 %v7584_v55, %v7583_v0  ;;  %v7586_v34 = vpop.f32.mrb[46].mxu1  ;;  %v6500_v42 = vpack.c.bf16 %v6495_v24, %v6494_v53 }
 0x53d   : > { %v7587_v60 = vpop.f32.mrb[47].mxu1 }
 0x53e   : > { %v6484_v62 = vadd.f32 %v7585_v40, %v7516_v25  ;;  %v7588_v45 = vadd.f32 %v7587_v60, %v7586_v34  ;;  %7621 = vmatprep.mubr.bf16.mxu1 %v6500_v42 }
 0x540   : > { %v6487_v1 = vadd.f32 %v7588_v45, %v7516_v25  ;;  %v6496_v31 = vmax.f32 %v6484_v62, 0.0 }
 0x542   : > { %v6497_v59 = vmax.f32 %v6487_v1, 0.0 }
 0x544   : > { %v6501_v4 = vpack.c.bf16 %v6497_v59, %v6496_v31 }
 0x546   : > { %7622 = vmatmul.mubr.bf16.gmra.mrb[52].mxu1 %v6501_v4 }
 0x609   : > { %v7619_v22 = vpop.f32.mrb[48].mxu1 }
 0x60a   : > { %v6616_v9 = vadd.f32 %v7619_v22, %v7533_v10  ;;  %v6607_v2 = vpop.f32.mrb[49].mxu1 }
 0x60b   : > { %v6608_v13 = vadd.f32 %v7533_v10, %v6607_v2  ;;  %v7620_v8 = vpop.f32.mrb[50].mxu1 }
 0x60c   : > { %v6640_v16 = vmax.f32 %v6616_v9, 0.0  ;;  %v6619_v11 = vadd.f32 %v7620_v8, %v7533_v10  ;;  %v6610_v12 = vpop.f32.mrb[51].mxu1 }
 0x60d   : > { %v6638_v18 = vmax.f32 %v6608_v13, 0.0  ;;  %v6611_v15 = vadd.f32 %v7533_v10, %v6610_v12 }
 0x60e   : > { %v6641_v26 = vmax.f32 %v6619_v11, 0.0  ;;  %v6655_v5 = vadd.f32 %v7542_v3, %v6640_v16 }
 0x60f   : > { %v6639_v6 = vmax.f32 %v6611_v15, 0.0  ;;  %v6653_v17 = vadd.f32 %v7542_v3, %v6638_v18 }
 0x610   : > { %6665 = vmax.xlane.f32.xlu1 %v6655_v5  ;;  %v6656_v21 = vadd.f32 %v7542_v3, %v6641_v26 }
 0x611   : > { %6661 = vmax.xlane.f32.xlu0 %v6653_v17  ;;  %v6654_v7 = vadd.f32 %v7542_v3, %v6639_v6 }
 0x614   : > { %6667 = vmax.xlane.f32.xlu1 %v6656_v21 }
 0x615   : > { %6663 = vmax.xlane.f32.xlu0 %v6654_v7 }
 0x619   : > { %v7623_v23 = vpop.f32.mrb[52].mxu1 }
 0x61a   : > { %v6623_v20 = vpop.f32.mrb[53].mxu1  ;;  %v6632_v25 = vadd.f32 %v7623_v23, %v7533_v10 }
 0x61b   : > { %v6624_v35 = vadd.f32 %v7533_v10, %v6623_v20  ;;  %v7624_v41 = vpop.f32.mrb[54].mxu1 }
 0x61c   : > { %v6626_v43 = vpop.f32.mrb[55].mxu1  ;;  %v6635_v30 = vadd.f32 %v7624_v41, %v7533_v10  ;;  %v6644_v46 = vmax.f32 %v6632_v25, 0.0 }
 0x61d   : > { %v6642_v27 = vmax.f32 %v6624_v35, 0.0  ;;  %v6627_v28 = vadd.f32 %v7533_v10, %v6626_v43 }
 0x61e   : > { %v6645_v47 = vmax.f32 %v6635_v30, 0.0  ;;  %v6659_v36 = vadd.f32 %v7542_v3, %v6644_v46 }
 0x61f   : > { %v6643_v33 = vmax.f32 %v6627_v28, 0.0  ;;  %v6657_v37 = vadd.f32 %v7542_v3, %v6642_v27 }
 0x620   : > { %v6660_v29 = vadd.f32 %v7542_v3, %v6645_v47 }
 0x621   : > { %6669 = vmax.xlane.f32.xlu0 %v6657_v37  ;;  %v6658_v48 = vadd.f32 %v7542_v3, %v6643_v33 }
 0x623   : > { %6671 = vmax.xlane.f32.xlu1 %v6658_v48 }
 0x625   : > { %6673 = vmax.xlane.f32.xlu0 %v6659_v36 }
 0x627   : > { %6675 = vmax.xlane.f32.xlu1 %v6660_v29 }
 0x69d   : > { %v6666_v49 = vpop.xlane.xlu1 %6665 }
 0x69e   : > { %v6679_v14 = vsub.f32 %v6655_v5, %v6666_v49  ;;  %v6662_v32 = vpop.xlane.xlu0 %6661 }
 0x69f   : > { %v6677_v44 = vsub.f32 %v6653_v17, %v6662_v32 }
 0x6a0   : > { %v6689_v39 = vmul.f32 1.442695, %v6679_v14 }
 0x6a1   : > { %v6685_v50 = vmul.f32 1.442695, %v6677_v44  ;;  %v6668_v51 = vpop.xlane.xlu1 %6667 }
 0x6a2   : > { %9035 = vpow2.f32 %v6689_v39  ;;  %v6680_v52 = vsub.f32 %v6656_v21, %v6668_v51  ;;  %v6664_v54 = vpop.xlane.xlu0 %6663 }
 0x6a3   : > { %v6678_v56 = vsub.f32 %v6654_v7, %v6664_v54  ;;  %9037 = vpow2.f32 %v6685_v50 }
 0x6a4   : > { %v6691_v57 = vmul.f32 1.442695, %v6680_v52 }
 0x6a5   : > { %v6687_v58 = vmul.f32 1.442695, %v6678_v56 }
 0x6a6   : > { %9039 = vpow2.f32 %v6691_v57 }
 0x6a7   : > { %9041 = vpow2.f32 %v6687_v58 }
 0x6ac   : > { %v9036_v19 = vpop.eup %9035 }
 0x6ad   : > { %6705 = vadd.xlane.f32.xlu0 %v9036_v19  ;;  %v11788_v61 = vpop.eup %9037 }
 0x6ae   : > { %v6670_v38 = vpop.xlane.xlu0 %6669 }
 0x6af   : > { %v6681_v63 = vsub.f32 %v6657_v37, %v6670_v38 }
 0x6b0   : > { %v9040_v53 = vpop.eup %9039  ;;  %v6672_v24 = vpop.xlane.xlu1 %6671 }
 0x6b1   : > { %v6693_v0 = vmul.f32 1.442695, %v6681_v63  ;;  %v6682_v55 = vsub.f32 %v6658_v48, %v6672_v24  ;;  %6707 = vadd.xlane.f32.xlu1 %v9040_v53  ;;  %6701 = vadd.xlane.f32.xlu0 %v11788_v61  ;;  %v9042_v60 = vpop.eup %9041 }
 0x6b2   : > { %v6674_v40 = vpop.xlane.xlu0 %6673 }
 0x6b3   : > { %9043 = vpow2.f32 %v6693_v0  ;;  %v6695_v34 = vmul.f32 1.442695, %v6682_v55  ;;  %v6683_v42 = vsub.f32 %v6659_v36, %v6674_v40 }
 0x6b4   : > { %v6676_v62 = vpop.xlane.xlu1 %6675 }
 0x6b5   : > { %9045 = vpow2.f32 %v6695_v34  ;;  %v6697_v45 = vmul.f32 1.442695, %v6683_v42  ;;  %v6684_v1 = vsub.f32 %v6660_v29, %v6676_v62  ;;  %6703 = vadd.xlane.f32.xlu1 %v9042_v60 }
 0x6b7   : > { %9047 = vpow2.f32 %v6697_v45  ;;  %v6699_v31 = vmul.f32 1.442695, %v6684_v1 }
 0x6b9   : > { %9049 = vpow2.f32 %v6699_v31 }
 0x6bd   : > { %v9044_v59 = vpop.eup %9043 }
 0x6be   : > { %6709 = vadd.xlane.f32.xlu0 %v9044_v59 }
 0x6bf   : > { %v11791_v4 = vpop.eup %9045 }
 0x6c0   : > { %6711 = vadd.xlane.f32.xlu1 %v11791_v4 }
 0x6c1   : > { %v11794_v10 = vpop.eup %9047 }
 0x6c2   : > { %6713 = vadd.xlane.f32.xlu0 %v11794_v10 }
 0x6c3   : > { %v11797_v22 = vpop.eup %9049 }
 0x6c4   : > { %6715 = vadd.xlane.f32.xlu1 %v11797_v22 }
 0x73a   : > { %v6706_v9 = vpop.xlane.xlu0 %6705 }
 0x73b   : > { %9051 = vrcp.f32 %v6706_v9 }
 0x73e   : > { %v6708_v2 = vpop.xlane.xlu1 %6707  ;;  %v6702_v13 = vpop.xlane.xlu0 %6701 }
 0x73f   : > { %9053 = vrcp.f32 %v6708_v2 }
 0x740   : > { %9055 = vrcp.f32 %v6702_v13 }
 0x742   : > { %v6704_v8 = vpop.xlane.xlu1 %6703 }
 0x743   : > { %9057 = vrcp.f32 %v6704_v8 }
 0x745   : > { %v9052_v3 = vpop.eup %9051 }
 0x746   : > { %v6727_v16 = vmul.f32 %v9052_v3, %v6706_v9 }
 0x748   : > { %v6735_v11 = vsub.f32 2.0, %v6727_v16 }
 0x749   : > { %v9054_v12 = vpop.eup %9053 }
 0x74a   : > { %v9056_v18 = vpop.eup %9055  ;;  %v6743_v15 = vmul.f32 %v9052_v3, %v6735_v11  ;;  %v6728_v26 = vmul.f32 %v9054_v12, %v6708_v2 }
 0x74b   : > { %v6725_v5 = vmul.f32 %v9056_v18, %v6702_v13  ;;  %v6710_v6 = vpop.xlane.xlu0 %6709 }
 0x74c   : > { %v6751_v17 = vmul.f32 %v9036_v19, %v6743_v15  ;;  %v6736_v21 = vsub.f32 2.0, %v6728_v26  ;;  %9059 = vrcp.f32 %v6710_v6 }
 0x74d   : > { %v9058_v7 = vpop.eup %9057  ;;  %v6733_v23 = vsub.f32 2.0, %v6725_v5  ;;  %v6712_v20 = vpop.xlane.xlu1 %6711 }
 0x74e   : > { %6759 = vst [vmem:[%s11803_s11 + $0x10] sm:$0xff] %v6751_v17  ;;  %v6744_v25 = vmul.f32 %v9054_v12, %v6736_v21  ;;  %v6726_v35 = vmul.f32 %v9058_v7, %v6704_v8  ;;  %9061 = vrcp.f32 %v6712_v20 }
 0x74f   : > { %v6741_v41 = vmul.f32 %v9056_v18, %v6733_v23  ;;  %v6714_v43 = vpop.xlane.xlu0 %6713 }
 0x750   : > { %v6752_v27 = vmul.f32 %v9040_v53, %v6744_v25  ;;  %v6734_v30 = vsub.f32 2.0, %v6726_v35  ;;  %9063 = vrcp.f32 %v6714_v43 }
 0x751   : > { %v6749_v28 = vmul.f32 %v11788_v61, %v6741_v41  ;;  %v6716_v46 = vpop.xlane.xlu1 %6715 }
 0x752   : > { %6760 = vst [vmem:[%s11803_s11 + $0x18] sm:$0xff] %v6752_v27  ;;  %v6742_v33 = vmul.f32 %v9058_v7, %v6734_v30  ;;  %9065 = vrcp.f32 %v6716_v46 }
 0x753   : > { %6757 = vst [vmem:[%s11803_s11] sm:$0xff] %v6749_v28 }
 0x754   : > { %v6750_v37 = vmul.f32 %v9042_v60, %v6742_v33 }
 0x756   : > { %v9060_v47 = vpop.eup %9059  ;;  %6758 = vst [vmem:[%s11803_s11 + $0x8] sm:$0xff] %v6750_v37 }
 0x757   : > { %v6729_v48 = vmul.f32 %v9060_v47, %v6710_v6 }
 0x758   : > { %v9062_v36 = vpop.eup %9061 }
 0x759   : > { %v6737_v29 = vsub.f32 2.0, %v6729_v48  ;;  %v6730_v49 = vmul.f32 %v9062_v36, %v6712_v20 }
 0x75a   : > { %v9064_v14 = vpop.eup %9063 }
 0x75b   : > { %v6745_v32 = vmul.f32 %v9060_v47, %v6737_v29  ;;  %v6738_v44 = vsub.f32 2.0, %v6730_v49  ;;  %v6731_v39 = vmul.f32 %v9064_v14, %v6714_v43 }
 0x75c   : > { %v9066_v50 = vpop.eup %9065 }
 0x75d   : > { %v6753_v51 = vmul.f32 %v9044_v59, %v6745_v32  ;;  %v6746_v52 = vmul.f32 %v9062_v36, %v6738_v44  ;;  %v6739_v54 = vsub.f32 2.0, %v6731_v39  ;;  %v6732_v56 = vmul.f32 %v9066_v50, %v6716_v46 }
 0x75f   : > { %6761 = vst [vmem:[%s11803_s11 + $0x20] sm:$0xff] %v6753_v51  ;;  %v6754_v57 = vmul.f32 %v11791_v4, %v6746_v52  ;;  %v6747_v58 = vmul.f32 %v9064_v14, %v6739_v54  ;;  %v6740_v19 = vsub.f32 2.0, %v6732_v56 }
 0x761   : > { %6762 = vst [vmem:[%s11803_s11 + $0x28] sm:$0xff] %v6754_v57  ;;  %v6755_v38 = vmul.f32 %v11794_v10, %v6747_v58  ;;  %v6748_v61 = vmul.f32 %v9066_v50, %v6740_v19 }
 0x763   : > { %6763 = vst [vmem:[%s11803_s11 + $0x30] sm:$0xff] %v6755_v38  ;;  %v6756_v63 = vmul.f32 %v11797_v22, %v6748_v61 }
 0x765   : > { %6764 = vst [vmem:[%s11803_s11 + $0x38] sm:$0xff] %v6756_v63 }
 0x766   : > { %9080 = shalt.err (!%p9077_p3)
}
 0x767   : > { %s9081_s22 = scalar_lea.hbm %s11819_s28, 1024  ;;  %s9085_s11 = scalar_lea.hbm %s11879_s10, 4096 }
 0x768   : > { %p9082_p4 = scmp.ne.s32.totalorder %s11819_s28, %s9081_s22  ;;  %p9086_p9 = scmp.lt.u32.totalorder %s11819_s28, %s11879_s10 }
 0x769   : > { %p9087_p10 = scmp.lt.u32.totalorder %s9085_s11, %s9081_s22  ;;  %p9089_p12 = scmp.lt.u32.totalorder %s9081_s22, %s11819_s28 }
 0x76a   : > { %p9083_p7 = pnand %p9082_p4, %p9229_p5 }
 0x76b   : > { %p9088_p11 = por %p9087_p10, %p9086_p9 }
 0x76c   : > { %p9084_p8 = pneg %p9083_p7 }
 0x76d   : > { %p9090_p13 = por %p9089_p12, %p9088_p11 }
 0x76f   : > { %p9091_p0 = pnand %p9090_p13, %p9084_p8 }
 0x771   : > { %9094 = shalt.err (!%p9091_p0)
}
 0x772   : > { %s9134_s27 = smov 128   ;;  %s9135_s26 = smov 8  }
 0x773   : > { %7978 = dma.vmem_to_hbm [thread:$0]  (%p9229_p5), %s11821_s20, 1024, %s11819_s28, %s11828_s17, %s9134_s27, %s9134_s27, %s9135_s26  }
 0x774 PF: > { %p7984_p1 = scmp.ge.s32.totalorder %s9129_s16, 2  ;;  %s6794_s29 = sand.u32 1, %s9117_s13  }
 0x775   : > { %s6795_s30 = scalar_lea.sflag [#allocation3], %s6794_s29 }
 0x776   : > { %p7981_p2 = pnand %p7984_p1, %p9233_p6 }
 0x778   : > { %9112 = dma.done.wait (!%p7981_p2), %s6795_s30, 1024  }
 0x779   : > { %9114 = vsyncadd (!%p7981_p2), %s6795_s30, 4294966272  ;;  %s11885_s0 = sld [smem:[#allocation5_spill]]  ;;  %p20_p3 = scmp.ge.s32.totalorder %s9216_s19, 6  }
 0x77a   : > { %s11886_s13 = smov %s9121_s14  ;;  %s11887_s14 = smov %s9125_s15 }
 0x77b   : > { %s11889_s16 = smov %s9216_s19  ;;  %22 = sbr.rel (!%p20_p3) target bundleno = 5 (0x5), region = 95 }
 0x77f   : > { %s11888_s15 = smov %s11885_s0 }
 0x782   :  { %6800 = vsyncpa [#allocation3], 1 }
 0x783   :  { %6802 = vsyncpa [#allocation3 + $0x1], 1 }

</bundles_post_ra>
